<compile_context>
chip_gen: v5e
topology: v5e:2x2
jax: 0.10.0
libtpu: 0.0.40
codegen_flags: <defaults>
</compile_context>

<pallas_src>
import functools
import math

import jax
import jax.numpy as jnp
from jax.experimental import pallas as pl
from jax.experimental.pallas import tpu as pltpu


def _round_up(x, m):
    return (x + m - 1) // m * m


_TILE_M = 256


def _pick_tile_m(m):
    """Pick (tm, Mp) so that Mp is a multiple of tm with minimal padding."""
    mp8 = _round_up(m, 8)
    if mp8 <= _TILE_M:
        return mp8, mp8
    best_tm, best_pad = None, None
    for tm in (256, 192, 128, 96, 64):          # descending: ties keep the largest tm
        pad = _round_up(mp8, tm) - mp8
        if best_pad is None or pad < best_pad:
            best_tm, best_pad = tm, pad
    return best_tm, _round_up(mp8, best_tm)


# ---------------------------------------------------------------------------
# Fused (branch-batched) matmul + bias + activation kernel.
#   x: (G, M, K) bf16 | w: (G, Kp, Np) bf16 (BN scale pre-folded) | b: (G, 1, Np) f32
# ---------------------------------------------------------------------------
def _mm_kernel(x_ref, w_ref, b_ref, o_ref, *, act):
    acc = jnp.dot(x_ref[0], w_ref[0], preferred_element_type=jnp.float32)
    acc = acc + b_ref[0]
    if act == "relu":
        acc = jnp.maximum(acc, 0.0)
    o_ref[...] = acc[None]


def batched_matmul(x, w, b, act="relu"):
    G, M, K = x.shape
    _, Kp, Np = w.shape
    tm, Mp = _pick_tile_m(M)
    if (Mp, Kp) != (M, K):
        x = jnp.pad(x, ((0, 0), (0, Mp - M), (0, Kp - K)))
    out = pl.pallas_call(
        functools.partial(_mm_kernel, act=act),
        out_shape=jax.ShapeDtypeStruct((G, Mp, Np), jnp.float32),
        grid=(G, Mp // tm),
        in_specs=[
            pl.BlockSpec((1, tm, Kp), lambda g, i: (g, i, 0)),
            pl.BlockSpec((1, Kp, Np), lambda g, i: (g, 0, 0)),   # resident per branch
            pl.BlockSpec((1, 1, Np), lambda g, i: (g, 0, 0)),
        ],
        out_specs=pl.BlockSpec((1, tm, Np), lambda g, i: (g, i, 0)),
        compiler_params=pltpu.CompilerParams(
            dimension_semantics=("parallel", "parallel")),
        cost_estimate=pl.CostEstimate(
            flops=2 * G * Mp * Kp * Np,
            transcendentals=0,
            bytes_accessed=2 * G * (Mp * Kp + Kp * Np) + 4 * G * (Np + Mp * Np)),
    )(x, w, b)
    return out[:, :M]


# ---------------------------------------------------------------------------
# im2col: always a pure reshape (window path needs kernel==stride on both axes;
# overlapping W-windows were folded into a Toeplitz weight at prep time).
# ---------------------------------------------------------------------------
def _im2col(x, meta):
    N, D, H, W, C = x.shape
    if meta["mode"] == "win":
        kh, kw = meta["kh"], meta["kw"]
        ph, pw = meta["ph"], meta["pw"]
        if ph or pw:
            x = jnp.pad(x, ((0, 0), (0, 0), (ph, ph), (pw, pw), (0, 0)))
            H += 2 * ph
            W += 2 * pw
        assert H % kh == 0 and W % kw == 0
        Ho, Wo = H // kh, W // kw
        x = x.reshape(N, D, Ho, kh, Wo, kw, C)
        x = jnp.transpose(x, (0, 1, 2, 4, 3, 5, 6))          # (N,D,Ho,Wo,kh,kw,C)
        xmat = x.reshape(N * D * Ho * Wo, kh * kw * C)
        return xmat, (N, D, Ho, Wo)
    # Toeplitz path: kernel-depth/height == 1, W unroll folded into the weight.
    Ho, Wo = H, meta["wo"]
    xmat = x.reshape(N * D * H, W * C)
    return xmat, (N, D, Ho, Wo)


def conv_group(xs, gp, act="relu"):
    """Run len(xs) same-shaped convs as one branch-batched pallas_call."""
    metas = gp["metas"]
    mats, geoms = [], []
    for x, meta in zip(xs, metas):
        m, g = _im2col(x, meta)
        mats.append(m)
        geoms.append(g)
    assert all(g == geoms[0] for g in geoms)
    Kp = gp["w"].shape[1]
    mats = [jnp.pad(m, ((0, 0), (0, Kp - m.shape[1]))).astype(jnp.bfloat16)
            for m in mats]
    xstk = jnp.stack(mats, 0)                                  # (G, M, Kp) bf16
    out = batched_matmul(xstk, gp["w"], gp["b"], act=act)       # (G, M, Np) f32
    N, D, Ho, Wo = geoms[0]
    cout, ncols = metas[0]["cout"], metas[0]["ncols"]
    return [out[i, :, :ncols].reshape(N, D, Ho, Wo, cout) for i in range(len(xs))]


# ---------------------------------------------------------------------------
# Fused 2-layer GRU: grid=(T,), both hidden states live in VMEM scratch, layer-1
# input gates are precomputed, torch.mean(rnn_out, dim=1) fused into the epilogue.
# ---------------------------------------------------------------------------
def _gru2_kernel(xg1_ref, whh1_ref, bhh1_ref, wih2_ref, bih2_ref, whh2_ref, bhh2_ref,
                 o_ref, h1_ref, h2_ref, *, hp, nb, inv_b):
    t = pl.program_id(0)

    @pl.when(t == 0)
    def _():
        h1_ref[...] = jnp.zeros_like(h1_ref)
        h2_ref[...] = jnp.zeros_like(h2_ref)

    def cell(xg, hg, h):
        r = jax.nn.sigmoid(xg[:, :hp] + hg[:, :hp])
        z = jax.nn.sigmoid(xg[:, hp:2 * hp] + hg[:, hp:2 * hp])
        n = jnp.tanh(xg[:, 2 * hp:] + r * hg[:, 2 * hp:])
        return (1.0 - z) * n + z * h

    # layer 1 (input gates precomputed outside the recurrence)
    h1 = h1_ref[...]
    xg1 = xg1_ref[0]
    hg1 = jnp.dot(h1.astype(jnp.bfloat16), whh1_ref[...],
                  preferred_element_type=jnp.float32) + bhh1_ref[...]
    h1n = cell(xg1, hg1, h1)
    h1_ref[...] = h1n

    # layer 2
    h2 = h2_ref[...]
    xg2 = jnp.dot(h1n.astype(jnp.bfloat16), wih2_ref[...],
                  preferred_element_type=jnp.float32) + bih2_ref[...]
    hg2 = jnp.dot(h2.astype(jnp.bfloat16), whh2_ref[...],
                  preferred_element_type=jnp.float32) + bhh2_ref[...]
    h2n = cell(xg2, hg2, h2)
    h2_ref[...] = h2n

    # fused torch.mean(rnn_out, dim=1) over the real batch rows
    o_ref[...] = (jnp.sum(h2n[:nb], axis=0, keepdims=True) * inv_b)[None]


def gru_forward(seq, gp):
    T, B, In = seq.shape
    l1, l2 = gp["l1"], gp["l2"]
    Hp, Inp, H = l1["Hp"], l1["Inp"], gp["H"]
    Bp = _round_up(B, 8)
    x = jnp.pad(seq, ((0, 0), (0, Bp - B), (0, Inp - In)))

    # hoisted layer-1 input-gate matmul: one (T*Bp, Inp) x (Inp, 3Hp) matmul
    xg1 = batched_matmul(x.reshape(1, T * Bp, Inp).astype(jnp.bfloat16),
                         l1["wih"][None], l1["bih"][None], act="none")
    xg1 = xg1[0].reshape(T, Bp, 3 * Hp)

    kernel = functools.partial(_gru2_kernel, hp=Hp, nb=B, inv_b=1.0 / B)
    y = pl.pallas_call(
        kernel,
        out_shape=jax.ShapeDtypeStruct((T, 1, Hp), jnp.float32),
        grid=(T,),
        in_specs=[
            pl.BlockSpec((1, Bp, 3 * Hp), lambda t: (t, 0, 0)),
            pl.BlockSpec((Hp, 3 * Hp), lambda t: (0, 0)),       # resident weights
            pl.BlockSpec((1, 3 * Hp), lambda t: (0, 0)),
            pl.BlockSpec((Hp, 3 * Hp), lambda t: (0, 0)),
            pl.BlockSpec((1, 3 * Hp), lambda t: (0, 0)),
            pl.BlockSpec((Hp, 3 * Hp), lambda t: (0, 0)),
            pl.BlockSpec((1, 3 * Hp), lambda t: (0, 0)),
        ],
        out_specs=pl.BlockSpec((1, 1, Hp), lambda t: (t, 0, 0)),
        scratch_shapes=[pltpu.VMEM((Bp, Hp), jnp.float32),
                        pltpu.VMEM((Bp, Hp), jnp.float32)],
        compiler_params=pltpu.CompilerParams(dimension_semantics=("arbitrary",)),
    )(xg1, l1["whh"], l1["bhh"], l2["wih"], l2["bih"], l2["whh"], l2["bhh"])
    return y[:, 0, :H]


# ---------------------------------------------------------------------------
# Full `server` forward (eval mode)
# ---------------------------------------------------------------------------
def server_forward(x, p):
    # x: (N, 1, D, 21, 11) NCDHW.  x2, x1 = x.split([12, 9], dim=3)
    x2 = x[:, :, :, :12, :]
    x1 = x[:, :, :, 12:, :]

    def to_cl(t):      # NCDHW -> channels-last NDHWC
        return jnp.transpose(t, (0, 2, 3, 4, 1))

    def to_ncdhw(t):   # channels-last -> NCDHW (only at torch.reshape boundaries)
        return jnp.transpose(t, (0, 4, 1, 2, 3))

    x1, x2 = to_cl(x1), to_cl(x2)

    c1_d3, c1_d4 = conv_group([x1, x2], p["conv1"])
    c2_d3, c2_d4 = conv_group([c1_d3, c1_d4], p["conv2"])
    c3_d3, c3_d4 = conv_group([c2_d3, c2_d4], p["conv3"])

    d3r = to_ncdhw(c3_d3)                                      # (N, 64, D, 3, 1)
    d4r = to_ncdhw(c3_d4)
    d3f = d3r.reshape(d3r.shape[0], 1, d3r.shape[2], d3r.shape[3], -1)
    d4f = d4r.reshape(d4r.shape[0], 1, d4r.shape[2], d4r.shape[3], -1)
    merge_in = jnp.concatenate([d3f, d4f], axis=3)             # (N, 1, D, 6, 64)
    merge_cl = to_cl(merge_in)                                 # (N, D, 6, 64, 1)

    (m1,) = conv_group([merge_cl], p["merge1"])
    (m2,) = conv_group([m1], p["merge2"])
    (m3,) = conv_group([m2], p["merge3"])                      # (N, D, 1, 3, 64)
    m3n = to_ncdhw(m3)                                         # (N, 64, D, 1, 3)
    seq = m3n.reshape(m3n.shape[0], m3n.shape[2], -1)          # (T=N, B=D, 192)
    return gru_forward(seq, p["gru"])


# ---------------------------------------------------------------------------
# Parameter init (raw, torch layout) + one-time prep (fold BN, Toeplitz, pad, bf16)
# ---------------------------------------------------------------------------
def _init_conv(key, cin, cout, ks, stride, pad):
    kd, kh, kw = ks
    fan_in = cin * kd * kh * kw
    bound = 1.0 / math.sqrt(fan_in)
    k1, k2, k3, k4, k5, k6 = jax.random.split(key, 6)
    return {
        "w": jax.random.uniform(k1, (cout, cin, kd, kh, kw), jnp.float32, -bound, bound),
        "b": jax.random.uniform(k2, (cout,), jnp.float32, -bound, bound),
        "bn": (jax.random.uniform(k3, (cout,), jnp.float32, 0.5, 1.5),    # gamma
               jax.random.uniform(k4, (cout,), jnp.float32, -0.5, 0.5),   # beta
               jax.random.uniform(k5, (cout,), jnp.float32, -0.5, 0.5),   # running mean
               jax.random.uniform(k6, (cout,), jnp.float32, 0.5, 1.5),    # running var
               1e-5),
        "stride": stride, "pad": pad,
    }


def init_raw_params(key, out_channel=64, rnn_hidden=64):
    keys = iter(jax.random.split(key, 16))
    raw = {
        "d3_conv1": _init_conv(next(keys), 1, out_channel, (1, 3, 3), (1, 3, 3), (0, 0, 2)),
        "d3_conv2": _init_conv(next(keys), out_channel, out_channel, (1, 1, 3), (1, 1, 2), (0, 0, 0)),
        "d3_conv3": _init_conv(next(keys), out_channel, out_channel, (1, 1, 2), (1, 1, 2), (0, 0, 0)),
        "d4_conv1": _init_conv(next(keys), 1, out_channel, (1, 4, 3), (1, 4, 3), (0, 0, 2)),
        "d4_conv2": _init_conv(next(keys), out_channel, out_channel, (1, 1, 3), (1, 1, 2), (0, 0, 0)),
        "d4_conv3": _init_conv(next(keys), out_channel, out_channel, (1, 1, 2), (1, 1, 2), (0, 0, 0)),
        "merge_conv1": _init_conv(next(keys), 1, out_channel, (1, 6, 1), (1, 6, 1), (0, 0, 0)),
        "merge_conv2": _init_conv(next(keys), out_channel, out_channel, (1, 1, 8), (1, 1, 8), (0, 0, 0)),
        "merge_conv3": _init_conv(next(keys), out_channel, out_channel, (1, 1, 4), (1, 1, 2), (0, 0, 0)),
    }
    gru = []
    in_size = 3 * 64                                  # rnn_block.input_size = 192
    for _ in range(2):                                # num_layers = 2
        bound = 1.0 / math.sqrt(rnn_hidden)
        k1, k2, k3, k4 = jax.random.split(next(keys), 4)
        gru.append({
            "w_ih": jax.random.uniform(k1, (3 * rnn_hidden, in_size), jnp.float32, -bound, bound),
            "w_hh": jax.random.uniform(k2, (3 * rnn_hidden, rnn_hidden), jnp.float32, -bound, bound),
            "b_ih": jax.random.uniform(k3, (3 * rnn_hidden,), jnp.float32, -bound, bound),
            "b_hh": jax.random.uniform(k4, (3 * rnn_hidden,), jnp.float32, -bound, bound),
        })
        in_size = rnn_hidden
    raw["gru"] = gru
    return raw


def _prep_conv(c, *, in_w=None):
    w, b = c["w"], c["b"]
    gamma, beta, mean, var, eps = c["bn"]
    cout, cin, kd, kh, kw = w.shape
    _, sh, sw = c["stride"]
    _, ph, pw = c["pad"]
    assert kd == 1 and kh == sh
    scale = gamma / jnp.sqrt(var + eps)
    bias = beta + (b - mean) * scale                  # folded eval-mode BatchNorm bias
    w = w * scale.reshape(-1, 1, 1, 1, 1)             # fold BN scale into weights
    w2 = w[:, :, 0]                                   # (cout, cin, kh, kw)

    if kw == sw:
        # non-overlapping windows: standard im2col weight, row order (kh, kw, cin)
        wmat = jnp.transpose(w2, (2, 3, 1, 0)).reshape(kh * kw * cin, cout)
        bvec = bias
        meta = dict(mode="win", kh=kh, kw=kw, ph=ph, pw=pw, cout=cout, ncols=cout)
    else:
        # overlapping W-windows: fold kw unroll into a block-Toeplitz weight
        assert kh == 1 and ph == 0 and pw == 0 and in_w is not None
        W = in_w
        Wo = (W - kw) // sw + 1
        wmat = jnp.zeros((W * cin, Wo * cout), jnp.float32)
        for wo in range(Wo):
            for dw in range(kw):
                ws = sw * wo + dw
                wmat = wmat.at[ws * cin:(ws + 1) * cin,
                               wo * cout:(wo + 1) * cout].set(w2[:, :, 0, dw].T)
        bvec = jnp.tile(bias, Wo)
        meta = dict(mode="toep", wo=Wo, cout=cout, ncols=Wo * cout)

    K, Nr = wmat.shape
    Kp, Np = _round_up(K, 128), _round_up(Nr, 128)
    w_p = jnp.zeros((Kp, Np), jnp.float32).at[:K, :Nr].set(wmat).astype(jnp.bfloat16)
    b_p = jnp.zeros((1, Np), jnp.float32).at[0, :Nr].set(bvec)
    return {"w": w_p, "b": b_p, "meta": meta}


def _group(preps):
    return {"w": jnp.stack([q["w"] for q in preps], 0),
            "b": jnp.stack([q["b"] for q in preps], 0),
            "metas": [q["meta"] for q in preps]}


def _prep_gru(gru_raw):
    def pad_layer(lp):
        w_ih, w_hh, b_ih, b_hh = lp["w_ih"], lp["w_hh"], lp["b_ih"], lp["b_hh"]
        H = w_hh.shape[1]
        In = w_ih.shape[1]
        Hp, Inp = _round_up(H, 128), _round_up(In, 128)
        wih = jnp.zeros((Inp, 3 * Hp), jnp.float32)
        whh = jnp.zeros((Hp, 3 * Hp), jnp.float32)
        bih = jnp.zeros((1, 3 * Hp), jnp.float32)
        bhh = jnp.zeros((1, 3 * Hp), jnp.float32)
        for g in range(3):                            # PyTorch gate order r, z, n
            wih = wih.at[:In, g * Hp:g * Hp + H].set(w_ih[g * H:(g + 1) * H, :].T)
            whh = whh.at[:H, g * Hp:g * Hp + H].set(w_hh[g * H:(g + 1) * H, :].T)
            bih = bih.at[0, g * Hp:g * Hp + H].set(b_ih[g * H:(g + 1) * H])
            bhh = bhh.at[0, g * Hp:g * Hp + H].set(b_hh[g * H:(g + 1) * H])
        return dict(wih=wih.astype(jnp.bfloat16), whh=whh.astype(jnp.bfloat16),
                    bih=bih, bhh=bhh, Hp=Hp, Inp=Inp)
    l1, l2 = pad_layer(gru_raw[0]), pad_layer(gru_raw[1])
    return {"l1": l1, "l2": l2, "H": gru_raw[0]["w_hh"].shape[1]}


def prepare_params(raw):
    # static input widths for the overlapping-window convs (from the architecture)
    return {
        "conv1": _group([_prep_conv(raw["d3_conv1"]), _prep_conv(raw["d4_conv1"])]),
        "conv2": _group([_prep_conv(raw["d3_conv2"], in_w=5),
                         _prep_conv(raw["d4_conv2"], in_w=5)]),
        "conv3": _group([_prep_conv(raw["d3_conv3"]), _prep_conv(raw["d4_conv3"])]),
        "merge1": _group([_prep_conv(raw["merge_conv1"])]),
        "merge2": _group([_prep_conv(raw["merge_conv2"])]),
        "merge3": _group([_prep_conv(raw["merge_conv3"], in_w=8)]),
        "gru": _prep_gru(raw["gru"]),
    }


# ---------------------------------------------------------------------------
# Pure-JAX reference (lax.conv_general_dilated + lax.scan GRU) for validation
# ---------------------------------------------------------------------------
def reference_forward(x, raw):
    def conv_ref(xin, c):
        gamma, beta, mean, var, eps = c["bn"]
        y = jax.lax.conv_general_dilated(
            xin, c["w"], window_strides=c["stride"],
            padding=[(pv, pv) for pv in c["pad"]],
            dimension_numbers=("NCDHW", "OIDHW", "NCDHW"))
        y = y + c["b"].reshape(1, -1, 1, 1, 1)
        scale = (gamma / jnp.sqrt(var + eps)).reshape(1, -1, 1, 1, 1)
        y = (y - mean.reshape(1, -1, 1, 1, 1)) * scale + beta.reshape(1, -1, 1, 1, 1)
        return jnp.maximum(y, 0.0)

    x2, x1 = x[:, :, :, :12, :], x[:, :, :, 12:, :]
    d3c1 = conv_ref(x1, raw["d3_conv1"])
    d3c2 = conv_ref(d3c1, raw["d3_conv2"])
    d3c3 = conv_ref(d3c2, raw["d3_conv3"])
    d4c1 = conv_ref(x2, raw["d4_conv1"])
    d4c2 = conv_ref(d4c1, raw["d4_conv2"])
    d4c3 = conv_ref(d4c2, raw["d4_conv3"])
    d3f = d3c3.reshape(d3c3.shape[0], 1, d3c3.shape[2], d3c3.shape[3], -1)
    d4f = d4c3.reshape(d4c3.shape[0], 1, d4c3.shape[2], d4c3.shape[3], -1)
    mi = jnp.concatenate([d3f, d4f], axis=3)
    m1 = conv_ref(mi, raw["merge_conv1"])
    m2 = conv_ref(m1, raw["merge_conv2"])
    m3 = conv_ref(m2, raw["merge_conv3"])
    seq = m3.reshape(m3.shape[0], m3.shape[2], -1)

    h = seq
    for lp in raw["gru"]:
        w_ih, w_hh, b_ih, b_hh = lp["w_ih"], lp["w_hh"], lp["b_ih"], lp["b_hh"]
        H = w_hh.shape[1]

        def cell(hprev, x_t, w_ih=w_ih, w_hh=w_hh, b_ih=b_ih, b_hh=b_hh):
            gi = x_t @ w_ih.T + b_ih
            gh = hprev @ w_hh.T + b_hh
            ir, iz, inn = jnp.split(gi, 3, axis=-1)
            hr, hz, hn = jnp.split(gh, 3, axis=-1)
            r = jax.nn.sigmoid(ir + hr)
            z = jax.nn.sigmoid(iz + hz)
            n = jnp.tanh(inn + r * hn)
            hnew = (1.0 - z) * n + z * hprev
            return hnew, hnew

        h0 = jnp.zeros((h.shape[1], H), jnp.float32)
        _, h = jax.lax.scan(cell, h0, h)
    return jnp.mean(h, axis=1)


# ---------------------------------------------------------------------------
if __name__ == "__main__":
    key = jax.random.PRNGKey(0)
    N, D = 2, 3                 # N = conv batch (GRU seq_len), D = depth (GRU batch)
    OUT_C, RNN_H = 64, 64       # out_channel must be 64 (rnn input_size = 3*64)
    k_in, k_par = jax.random.split(key)

    x = jax.random.normal(k_in, (N, 1, D, 21, 11), jnp.float32)   # NCDHW, H = 12 + 9
    raw = init_raw_params(k_par, out_channel=OUT_C, rnn_hidden=RNN_H)
    prepped = prepare_params(raw)

    fwd = jax.jit(lambda xx: server_forward(xx, prepped))
    out = jax.block_until_ready(fwd(x))

    assert out.shape == (N, RNN_H), out.shape
    assert bool(jnp.all(jnp.isfinite(out)))

    ref = jax.block_until_ready(reference_forward(x, raw))
    err = float(jnp.max(jnp.abs(out - ref)))
    # bf16 MXU operands (f32 accumulation) vs a pure-f32 reference
    assert err < 1.5e-1, f"mismatch vs reference: max abs err = {err}"

    print("KERNEL_OK")
</pallas_src>

<mosaic_0001>
module attributes {stable_mosaic.version = 11 : i64} {
  func.func @_mm_kernel(%arg0: i32, %arg1: i32, %arg2: memref<1x96x128xbf16, #tpu.memory_space<vmem>>, %arg3: memref<1x128x128xbf16, #tpu.memory_space<vmem>>, %arg4: memref<1x1x128xf32, #tpu.memory_space<vmem>>, %arg5: memref<1x96x128xf32, #tpu.memory_space<vmem>>) attributes {dimension_semantics = [#tpu.dimension_semantics<parallel>, #tpu.dimension_semantics<parallel>], iteration_bounds = array<i64: 2, 1>, scalar_prefetch = 0 : i64, scratch_operands = 0 : i64, tpu.core_type = #tpu.core_type<tc>, window_params = [{transform_indices = @transform_0, window_bounds = array<i64: 1, 96, 128>}, {transform_indices = @transform_1, window_bounds = array<i64: 1, 128, 128>}, {transform_indices = @transform_2, window_bounds = array<i64: 1, 1, 128>}, {transform_indices = @transform_3, window_bounds = array<i64: 1, 96, 128>}]} {
    %c0 = arith.constant 0 : index
    %c0_0 = arith.constant 0 : index
    %c0_1 = arith.constant 0 : index
    %0 = vector.load %arg2[%c0, %c0_0, %c0_1] : memref<1x96x128xbf16, #tpu.memory_space<vmem>>, vector<1x96x128xbf16>
    %1 = vector.shape_cast %0 : vector<1x96x128xbf16> to vector<96x128xbf16>
    %c0_2 = arith.constant 0 : index
    %c0_3 = arith.constant 0 : index
    %c0_4 = arith.constant 0 : index
    %2 = vector.load %arg3[%c0_2, %c0_3, %c0_4] : memref<1x128x128xbf16, #tpu.memory_space<vmem>>, vector<1x128x128xbf16>
    %3 = vector.shape_cast %2 : vector<1x128x128xbf16> to vector<128x128xbf16>
    %cst = arith.constant dense<0.000000e+00> : vector<96x128xf32>
    %4 = tpu.matmul %1, %3, %cst {dimension_numbers = #tpu.dot_dimension_numbers<[1], [0], [0], [1], [0, 0, 1, 1], [], []>} : vector<96x128xbf16>, vector<128x128xbf16>, vector<96x128xf32> -> vector<96x128xf32>
    %c0_5 = arith.constant 0 : index
    %c0_6 = arith.constant 0 : index
    %c0_7 = arith.constant 0 : index
    %5 = vector.load %arg4[%c0_5, %c0_6, %c0_7] : memref<1x1x128xf32, #tpu.memory_space<vmem>>, vector<1x1x128xf32>
    %6 = vector.shape_cast %5 : vector<1x1x128xf32> to vector<1x128xf32>
    %7 = vector.broadcast %6 : vector<1x128xf32> to vector<96x128xf32>
    %8 = arith.addf %4, %7 : vector<96x128xf32>
    %cst_8 = arith.constant 0.000000e+00 : f32
    %9 = vector.broadcast %cst_8 : f32 to vector<96x128xf32>
    %10 = arith.maximumf %8, %9 : vector<96x128xf32>
    %11 = vector.shape_cast %10 : vector<96x128xf32> to vector<1x96x128xf32>
    %c0_9 = arith.constant 0 : index
    %c0_10 = arith.constant 0 : index
    %c0_11 = arith.constant 0 : index
    %12 = vector.load %arg5[%c0_9, %c0_10, %c0_11] : memref<1x96x128xf32, #tpu.memory_space<vmem>>, vector<1x96x128xf32>
    tpu.vector_store %arg5[%c0_9, %c0_10, %c0_11], %11 {strides = array<i32>} : memref<1x96x128xf32, #tpu.memory_space<vmem>>, vector<1x96x128xf32>,
    return
  }
  func.func @transform_0(%arg0: i32, %arg1: i32) -> (i32, i32, i32) {
    %c0_i32 = arith.constant 0 : i32
    %c0_i32_0 = arith.constant 0 : i32
    return %arg0, %arg1, %c0_i32 : i32, i32, i32
  }
  func.func @transform_1(%arg0: i32, %arg1: i32) -> (i32, i32, i32) {
    %c0_i32 = arith.constant 0 : i32
    %c0_i32_0 = arith.constant 0 : i32
    %c0_i32_1 = arith.constant 0 : i32
    return %arg0, %c0_i32, %c0_i32_0 : i32, i32, i32
  }
  func.func @transform_2(%arg0: i32, %arg1: i32) -> (i32, i32, i32) {
    %c0_i32 = arith.constant 0 : i32
    %c0_i32_0 = arith.constant 0 : i32
    %c0_i32_1 = arith.constant 0 : i32
    return %arg0, %c0_i32, %c0_i32_0 : i32, i32, i32
  }
  func.func @transform_3(%arg0: i32, %arg1: i32) -> (i32, i32, i32) {
    %c0_i32 = arith.constant 0 : i32
    %c0_i32_0 = arith.constant 0 : i32
    return %arg0, %arg1, %c0_i32 : i32, i32, i32
  }
}

module attributes {stable_mosaic.version = 11 : i64} {
  func.func @_mm_kernel(%arg0: i32, %arg1: i32, %arg2: memref<1x24x384xbf16, #tpu.memory_space<vmem>>, %arg3: memref<1x384x128xbf16, #tpu.memory_space<vmem>>, %arg4: memref<1x1x128xf32, #tpu.memory_space<vmem>>, %arg5: memref<1x24x128xf32, #tpu.memory_space<vmem>>) attributes {dimension_semantics = [#tpu.dimension_semantics<parallel>, #tpu.dimension_semantics<parallel>], iteration_bounds = array<i64: 2, 1>, scalar_prefetch = 0 : i64, scratch_operands = 0 : i64, tpu.core_type = #tpu.core_type<tc>, window_params = [{transform_indices = @transform_0, window_bounds = array<i64: 1, 24, 384>}, {transform_indices = @transform_1, window_bounds = array<i64: 1, 384, 128>}, {transform_indices = @transform_2, window_bounds = array<i64: 1, 1, 128>}, {transform_indices = @transform_3, window_bounds = array<i64: 1, 24, 128>}]} {
    %c0 = arith.constant 0 : index
    %c0_0 = arith.constant 0 : index
    %c0_1 = arith.constant 0 : index
    %0 = vector.load %arg2[%c0, %c0_0, %c0_1] : memref<1x24x384xbf16, #tpu.memory_space<vmem>>, vector<1x24x384xbf16>
    %1 = vector.shape_cast %0 : vector<1x24x384xbf16> to vector<24x384xbf16>
    %c0_2 = arith.constant 0 : index
    %c0_3 = arith.constant 0 : index
    %c0_4 = arith.constant 0 : index
    %2 = vector.load %arg3[%c0_2, %c0_3, %c0_4] : memref<1x384x128xbf16, #tpu.memory_space<vmem>>, vector<1x384x128xbf16>
    %3 = vector.shape_cast %2 : vector<1x384x128xbf16> to vector<384x128xbf16>
    %cst = arith.constant dense<0.000000e+00> : vector<24x128xf32>
    %4 = tpu.matmul %1, %3, %cst {dimension_numbers = #tpu.dot_dimension_numbers<[1], [0], [0], [1], [0, 0, 1, 1], [], []>} : vector<24x384xbf16>, vector<384x128xbf16>, vector<24x128xf32> -> vector<24x128xf32>
    %c0_5 = arith.constant 0 : index
    %c0_6 = arith.constant 0 : index
    %c0_7 = arith.constant 0 : index
    %5 = vector.load %arg4[%c0_5, %c0_6, %c0_7] : memref<1x1x128xf32, #tpu.memory_space<vmem>>, vector<1x1x128xf32>
    %6 = vector.shape_cast %5 : vector<1x1x128xf32> to vector<1x128xf32>
    %7 = vector.broadcast %6 : vector<1x128xf32> to vector<24x128xf32>
    %8 = arith.addf %4, %7 : vector<24x128xf32>
    %cst_8 = arith.constant 0.000000e+00 : f32
    %9 = vector.broadcast %cst_8 : f32 to vector<24x128xf32>
    %10 = arith.maximumf %8, %9 : vector<24x128xf32>
    %11 = vector.shape_cast %10 : vector<24x128xf32> to vector<1x24x128xf32>
    %c0_9 = arith.constant 0 : index
    %c0_10 = arith.constant 0 : index
    %c0_11 = arith.constant 0 : index
    %12 = vector.load %arg5[%c0_9, %c0_10, %c0_11] : memref<1x24x128xf32, #tpu.memory_space<vmem>>, vector<1x24x128xf32>
    tpu.vector_store %arg5[%c0_9, %c0_10, %c0_11], %11 {strides = array<i32>} : memref<1x24x128xf32, #tpu.memory_space<vmem>>, vector<1x24x128xf32>,
    return
  }
  func.func @transform_0(%arg0: i32, %arg1: i32) -> (i32, i32, i32) {
    %c0_i32 = arith.constant 0 : i32
    %c0_i32_0 = arith.constant 0 : i32
    return %arg0, %arg1, %c0_i32 : i32, i32, i32
  }
  func.func @transform_1(%arg0: i32, %arg1: i32) -> (i32, i32, i32) {
    %c0_i32 = arith.constant 0 : i32
    %c0_i32_0 = arith.constant 0 : i32
    %c0_i32_1 = arith.constant 0 : i32
    return %arg0, %c0_i32, %c0_i32_0 : i32, i32, i32
  }
  func.func @transform_2(%arg0: i32, %arg1: i32) -> (i32, i32, i32) {
    %c0_i32 = arith.constant 0 : i32
    %c0_i32_0 = arith.constant 0 : i32
    %c0_i32_1 = arith.constant 0 : i32
    return %arg0, %c0_i32, %c0_i32_0 : i32, i32, i32
  }
  func.func @transform_3(%arg0: i32, %arg1: i32) -> (i32, i32, i32) {
    %c0_i32 = arith.constant 0 : i32
    %c0_i32_0 = arith.constant 0 : i32
    return %arg0, %arg1, %c0_i32 : i32, i32, i32
  }
}

module attributes {stable_mosaic.version = 11 : i64} {
  func.func @_mm_kernel(%arg0: i32, %arg1: i32, %arg2: memref<1x24x128xbf16, #tpu.memory_space<vmem>>, %arg3: memref<1x128x128xbf16, #tpu.memory_space<vmem>>, %arg4: memref<1x1x128xf32, #tpu.memory_space<vmem>>, %arg5: memref<1x24x128xf32, #tpu.memory_space<vmem>>) attributes {dimension_semantics = [#tpu.dimension_semantics<parallel>, #tpu.dimension_semantics<parallel>], iteration_bounds = array<i64: 2, 1>, scalar_prefetch = 0 : i64, scratch_operands = 0 : i64, tpu.core_type = #tpu.core_type<tc>, window_params = [{transform_indices = @transform_0, window_bounds = array<i64: 1, 24, 128>}, {transform_indices = @transform_1, window_bounds = array<i64: 1, 128, 128>}, {transform_indices = @transform_2, window_bounds = array<i64: 1, 1, 128>}, {transform_indices = @transform_3, window_bounds = array<i64: 1, 24, 128>}]} {
    %c0 = arith.constant 0 : index
    %c0_0 = arith.constant 0 : index
    %c0_1 = arith.constant 0 : index
    %0 = vector.load %arg2[%c0, %c0_0, %c0_1] : memref<1x24x128xbf16, #tpu.memory_space<vmem>>, vector<1x24x128xbf16>
    %1 = vector.shape_cast %0 : vector<1x24x128xbf16> to vector<24x128xbf16>
    %c0_2 = arith.constant 0 : index
    %c0_3 = arith.constant 0 : index
    %c0_4 = arith.constant 0 : index
    %2 = vector.load %arg3[%c0_2, %c0_3, %c0_4] : memref<1x128x128xbf16, #tpu.memory_space<vmem>>, vector<1x128x128xbf16>
    %3 = vector.shape_cast %2 : vector<1x128x128xbf16> to vector<128x128xbf16>
    %cst = arith.constant dense<0.000000e+00> : vector<24x128xf32>
    %4 = tpu.matmul %1, %3, %cst {dimension_numbers = #tpu.dot_dimension_numbers<[1], [0], [0], [1], [0, 0, 1, 1], [], []>} : vector<24x128xbf16>, vector<128x128xbf16>, vector<24x128xf32> -> vector<24x128xf32>
    %c0_5 = arith.constant 0 : index
    %c0_6 = arith.constant 0 : index
    %c0_7 = arith.constant 0 : index
    %5 = vector.load %arg4[%c0_5, %c0_6, %c0_7] : memref<1x1x128xf32, #tpu.memory_space<vmem>>, vector<1x1x128xf32>
    %6 = vector.shape_cast %5 : vector<1x1x128xf32> to vector<1x128xf32>
    %7 = vector.broadcast %6 : vector<1x128xf32> to vector<24x128xf32>
    %8 = arith.addf %4, %7 : vector<24x128xf32>
    %cst_8 = arith.constant 0.000000e+00 : f32
    %9 = vector.broadcast %cst_8 : f32 to vector<24x128xf32>
    %10 = arith.maximumf %8, %9 : vector<24x128xf32>
    %11 = vector.shape_cast %10 : vector<24x128xf32> to vector<1x24x128xf32>
    %c0_9 = arith.constant 0 : index
    %c0_10 = arith.constant 0 : index
    %c0_11 = arith.constant 0 : index
    %12 = vector.load %arg5[%c0_9, %c0_10, %c0_11] : memref<1x24x128xf32, #tpu.memory_space<vmem>>, vector<1x24x128xf32>
    tpu.vector_store %arg5[%c0_9, %c0_10, %c0_11], %11 {strides = array<i32>} : memref<1x24x128xf32, #tpu.memory_space<vmem>>, vector<1x24x128xf32>,
    return
  }
  func.func @transform_0(%arg0: i32, %arg1: i32) -> (i32, i32, i32) {
    %c0_i32 = arith.constant 0 : i32
    %c0_i32_0 = arith.constant 0 : i32
    return %arg0, %arg1, %c0_i32 : i32, i32, i32
  }
  func.func @transform_1(%arg0: i32, %arg1: i32) -> (i32, i32, i32) {
    %c0_i32 = arith.constant 0 : i32
    %c0_i32_0 = arith.constant 0 : i32
    %c0_i32_1 = arith.constant 0 : i32
    return %arg0, %c0_i32, %c0_i32_0 : i32, i32, i32
  }
  func.func @transform_2(%arg0: i32, %arg1: i32) -> (i32, i32, i32) {
    %c0_i32 = arith.constant 0 : i32
    %c0_i32_0 = arith.constant 0 : i32
    %c0_i32_1 = arith.constant 0 : i32
    return %arg0, %c0_i32, %c0_i32_0 : i32, i32, i32
  }
  func.func @transform_3(%arg0: i32, %arg1: i32) -> (i32, i32, i32) {
    %c0_i32 = arith.constant 0 : i32
    %c0_i32_0 = arith.constant 0 : i32
    return %arg0, %arg1, %c0_i32 : i32, i32, i32
  }
}

module attributes {stable_mosaic.version = 11 : i64} {
  func.func @_mm_kernel(%arg0: i32, %arg1: i32, %arg2: memref<1x192x128xbf16, #tpu.memory_space<vmem>>, %arg3: memref<1x128x128xbf16, #tpu.memory_space<vmem>>, %arg4: memref<1x1x128xf32, #tpu.memory_space<vmem>>, %arg5: memref<1x192x128xf32, #tpu.memory_space<vmem>>) attributes {dimension_semantics = [#tpu.dimension_semantics<parallel>, #tpu.dimension_semantics<parallel>], iteration_bounds = array<i64: 1, 2>, scalar_prefetch = 0 : i64, scratch_operands = 0 : i64, tpu.core_type = #tpu.core_type<tc>, window_params = [{transform_indices = @transform_0, window_bounds = array<i64: 1, 192, 128>}, {transform_indices = @transform_1, window_bounds = array<i64: 1, 128, 128>}, {transform_indices = @transform_2, window_bounds = array<i64: 1, 1, 128>}, {transform_indices = @transform_3, window_bounds = array<i64: 1, 192, 128>}]} {
    %c0 = arith.constant 0 : index
    %c0_0 = arith.constant 0 : index
    %c0_1 = arith.constant 0 : index
    %0 = vector.load %arg2[%c0, %c0_0, %c0_1] : memref<1x192x128xbf16, #tpu.memory_space<vmem>>, vector<1x192x128xbf16>
    %1 = vector.shape_cast %0 : vector<1x192x128xbf16> to vector<192x128xbf16>
    %c0_2 = arith.constant 0 : index
    %c0_3 = arith.constant 0 : index
    %c0_4 = arith.constant 0 : index
    %2 = vector.load %arg3[%c0_2, %c0_3, %c0_4] : memref<1x128x128xbf16, #tpu.memory_space<vmem>>, vector<1x128x128xbf16>
    %3 = vector.shape_cast %2 : vector<1x128x128xbf16> to vector<128x128xbf16>
    %cst = arith.constant dense<0.000000e+00> : vector<192x128xf32>
    %4 = tpu.matmul %1, %3, %cst {dimension_numbers = #tpu.dot_dimension_numbers<[1], [0], [0], [1], [0, 0, 1, 1], [], []>} : vector<192x128xbf16>, vector<128x128xbf16>, vector<192x128xf32> -> vector<192x128xf32>
    %c0_5 = arith.constant 0 : index
    %c0_6 = arith.constant 0 : index
    %c0_7 = arith.constant 0 : index
    %5 = vector.load %arg4[%c0_5, %c0_6, %c0_7] : memref<1x1x128xf32, #tpu.memory_space<vmem>>, vector<1x1x128xf32>
    %6 = vector.shape_cast %5 : vector<1x1x128xf32> to vector<1x128xf32>
    %7 = vector.broadcast %6 : vector<1x128xf32> to vector<192x128xf32>
    %8 = arith.addf %4, %7 : vector<192x128xf32>
    %cst_8 = arith.constant 0.000000e+00 : f32
    %9 = vector.broadcast %cst_8 : f32 to vector<192x128xf32>
    %10 = arith.maximumf %8, %9 : vector<192x128xf32>
    %11 = vector.shape_cast %10 : vector<192x128xf32> to vector<1x192x128xf32>
    %c0_9 = arith.constant 0 : index
    %c0_10 = arith.constant 0 : index
    %c0_11 = arith.constant 0 : index
    %12 = vector.load %arg5[%c0_9, %c0_10, %c0_11] : memref<1x192x128xf32, #tpu.memory_space<vmem>>, vector<1x192x128xf32>
    tpu.vector_store %arg5[%c0_9, %c0_10, %c0_11], %11 {strides = array<i32>} : memref<1x192x128xf32, #tpu.memory_space<vmem>>, vector<1x192x128xf32>,
    return
  }
  func.func @transform_0(%arg0: i32, %arg1: i32) -> (i32, i32, i32) {
    %c0_i32 = arith.constant 0 : i32
    %c0_i32_0 = arith.constant 0 : i32
    return %arg0, %arg1, %c0_i32 : i32, i32, i32
  }
  func.func @transform_1(%arg0: i32, %arg1: i32) -> (i32, i32, i32) {
    %c0_i32 = arith.constant 0 : i32
    %c0_i32_0 = arith.constant 0 : i32
    %c0_i32_1 = arith.constant 0 : i32
    return %arg0, %c0_i32, %c0_i32_0 : i32, i32, i32
  }
  func.func @transform_2(%arg0: i32, %arg1: i32) -> (i32, i32, i32) {
    %c0_i32 = arith.constant 0 : i32
    %c0_i32_0 = arith.constant 0 : i32
    %c0_i32_1 = arith.constant 0 : i32
    return %arg0, %c0_i32, %c0_i32_0 : i32, i32, i32
  }
  func.func @transform_3(%arg0: i32, %arg1: i32) -> (i32, i32, i32) {
    %c0_i32 = arith.constant 0 : i32
    %c0_i32_0 = arith.constant 0 : i32
    return %arg0, %arg1, %c0_i32 : i32, i32, i32
  }
}

module attributes {stable_mosaic.version = 11 : i64} {
  func.func @_mm_kernel(%arg0: i32, %arg1: i32, %arg2: memref<1x48x512xbf16, #tpu.memory_space<vmem>>, %arg3: memref<1x512x128xbf16, #tpu.memory_space<vmem>>, %arg4: memref<1x1x128xf32, #tpu.memory_space<vmem>>, %arg5: memref<1x48x128xf32, #tpu.memory_space<vmem>>) attributes {dimension_semantics = [#tpu.dimension_semantics<parallel>, #tpu.dimension_semantics<parallel>], iteration_bounds = array<i64: 1, 1>, scalar_prefetch = 0 : i64, scratch_operands = 0 : i64, tpu.core_type = #tpu.core_type<tc>, window_params = [{transform_indices = @transform_0, window_bounds = array<i64: 1, 48, 512>}, {transform_indices = @transform_1, window_bounds = array<i64: 1, 512, 128>}, {transform_indices = @transform_2, window_bounds = array<i64: 1, 1, 128>}, {transform_indices = @transform_3, window_bounds = array<i64: 1, 48, 128>}]} {
    %c0 = arith.constant 0 : index
    %c0_0 = arith.constant 0 : index
    %c0_1 = arith.constant 0 : index
    %0 = vector.load %arg2[%c0, %c0_0, %c0_1] : memref<1x48x512xbf16, #tpu.memory_space<vmem>>, vector<1x48x512xbf16>
    %1 = vector.shape_cast %0 : vector<1x48x512xbf16> to vector<48x512xbf16>
    %c0_2 = arith.constant 0 : index
    %c0_3 = arith.constant 0 : index
    %c0_4 = arith.constant 0 : index
    %2 = vector.load %arg3[%c0_2, %c0_3, %c0_4] : memref<1x512x128xbf16, #tpu.memory_space<vmem>>, vector<1x512x128xbf16>
    %3 = vector.shape_cast %2 : vector<1x512x128xbf16> to vector<512x128xbf16>
    %cst = arith.constant dense<0.000000e+00> : vector<48x128xf32>
    %4 = tpu.matmul %1, %3, %cst {dimension_numbers = #tpu.dot_dimension_numbers<[1], [0], [0], [1], [0, 0, 1, 1], [], []>} : vector<48x512xbf16>, vector<512x128xbf16>, vector<48x128xf32> -> vector<48x128xf32>
    %c0_5 = arith.constant 0 : index
    %c0_6 = arith.constant 0 : index
    %c0_7 = arith.constant 0 : index
    %5 = vector.load %arg4[%c0_5, %c0_6, %c0_7] : memref<1x1x128xf32, #tpu.memory_space<vmem>>, vector<1x1x128xf32>
    %6 = vector.shape_cast %5 : vector<1x1x128xf32> to vector<1x128xf32>
    %7 = vector.broadcast %6 : vector<1x128xf32> to vector<48x128xf32>
    %8 = arith.addf %4, %7 : vector<48x128xf32>
    %cst_8 = arith.constant 0.000000e+00 : f32
    %9 = vector.broadcast %cst_8 : f32 to vector<48x128xf32>
    %10 = arith.maximumf %8, %9 : vector<48x128xf32>
    %11 = vector.shape_cast %10 : vector<48x128xf32> to vector<1x48x128xf32>
    %c0_9 = arith.constant 0 : index
    %c0_10 = arith.constant 0 : index
    %c0_11 = arith.constant 0 : index
    %12 = vector.load %arg5[%c0_9, %c0_10, %c0_11] : memref<1x48x128xf32, #tpu.memory_space<vmem>>, vector<1x48x128xf32>
    tpu.vector_store %arg5[%c0_9, %c0_10, %c0_11], %11 {strides = array<i32>} : memref<1x48x128xf32, #tpu.memory_space<vmem>>, vector<1x48x128xf32>,
    return
  }
  func.func @transform_0(%arg0: i32, %arg1: i32) -> (i32, i32, i32) {
    %c0_i32 = arith.constant 0 : i32
    %c0_i32_0 = arith.constant 0 : i32
    return %arg0, %arg1, %c0_i32 : i32, i32, i32
  }
  func.func @transform_1(%arg0: i32, %arg1: i32) -> (i32, i32, i32) {
    %c0_i32 = arith.constant 0 : i32
    %c0_i32_0 = arith.constant 0 : i32
    %c0_i32_1 = arith.constant 0 : i32
    return %arg0, %c0_i32, %c0_i32_0 : i32, i32, i32
  }
  func.func @transform_2(%arg0: i32, %arg1: i32) -> (i32, i32, i32) {
    %c0_i32 = arith.constant 0 : i32
    %c0_i32_0 = arith.constant 0 : i32
    %c0_i32_1 = arith.constant 0 : i32
    return %arg0, %c0_i32, %c0_i32_0 : i32, i32, i32
  }
  func.func @transform_3(%arg0: i32, %arg1: i32) -> (i32, i32, i32) {
    %c0_i32 = arith.constant 0 : i32
    %c0_i32_0 = arith.constant 0 : i32
    return %arg0, %arg1, %c0_i32 : i32, i32, i32
  }
}

module attributes {stable_mosaic.version = 11 : i64} {
  func.func @_mm_kernel(%arg0: i32, %arg1: i32, %arg2: memref<1x8x512xbf16, #tpu.memory_space<vmem>>, %arg3: memref<1x512x256xbf16, #tpu.memory_space<vmem>>, %arg4: memref<1x1x256xf32, #tpu.memory_space<vmem>>, %arg5: memref<1x8x256xf32, #tpu.memory_space<vmem>>) attributes {dimension_semantics = [#tpu.dimension_semantics<parallel>, #tpu.dimension_semantics<parallel>], iteration_bounds = array<i64: 1, 1>, scalar_prefetch = 0 : i64, scratch_operands = 0 : i64, tpu.core_type = #tpu.core_type<tc>, window_params = [{transform_indices = @transform_0, window_bounds = array<i64: 1, 8, 512>}, {transform_indices = @transform_1, window_bounds = array<i64: 1, 512, 256>}, {transform_indices = @transform_2, window_bounds = array<i64: 1, 1, 256>}, {transform_indices = @transform_3, window_bounds = array<i64: 1, 8, 256>}]} {
    %c0 = arith.constant 0 : index
    %c0_0 = arith.constant 0 : index
    %c0_1 = arith.constant 0 : index
    %0 = vector.load %arg2[%c0, %c0_0, %c0_1] : memref<1x8x512xbf16, #tpu.memory_space<vmem>>, vector<1x8x512xbf16>
    %1 = vector.shape_cast %0 : vector<1x8x512xbf16> to vector<8x512xbf16>
    %c0_2 = arith.constant 0 : index
    %c0_3 = arith.constant 0 : index
    %c0_4 = arith.constant 0 : index
    %2 = vector.load %arg3[%c0_2, %c0_3, %c0_4] : memref<1x512x256xbf16, #tpu.memory_space<vmem>>, vector<1x512x256xbf16>
    %3 = vector.shape_cast %2 : vector<1x512x256xbf16> to vector<512x256xbf16>
    %cst = arith.constant dense<0.000000e+00> : vector<8x256xf32>
    %4 = tpu.matmul %1, %3, %cst {dimension_numbers = #tpu.dot_dimension_numbers<[1], [0], [0], [1], [0, 0, 1, 1], [], []>} : vector<8x512xbf16>, vector<512x256xbf16>, vector<8x256xf32> -> vector<8x256xf32>
    %c0_5 = arith.constant 0 : index
    %c0_6 = arith.constant 0 : index
    %c0_7 = arith.constant 0 : index
    %5 = vector.load %arg4[%c0_5, %c0_6, %c0_7] : memref<1x1x256xf32, #tpu.memory_space<vmem>>, vector<1x1x256xf32>
    %6 = vector.shape_cast %5 : vector<1x1x256xf32> to vector<1x256xf32>
    %7 = vector.broadcast %6 : vector<1x256xf32> to vector<8x256xf32>
    %8 = arith.addf %4, %7 : vector<8x256xf32>
    %cst_8 = arith.constant 0.000000e+00 : f32
    %9 = vector.broadcast %cst_8 : f32 to vector<8x256xf32>
    %10 = arith.maximumf %8, %9 : vector<8x256xf32>
    %11 = vector.shape_cast %10 : vector<8x256xf32> to vector<1x8x256xf32>
    %c0_9 = arith.constant 0 : index
    %c0_10 = arith.constant 0 : index
    %c0_11 = arith.constant 0 : index
    %12 = vector.load %arg5[%c0_9, %c0_10, %c0_11] : memref<1x8x256xf32, #tpu.memory_space<vmem>>, vector<1x8x256xf32>
    tpu.vector_store %arg5[%c0_9, %c0_10, %c0_11], %11 {strides = array<i32>} : memref<1x8x256xf32, #tpu.memory_space<vmem>>, vector<1x8x256xf32>,
    return
  }
  func.func @transform_0(%arg0: i32, %arg1: i32) -> (i32, i32, i32) {
    %c0_i32 = arith.constant 0 : i32
    %c0_i32_0 = arith.constant 0 : i32
    return %arg0, %arg1, %c0_i32 : i32, i32, i32
  }
  func.func @transform_1(%arg0: i32, %arg1: i32) -> (i32, i32, i32) {
    %c0_i32 = arith.constant 0 : i32
    %c0_i32_0 = arith.constant 0 : i32
    %c0_i32_1 = arith.constant 0 : i32
    return %arg0, %c0_i32, %c0_i32_0 : i32, i32, i32
  }
  func.func @transform_2(%arg0: i32, %arg1: i32) -> (i32, i32, i32) {
    %c0_i32 = arith.constant 0 : i32
    %c0_i32_0 = arith.constant 0 : i32
    %c0_i32_1 = arith.constant 0 : i32
    return %arg0, %c0_i32, %c0_i32_0 : i32, i32, i32
  }
  func.func @transform_3(%arg0: i32, %arg1: i32) -> (i32, i32, i32) {
    %c0_i32 = arith.constant 0 : i32
    %c0_i32_0 = arith.constant 0 : i32
    return %arg0, %arg1, %c0_i32 : i32, i32, i32
  }
}

module attributes {stable_mosaic.version = 11 : i64} {
  func.func @_mm_kernel(%arg0: i32, %arg1: i32, %arg2: memref<1x16x256xbf16, #tpu.memory_space<vmem>>, %arg3: memref<1x256x384xbf16, #tpu.memory_space<vmem>>, %arg4: memref<1x1x384xf32, #tpu.memory_space<vmem>>, %arg5: memref<1x16x384xf32, #tpu.memory_space<vmem>>) attributes {dimension_semantics = [#tpu.dimension_semantics<parallel>, #tpu.dimension_semantics<parallel>], iteration_bounds = array<i64: 1, 1>, scalar_prefetch = 0 : i64, scratch_operands = 0 : i64, tpu.core_type = #tpu.core_type<tc>, window_params = [{transform_indices = @transform_0, window_bounds = array<i64: 1, 16, 256>}, {transform_indices = @transform_1, window_bounds = array<i64: 1, 256, 384>}, {transform_indices = @transform_2, window_bounds = array<i64: 1, 1, 384>}, {transform_indices = @transform_3, window_bounds = array<i64: 1, 16, 384>}]} {
    %c0 = arith.constant 0 : index
    %c0_0 = arith.constant 0 : index
    %c0_1 = arith.constant 0 : index
    %0 = vector.load %arg2[%c0, %c0_0, %c0_1] : memref<1x16x256xbf16, #tpu.memory_space<vmem>>, vector<1x16x256xbf16>
    %1 = vector.shape_cast %0 : vector<1x16x256xbf16> to vector<16x256xbf16>
    %c0_2 = arith.constant 0 : index
    %c0_3 = arith.constant 0 : index
    %c0_4 = arith.constant 0 : index
    %2 = vector.load %arg3[%c0_2, %c0_3, %c0_4] : memref<1x256x384xbf16, #tpu.memory_space<vmem>>, vector<1x256x384xbf16>
    %3 = vector.shape_cast %2 : vector<1x256x384xbf16> to vector<256x384xbf16>
    %cst = arith.constant dense<0.000000e+00> : vector<16x384xf32>
    %4 = tpu.matmul %1, %3, %cst {dimension_numbers = #tpu.dot_dimension_numbers<[1], [0], [0], [1], [0, 0, 1, 1], [], []>} : vector<16x256xbf16>, vector<256x384xbf16>, vector<16x384xf32> -> vector<16x384xf32>
    %c0_5 = arith.constant 0 : index
    %c0_6 = arith.constant 0 : index
    %c0_7 = arith.constant 0 : index
    %5 = vector.load %arg4[%c0_5, %c0_6, %c0_7] : memref<1x1x384xf32, #tpu.memory_space<vmem>>, vector<1x1x384xf32>
    %6 = vector.shape_cast %5 : vector<1x1x384xf32> to vector<1x384xf32>
    %7 = vector.broadcast %6 : vector<1x384xf32> to vector<16x384xf32>
    %8 = arith.addf %4, %7 : vector<16x384xf32>
    %9 = vector.shape_cast %8 : vector<16x384xf32> to vector<1x16x384xf32>
    %c0_8 = arith.constant 0 : index
    %c0_9 = arith.constant 0 : index
    %c0_10 = arith.constant 0 : index
    %10 = vector.load %arg5[%c0_8, %c0_9, %c0_10] : memref<1x16x384xf32, #tpu.memory_space<vmem>>, vector<1x16x384xf32>
    tpu.vector_store %arg5[%c0_8, %c0_9, %c0_10], %9 {strides = array<i32>} : memref<1x16x384xf32, #tpu.memory_space<vmem>>, vector<1x16x384xf32>,
    return
  }
  func.func @transform_0(%arg0: i32, %arg1: i32) -> (i32, i32, i32) {
    %c0_i32 = arith.constant 0 : i32
    %c0_i32_0 = arith.constant 0 : i32
    return %arg0, %arg1, %c0_i32 : i32, i32, i32
  }
  func.func @transform_1(%arg0: i32, %arg1: i32) -> (i32, i32, i32) {
    %c0_i32 = arith.constant 0 : i32
    %c0_i32_0 = arith.constant 0 : i32
    %c0_i32_1 = arith.constant 0 : i32
    return %arg0, %c0_i32, %c0_i32_0 : i32, i32, i32
  }
  func.func @transform_2(%arg0: i32, %arg1: i32) -> (i32, i32, i32) {
    %c0_i32 = arith.constant 0 : i32
    %c0_i32_0 = arith.constant 0 : i32
    %c0_i32_1 = arith.constant 0 : i32
    return %arg0, %c0_i32, %c0_i32_0 : i32, i32, i32
  }
  func.func @transform_3(%arg0: i32, %arg1: i32) -> (i32, i32, i32) {
    %c0_i32 = arith.constant 0 : i32
    %c0_i32_0 = arith.constant 0 : i32
    return %arg0, %arg1, %c0_i32 : i32, i32, i32
  }
}

module attributes {stable_mosaic.version = 11 : i64} {
  func.func @_gru2_kernel(%arg0: i32, %arg1: memref<1x8x384xf32, #tpu.memory_space<vmem>>, %arg2: memref<128x384xbf16, #tpu.memory_space<vmem>>, %arg3: memref<1x384xf32, #tpu.memory_space<vmem>>, %arg4: memref<128x384xbf16, #tpu.memory_space<vmem>>, %arg5: memref<1x384xf32, #tpu.memory_space<vmem>>, %arg6: memref<128x384xbf16, #tpu.memory_space<vmem>>, %arg7: memref<1x384xf32, #tpu.memory_space<vmem>>, %arg8: memref<1x1x128xf32, #tpu.memory_space<vmem>>, %arg9: memref<8x128xf32, #tpu.memory_space<vmem>>, %arg10: memref<8x128xf32, #tpu.memory_space<vmem>>) attributes {dimension_semantics = [#tpu.dimension_semantics<arbitrary>], iteration_bounds = array<i64: 2>, scalar_prefetch = 0 : i64, scratch_operands = 2 : i64, tpu.core_type = #tpu.core_type<tc>, window_params = [{transform_indices = @transform_0, window_bounds = array<i64: 1, 8, 384>}, {pipeline_mode = #tpu.pipeline_mode<synchronous>, transform_indices = @transform_1, window_bounds = array<i64: 128, 384>}, {pipeline_mode = #tpu.pipeline_mode<synchronous>, transform_indices = @transform_2, window_bounds = array<i64: 1, 384>}, {pipeline_mode = #tpu.pipeline_mode<synchronous>, transform_indices = @transform_3, window_bounds = array<i64: 128, 384>}, {pipeline_mode = #tpu.pipeline_mode<synchronous>, transform_indices = @transform_4, window_bounds = array<i64: 1, 384>}, {pipeline_mode = #tpu.pipeline_mode<synchronous>, transform_indices = @transform_5, window_bounds = array<i64: 128, 384>}, {pipeline_mode = #tpu.pipeline_mode<synchronous>, transform_indices = @transform_6, window_bounds = array<i64: 1, 384>}, {transform_indices = @transform_7, window_bounds = array<i64: 1, 1, 128>}]} {
    %c0_i32 = arith.constant 0 : i32
    %0 = arith.cmpi eq, %arg0, %c0_i32 : i32
    %1 = arith.extui %0 : i1 to i32
    %c0_i32_0 = arith.constant 0 : i32
    %2 = arith.cmpi ne, %1, %c0_i32_0 : i32
    scf.if %2 {
      %cst_36 = arith.constant 0.000000e+00 : f32
      %86 = vector.broadcast %cst_36 : f32 to vector<8x128xf32>
      %c0_37 = arith.constant 0 : index
      %c0_38 = arith.constant 0 : index
      %87 = vector.load %arg9[%c0_37, %c0_38] : memref<8x128xf32, #tpu.memory_space<vmem>>, vector<8x128xf32>
      tpu.vector_store %arg9[%c0_37, %c0_38], %86 {strides = array<i32>} : memref<8x128xf32, #tpu.memory_space<vmem>>, vector<8x128xf32>,
      %cst_39 = arith.constant 0.000000e+00 : f32
      %88 = vector.broadcast %cst_39 : f32 to vector<8x128xf32>
      %c0_40 = arith.constant 0 : index
      %c0_41 = arith.constant 0 : index
      %89 = vector.load %arg10[%c0_40, %c0_41] : memref<8x128xf32, #tpu.memory_space<vmem>>, vector<8x128xf32>
      tpu.vector_store %arg10[%c0_40, %c0_41], %88 {strides = array<i32>} : memref<8x128xf32, #tpu.memory_space<vmem>>, vector<8x128xf32>,
    } else {
    }
    %c0 = arith.constant 0 : index
    %c0_1 = arith.constant 0 : index
    %3 = vector.load %arg9[%c0, %c0_1] : memref<8x128xf32, #tpu.memory_space<vmem>>, vector<8x128xf32>
    %c0_2 = arith.constant 0 : index
    %c0_3 = arith.constant 0 : index
    %c0_4 = arith.constant 0 : index
    %4 = vector.load %arg1[%c0_2, %c0_3, %c0_4] : memref<1x8x384xf32, #tpu.memory_space<vmem>>, vector<1x8x384xf32>
    %5 = vector.shape_cast %4 : vector<1x8x384xf32> to vector<8x384xf32>
    %6 = arith.truncf %3 : vector<8x128xf32> to vector<8x128xbf16>
    %c0_5 = arith.constant 0 : index
    %c0_6 = arith.constant 0 : index
    %7 = vector.load %arg2[%c0_5, %c0_6] : memref<128x384xbf16, #tpu.memory_space<vmem>>, vector<128x384xbf16>
    %cst = arith.constant dense<0.000000e+00> : vector<8x384xf32>
    %8 = tpu.matmul %6, %7, %cst {dimension_numbers = #tpu.dot_dimension_numbers<[1], [0], [0], [1], [0, 0, 1, 1], [], []>} : vector<8x128xbf16>, vector<128x384xbf16>, vector<8x384xf32> -> vector<8x384xf32>
    %c0_7 = arith.constant 0 : index
    %c0_8 = arith.constant 0 : index
    %9 = vector.load %arg3[%c0_7, %c0_8] : memref<1x384xf32, #tpu.memory_space<vmem>>, vector<1x384xf32>
    %10 = vector.broadcast %9 : vector<1x384xf32> to vector<8x384xf32>
    %11 = arith.addf %8, %10 : vector<8x384xf32>
    %12 = vector.extract_strided_slice %5 {offsets = [0, 0], sizes = [8, 128], strides = [1, 1]} : vector<8x384xf32> to vector<8x128xf32>
    %13 = vector.extract_strided_slice %11 {offsets = [0, 0], sizes = [8, 128], strides = [1, 1]} : vector<8x384xf32> to vector<8x128xf32>
    %14 = arith.addf %12, %13 : vector<8x128xf32>
    %15 = arith.negf %14 : vector<8x128xf32>
    %16 = math.exp %15 : vector<8x128xf32>
    %cst_9 = arith.constant 1.000000e+00 : f32
    %17 = vector.broadcast %cst_9 : f32 to vector<8x128xf32>
    %18 = arith.addf %17, %16 : vector<8x128xf32>
    %19 = arith.divf %17, %18 : vector<8x128xf32>
    %20 = vector.extract_strided_slice %5 {offsets = [0, 128], sizes = [8, 128], strides = [1, 1]} : vector<8x384xf32> to vector<8x128xf32>
    %21 = vector.extract_strided_slice %11 {offsets = [0, 128], sizes = [8, 128], strides = [1, 1]} : vector<8x384xf32> to vector<8x128xf32>
    %22 = arith.addf %20, %21 : vector<8x128xf32>
    %23 = arith.negf %22 : vector<8x128xf32>
    %24 = math.exp %23 : vector<8x128xf32>
    %cst_10 = arith.constant 1.000000e+00 : f32
    %25 = vector.broadcast %cst_10 : f32 to vector<8x128xf32>
    %26 = arith.addf %25, %24 : vector<8x128xf32>
    %27 = arith.divf %25, %26 : vector<8x128xf32>
    %28 = vector.extract_strided_slice %5 {offsets = [0, 256], sizes = [8, 128], strides = [1, 1]} : vector<8x384xf32> to vector<8x128xf32>
    %29 = vector.extract_strided_slice %11 {offsets = [0, 256], sizes = [8, 128], strides = [1, 1]} : vector<8x384xf32> to vector<8x128xf32>
    %30 = arith.mulf %19, %29 : vector<8x128xf32>
    %31 = arith.addf %28, %30 : vector<8x128xf32>
    %32 = math.tanh %31 : vector<8x128xf32>
    %cst_11 = arith.constant 1.000000e+00 : f32
    %33 = vector.broadcast %cst_11 : f32 to vector<8x128xf32>
    %34 = arith.subf %33, %27 : vector<8x128xf32>
    %35 = arith.mulf %34, %32 : vector<8x128xf32>
    %36 = arith.mulf %27, %3 : vector<8x128xf32>
    %37 = arith.addf %35, %36 : vector<8x128xf32>
    %c0_12 = arith.constant 0 : index
    %c0_13 = arith.constant 0 : index
    %38 = vector.load %arg9[%c0_12, %c0_13] : memref<8x128xf32, #tpu.memory_space<vmem>>, vector<8x128xf32>
    tpu.vector_store %arg9[%c0_12, %c0_13], %37 {strides = array<i32>} : memref<8x128xf32, #tpu.memory_space<vmem>>, vector<8x128xf32>,
    %c0_14 = arith.constant 0 : index
    %c0_15 = arith.constant 0 : index
    %39 = vector.load %arg10[%c0_14, %c0_15] : memref<8x128xf32, #tpu.memory_space<vmem>>, vector<8x128xf32>
    %40 = arith.truncf %37 : vector<8x128xf32> to vector<8x128xbf16>
    %c0_16 = arith.constant 0 : index
    %c0_17 = arith.constant 0 : index
    %41 = vector.load %arg4[%c0_16, %c0_17] : memref<128x384xbf16, #tpu.memory_space<vmem>>, vector<128x384xbf16>
    %cst_18 = arith.constant dense<0.000000e+00> : vector<8x384xf32>
    %42 = tpu.matmul %40, %41, %cst_18 {dimension_numbers = #tpu.dot_dimension_numbers<[1], [0], [0], [1], [0, 0, 1, 1], [], []>} : vector<8x128xbf16>, vector<128x384xbf16>, vector<8x384xf32> -> vector<8x384xf32>
    %c0_19 = arith.constant 0 : index
    %c0_20 = arith.constant 0 : index
    %43 = vector.load %arg5[%c0_19, %c0_20] : memref<1x384xf32, #tpu.memory_space<vmem>>, vector<1x384xf32>
    %44 = vector.broadcast %43 : vector<1x384xf32> to vector<8x384xf32>
    %45 = arith.addf %42, %44 : vector<8x384xf32>
    %46 = arith.truncf %39 : vector<8x128xf32> to vector<8x128xbf16>
    %c0_21 = arith.constant 0 : index
    %c0_22 = arith.constant 0 : index
    %47 = vector.load %arg6[%c0_21, %c0_22] : memref<128x384xbf16, #tpu.memory_space<vmem>>, vector<128x384xbf16>
    %cst_23 = arith.constant dense<0.000000e+00> : vector<8x384xf32>
    %48 = tpu.matmul %46, %47, %cst_23 {dimension_numbers = #tpu.dot_dimension_numbers<[1], [0], [0], [1], [0, 0, 1, 1], [], []>} : vector<8x128xbf16>, vector<128x384xbf16>, vector<8x384xf32> -> vector<8x384xf32>
    %c0_24 = arith.constant 0 : index
    %c0_25 = arith.constant 0 : index
    %49 = vector.load %arg7[%c0_24, %c0_25] : memref<1x384xf32, #tpu.memory_space<vmem>>, vector<1x384xf32>
    %50 = vector.broadcast %49 : vector<1x384xf32> to vector<8x384xf32>
    %51 = arith.addf %48, %50 : vector<8x384xf32>
    %52 = vector.extract_strided_slice %45 {offsets = [0, 0], sizes = [8, 128], strides = [1, 1]} : vector<8x384xf32> to vector<8x128xf32>
    %53 = vector.extract_strided_slice %51 {offsets = [0, 0], sizes = [8, 128], strides = [1, 1]} : vector<8x384xf32> to vector<8x128xf32>
    %54 = arith.addf %52, %53 : vector<8x128xf32>
    %55 = arith.negf %54 : vector<8x128xf32>
    %56 = math.exp %55 : vector<8x128xf32>
    %cst_26 = arith.constant 1.000000e+00 : f32
    %57 = vector.broadcast %cst_26 : f32 to vector<8x128xf32>
    %58 = arith.addf %57, %56 : vector<8x128xf32>
    %59 = arith.divf %57, %58 : vector<8x128xf32>
    %60 = vector.extract_strided_slice %45 {offsets = [0, 128], sizes = [8, 128], strides = [1, 1]} : vector<8x384xf32> to vector<8x128xf32>
    %61 = vector.extract_strided_slice %51 {offsets = [0, 128], sizes = [8, 128], strides = [1, 1]} : vector<8x384xf32> to vector<8x128xf32>
    %62 = arith.addf %60, %61 : vector<8x128xf32>
    %63 = arith.negf %62 : vector<8x128xf32>
    %64 = math.exp %63 : vector<8x128xf32>
    %cst_27 = arith.constant 1.000000e+00 : f32
    %65 = vector.broadcast %cst_27 : f32 to vector<8x128xf32>
    %66 = arith.addf %65, %64 : vector<8x128xf32>
    %67 = arith.divf %65, %66 : vector<8x128xf32>
    %68 = vector.extract_strided_slice %45 {offsets = [0, 256], sizes = [8, 128], strides = [1, 1]} : vector<8x384xf32> to vector<8x128xf32>
    %69 = vector.extract_strided_slice %51 {offsets = [0, 256], sizes = [8, 128], strides = [1, 1]} : vector<8x384xf32> to vector<8x128xf32>
    %70 = arith.mulf %59, %69 : vector<8x128xf32>
    %71 = arith.addf %68, %70 : vector<8x128xf32>
    %72 = math.tanh %71 : vector<8x128xf32>
    %cst_28 = arith.constant 1.000000e+00 : f32
    %73 = vector.broadcast %cst_28 : f32 to vector<8x128xf32>
    %74 = arith.subf %73, %67 : vector<8x128xf32>
    %75 = arith.mulf %74, %72 : vector<8x128xf32>
    %76 = arith.mulf %67, %39 : vector<8x128xf32>
    %77 = arith.addf %75, %76 : vector<8x128xf32>
    %c0_29 = arith.constant 0 : index
    %c0_30 = arith.constant 0 : index
    %78 = vector.load %arg10[%c0_29, %c0_30] : memref<8x128xf32, #tpu.memory_space<vmem>>, vector<8x128xf32>
    tpu.vector_store %arg10[%c0_29, %c0_30], %77 {strides = array<i32>} : memref<8x128xf32, #tpu.memory_space<vmem>>, vector<8x128xf32>,
    %79 = vector.extract_strided_slice %77 {offsets = [0, 0], sizes = [3, 128], strides = [1, 1]} : vector<8x128xf32> to vector<3x128xf32>
    %cst_31 = arith.constant dense<0.000000e+00> : vector<128xf32>
    %80 = vector.multi_reduction <add>, %79, %cst_31 [0] : vector<3x128xf32> to vector<128xf32>
    %81 = vector.shape_cast %80 : vector<128xf32> to vector<1x128xf32>
    %cst_32 = arith.constant 0.333333343 : f32
    %82 = vector.broadcast %cst_32 : f32 to vector<1x128xf32>
    %83 = arith.mulf %81, %82 : vector<1x128xf32>
    %84 = vector.shape_cast %83 : vector<1x128xf32> to vector<1x1x128xf32>
    %c0_33 = arith.constant 0 : index
    %c0_34 = arith.constant 0 : index
    %c0_35 = arith.constant 0 : index
    %85 = vector.load %arg8[%c0_33, %c0_34, %c0_35] : memref<1x1x128xf32, #tpu.memory_space<vmem>>, vector<1x1x128xf32>
    tpu.vector_store %arg8[%c0_33, %c0_34, %c0_35], %84 {strides = array<i32>} : memref<1x1x128xf32, #tpu.memory_space<vmem>>, vector<1x1x128xf32>,
    return
  }
  func.func @transform_0(%arg0: i32) -> (i32, i32, i32) {
    %c0_i32 = arith.constant 0 : i32
    %c0_i32_0 = arith.constant 0 : i32
    %c0_i32_1 = arith.constant 0 : i32
    return %arg0, %c0_i32, %c0_i32_0 : i32, i32, i32
  }
  func.func @transform_1(%arg0: i32) -> (i32, i32) {
    %c0_i32 = arith.constant 0 : i32
    %c0_i32_0 = arith.constant 0 : i32
    %c0_i32_1 = arith.constant 0 : i32
    return %c0_i32, %c0_i32_0 : i32, i32
  }
  func.func @transform_2(%arg0: i32) -> (i32, i32) {
    %c0_i32 = arith.constant 0 : i32
    %c0_i32_0 = arith.constant 0 : i32
    %c0_i32_1 = arith.constant 0 : i32
    return %c0_i32, %c0_i32_0 : i32, i32
  }
  func.func @transform_3(%arg0: i32) -> (i32, i32) {
    %c0_i32 = arith.constant 0 : i32
    %c0_i32_0 = arith.constant 0 : i32
    %c0_i32_1 = arith.constant 0 : i32
    return %c0_i32, %c0_i32_0 : i32, i32
  }
  func.func @transform_4(%arg0: i32) -> (i32, i32) {
    %c0_i32 = arith.constant 0 : i32
    %c0_i32_0 = arith.constant 0 : i32
    %c0_i32_1 = arith.constant 0 : i32
    return %c0_i32, %c0_i32_0 : i32, i32
  }
  func.func @transform_5(%arg0: i32) -> (i32, i32) {
    %c0_i32 = arith.constant 0 : i32
    %c0_i32_0 = arith.constant 0 : i32
    %c0_i32_1 = arith.constant 0 : i32
    return %c0_i32, %c0_i32_0 : i32, i32
  }
  func.func @transform_6(%arg0: i32) -> (i32, i32) {
    %c0_i32 = arith.constant 0 : i32
    %c0_i32_0 = arith.constant 0 : i32
    %c0_i32_1 = arith.constant 0 : i32
    return %c0_i32, %c0_i32_0 : i32, i32
  }
  func.func @transform_7(%arg0: i32) -> (i32, i32, i32) {
    %c0_i32 = arith.constant 0 : i32
    %c0_i32_0 = arith.constant 0 : i32
    %c0_i32_1 = arith.constant 0 : i32
    return %arg0, %c0_i32, %c0_i32_0 : i32, i32, i32
  }
}

</mosaic_0001>

<bundles_post_ra>
// kernel: squeeze.4
= control target key start
LH: loop header
LB: loop body
LE: loop exit
PB: predicated region body
PF: predicated region fallthrough
CT: control target
= control target key end

     0   :  { %vm295_vm0 = vcmask 1047554   ;;  %s305_s18 = smov 3  ;;  %s308_s19 = smov 12  ;;  %vm310_vm1 = vcmask 1043458   ;;  %vm183_vm2 = vcmask 523264   ;;  %vm274_vm3 = vcmask 1048064   ;;  %s528_s0 = inlined_call_operand.vmem [shape: bf16[1,90,64], index: 0, kind: input, shape index: {}]   ;;  %s529_s1 = inlined_call_operand.vmem [shape: bf16[18,320], index: 1, kind: output, shape index: {}]  }
   0x1   :  { %v445_v0 = vld [vmem:[%s528_s0 + $0x28] sm:$0xff]   ;;  %v446_v1 = vld [vmem:[%s528_s0 + $0x20] sm:$0xff]   ;;  %v447_v2 = vld [vmem:[%s528_s0 + $0x18] sm:$0xff]   ;;  %s459_s20 = smov 64  }
   0x2   :  { %v403_v3 = vunpack.c.l.bf16 %v445_v0  ;;  %v404_v4 = vunpack.c.h.bf16 %v445_v0  ;;  %v407_v5 = vunpack.c.l.bf16 %v446_v1  ;;  %v448_v6 = vld [vmem:[%s528_s0 + $0x10] sm:$0xff]   ;;  %v412_v7 = vunpack.c.h.bf16 %v447_v2  ;;  %v449_v10 = vld [vmem:[%s528_s0 + $0x8] sm:$0xff]   ;;  %v422_v13 = vld [vmem:[%s528_s0] sm:$0xff]   ;;  %s291_s0 = smov 3 }
   0x3   :  { %v411_v8 = vunpack.c.l.bf16 %v447_v2  ;;  %v416_v9 = vunpack.c.h.bf16 %v448_v6  ;;  %v408_v11 = vunpack.c.h.bf16 %v446_v1  ;;  %v415_v12 = vunpack.c.l.bf16 %v448_v6 }
   0x4   :  { %18 = vst [vmem:[#allocation1 + $0x58] sm:$0xff] %v404_v4  ;;  %v420_v14 = vunpack.c.h.bf16 %v449_v10  ;;  %v419_v15 = vunpack.c.l.bf16 %v449_v10  ;;  %v424_v16 = vunpack.c.h.bf16 %v422_v13  ;;  %v423_v17 = vunpack.c.l.bf16 %v422_v13 }
   0x5   :  { %33 = vst [vmem:[#allocation1 + $0x50] sm:$0xff] %v403_v3 }
   0x6   :  { %63 = vst [vmem:[#allocation1 + $0x40] sm:$0xff] %v407_v5 }
   0x7   :  { %78 = vst [vmem:[#allocation1 + $0x38] sm:$0xff] %v412_v7 }
   0x8   :  { %93 = vst [vmem:[#allocation1 + $0x30] sm:$0xff] %v411_v8 }
   0x9   :  { %108 = vst [vmem:[#allocation1 + $0x28] sm:$0xff] %v416_v9 }
   0xa   :  { %48 = vst [vmem:[#allocation1 + $0x48] sm:$0xff] %v408_v11 }
   0xb   :  { %123 = vst [vmem:[#allocation1 + $0x20] sm:$0xff] %v415_v12 }
   0xc   :  { %138 = vst [vmem:[#allocation1 + $0x18] sm:$0xff] %v420_v14  ;;  %v292_v18 = vld [vmem:[#allocation1 + $0x51] ss:$5 sm:%s291_s0]   ;;  %v266_v29 = vld [vmem:[#allocation1 + $0x55] ss:$2 sm:$0x7]  }
   0xd   :  { %153 = vst [vmem:[#allocation1 + $0x10] sm:$0xff] %v419_v15  ;;  %v306_v22 = vld [vmem:[#allocation1 + $0x53] ss:$5 sm:%s305_s18]   ;;  %v261_v28 = vld [vmem:[#allocation1 + $0x50] ss:$2 sm:$0x7]  }
   0xe   :  { %168 = vst [vmem:[#allocation1 + $0x8] sm:$0xff] %v424_v16  ;;  %v241_v44 = vld [vmem:[#allocation1 + $0x3c] ss:$2 sm:$0x7]  }
   0xf   :  { %181 = vst [vmem:[#allocation1] sm:$0xff] %v423_v17  ;;  %v231_v42 = vld [vmem:[#allocation1 + $0x32] ss:$2 sm:$0x7]  }
  0x10   :  { %v294_v19 = vld [vmem:[#allocation1 + $0x1f] ss:$5 sm:$0xfc]   ;;  %264 = vst.msk [vmem:[#allocation0 + $0x30] ss:$8 sm:$0x7] %vm183_vm2, %v261_v28  }
  0x11   :  { %v296_v20 = vsel %vm295_vm0, %v294_v19, %v292_v18  ;;  %v277_v21 = vld [vmem:[#allocation1 + $0x2b] ss:$5 sm:$0xff]   ;;  %v309_v23 = vld [vmem:[#allocation1 + $0x3d] ss:$5 sm:%s308_s19]  }
  0x12   :  { %297 = vrot.lane.b32.xlu1 %v296_v20, %s459_s20  ;;  %v311_v26 = vsel %vm310_vm1, %v309_v23, %v306_v22  ;;  %269 = vst.msk [vmem:[#allocation0 + $0x31] ss:$8 sm:$0x7] %vm183_vm2, %v266_v29   ;;  %v221_v30 = vld [vmem:[#allocation1 + $0x28] ss:$2 sm:$0x7]  }
  0x13   :  { %224 = vst.msk [vmem:[#allocation0 + $0x18] ss:$8 sm:$0x7] %vm183_vm2, %v221_v30   ;;  %v206_v38 = vld [vmem:[#allocation1 + $0x19] ss:$2 sm:$0x7]  }
  0x14   :  { %v201_v37 = vld [vmem:[#allocation1 + $0x14] ss:$2 sm:$0x7]   ;;  %v211_v39 = vld [vmem:[#allocation1 + $0x1e] ss:$2 sm:$0x7]  }
  0x15   :  { %v191_v35 = vld [vmem:[#allocation1 + $0xa] ss:$2 sm:$0x7]   ;;  %v196_v36 = vld [vmem:[#allocation1 + $0xf] ss:$2 sm:$0x7]  }
  0x16   :  { %v271_v24 = vld [vmem:[#allocation1 + $0x1] ss:$5 sm:$0xff]   ;;  %v186_v32 = vld [vmem:[#allocation1 + $0x5] ss:$2 sm:$0x7]  }
  0x17   :  { %v454_v25 = vpack.i.bf16 %v277_v21, %v271_v24  ;;  %v284_v27 = vld [vmem:[#allocation1 + $0x3] ss:$5 sm:$0xff]   ;;  %v182_v31 = vld [vmem:[#allocation1] ss:$2 sm:$0x7]  }
  0x18   :  { %184 = vst.msk [vmem:[#allocation0] ss:$8 sm:$0x7] %vm183_vm2, %v182_v31   ;;  %v216_v40 = vld [vmem:[#allocation1 + $0x23] ss:$2 sm:$0x7]  }
  0x19   :  { %455 = vrot.lane.b32.xlu0 %v454_v25, %s459_s20  ;;  %v376_v33 = vld [vmem:[#allocation0 + $0x40] sm:$0xff]  ;;  %189 = vst.msk [vmem:[#allocation0 + $0x1] ss:$8 sm:$0x7] %vm183_vm2, %v186_v32  }
  0x1a   :  { %312 = vrot.lane.b32.xlu1 %v311_v26, %s459_s20  ;;  %v377_v34 = vpack.c.bf16 0.0, %v376_v33  ;;  %194 = vst.msk [vmem:[#allocation0 + $0x2] ss:$8 sm:$0x7] %vm183_vm2, %v191_v35  }
  0x1b   :  { %199 = vst.msk [vmem:[#allocation0 + $0x3] ss:$8 sm:$0x7] %vm183_vm2, %v196_v36   ;;  %v226_v41 = vld [vmem:[#allocation1 + $0x2d] ss:$2 sm:$0x7]  }
  0x1c   :  { %400 = vst [vmem:[%s529_s1 + $0x20] sm:$0xf] %v377_v34  ;;  %v236_v43 = vld [vmem:[#allocation1 + $0x37] ss:$2 sm:$0x7]  }
  0x1d   :  { %204 = vst.msk [vmem:[#allocation0 + $0x4] ss:$8 sm:$0x7] %vm183_vm2, %v201_v37   ;;  %v246_v45 = vld [vmem:[#allocation1 + $0x41] ss:$2 sm:$0x7]  }
  0x1e   :  { %209 = vst.msk [vmem:[#allocation0 + $0x5] ss:$8 sm:$0x7] %vm183_vm2, %v206_v38   ;;  %v251_v46 = vld [vmem:[#allocation1 + $0x46] ss:$2 sm:$0x7]  }
  0x1f   :  { %214 = vst.msk [vmem:[#allocation0 + $0x6] ss:$8 sm:$0x7] %vm183_vm2, %v211_v39   ;;  %v256_v47 = vld [vmem:[#allocation1 + $0x4b] ss:$2 sm:$0x7]  }
  0x20   :  { %219 = vst.msk [vmem:[#allocation0 + $0x7] ss:$8 sm:$0x7] %vm183_vm2, %v216_v40  }
  0x21   :  { %285 = vrot.lane.b32.xlu0 %v284_v27, %s459_s20  ;;  %229 = vst.msk [vmem:[#allocation0 + $0x19] ss:$8 sm:$0x7] %vm183_vm2, %v226_v41  }
  0x22   :  { %234 = vst.msk [vmem:[#allocation0 + $0x1a] ss:$8 sm:$0x7] %vm183_vm2, %v231_v42  }
  0x23   :  { %239 = vst.msk [vmem:[#allocation0 + $0x1b] ss:$8 sm:$0x7] %vm183_vm2, %v236_v43  }
  0x24   :  { %244 = vst.msk [vmem:[#allocation0 + $0x1c] ss:$8 sm:$0x7] %vm183_vm2, %v241_v44  }
  0x25   :  { %249 = vst.msk [vmem:[#allocation0 + $0x1d] ss:$8 sm:$0x7] %vm183_vm2, %v246_v45  }
  0x26   :  { %254 = vst.msk [vmem:[#allocation0 + $0x1e] ss:$8 sm:$0x7] %vm183_vm2, %v251_v46  }
  0x27   :  { %259 = vst.msk [vmem:[#allocation0 + $0x1f] ss:$8 sm:$0x7] %vm183_vm2, %v256_v47   ;;  %v334_v56 = vld [vmem:[#allocation0 + $0x10] sm:$0xff] }
  0x2e   :  { %v355_v53 = vld [vmem:[#allocation0 + $0x28] sm:$0xff] }
  0x84   :  { %v298_v48 = vpop.permute.xlu1 %297  }
  0x85   :  { %301 = vst.msk [vmem:[#allocation0 + $0x30] sm:$0x3] %vm274_vm3, %v298_v48  }
  0x86   :  { %303 = vst.msk [vmem:[#allocation0 + $0x16] sm:$0xfc] %vm274_vm3, %v298_v48  }
  0x8b   :  { %v456_v49 = vpop.permute.xlu0 %455 }
  0x8c   :  { %v458_v50 = vunpack.i.h.bf16 %v456_v49  ;;  %v457_v51 = vunpack.i.l.bf16 %v456_v49  ;;  %v313_v52 = vpop.permute.xlu1 %312   ;;  %v362_v55 = vld [vmem:[#allocation0 + $0x30] sm:$0xff] }
  0x8d   :  { %316 = vst.msk [vmem:[#allocation0 + $0x38] sm:$0x3] %vm274_vm3, %v313_v52  }
  0x8e   :  { %282 = vst.msk [vmem:[#allocation0 + $0x20] sm:$0xff] %vm274_vm3, %v458_v50  }
  0x8f   :  { %318 = vst.msk [vmem:[#allocation0 + $0x1c] sm:$0xc] %vm274_vm3, %v313_v52  }
  0x90   :  { %275 = vst.msk [vmem:[#allocation0] sm:$0xff] %vm274_vm3, %v457_v51  }
  0x93   :  { %v286_v54 = vpop.permute.xlu0 %285  }
  0x94   :  { %v369_v57 = vld [vmem:[#allocation0 + $0x38] sm:$0xff]  ;;  %289 = vst.msk [vmem:[#allocation0 + $0x8] sm:$0xff] %vm274_vm3, %v286_v54  }
  0x95   :  { %v348_v58 = vld [vmem:[#allocation0 + $0x20] sm:$0xff]  ;;  %v443_v59 = vpack.c.bf16 %v369_v57, %v362_v55 }
  0x96   :  { %v438_v60 = vpack.c.bf16 %v355_v53, %v348_v58  ;;  %v341_v61 = vld [vmem:[#allocation0 + $0x18] sm:$0xff] }
  0x97   :  { %v433_v62 = vpack.c.bf16 %v341_v61, %v334_v56  ;;  %452 = vst [vmem:[%s529_s1 + $0x18] sm:$0xff] %v443_v59   ;;  %v321_v63 = vld [vmem:[#allocation0] sm:$0xff] }
  0x98   :  { %451 = vst [vmem:[%s529_s1 + $0x10] sm:$0xff] %v438_v60  }
  0x99   :  { %450 = vst [vmem:[%s529_s1 + $0x8] sm:$0xff] %v433_v62  }
  0x9b   :  { %v327_v0 = vld [vmem:[#allocation0 + $0x8] sm:$0xff] }
  0x9c   :  { %v428_v1 = vpack.c.bf16 %v327_v0, %v321_v63 }
  0x9e   :  { %429 = vst [vmem:[%s529_s1] sm:$0xff] %v428_v1  }

// kernel: squeeze.2
= control target key start
LH: loop header
LB: loop body
LE: loop exit
PB: predicated region body
PF: predicated region fallthrough
CT: control target
= control target key end

     0   :  { %vm48_vm0 = vcmask 523264   ;;  %s157_s0 = inlined_call_operand.vmem [shape: bf16[1,18,64], index: 0, kind: input, shape index: {}]   ;;  %s158_s1 = inlined_call_operand.vmem [shape: bf16[2,3,3,1,64], index: 1, kind: output, shape index: {}]  }
   0x1   :  { %v112_v0 = vld [vmem:[%s157_s0 + $0x8] sm:$0xf]  ;;  %v120_v1 = vld [vmem:[%s157_s0] sm:$0xff]  }
   0x2   :  { %v15_v2 = vunpack.c.l.bf16 %v112_v0  ;;  %v121_v3 = vunpack.c.l.bf16 %v120_v1  ;;  %v122_v4 = vunpack.c.h.bf16 %v120_v1 }
   0x4   :  { %18 = vst [vmem:[#allocation1] sm:$0xff] %v15_v2 }
   0x5   :  { %49 = vst.msk [vmem:[#allocation0] sm:$0x7] %vm48_vm0, %v121_v3  }
   0x6   :  { %51 = vst.msk [vmem:[#allocation0 + $0x5] sm:$0x38] %vm48_vm0, %v121_v3  }
   0x7   :  { %53 = vst.msk [vmem:[#allocation0 + $0xa] sm:$0xc0] %vm48_vm0, %v121_v3  }
   0x8   :  { %58 = vst.msk [vmem:[#allocation0 + $0x12] ss:$6 sm:$0x3] %vm48_vm0, %v122_v4  }
   0x9   :  { %60 = vst.msk [vmem:[#allocation0 + $0x17] sm:$0xc] %vm48_vm0, %v122_v4  }
   0xa   :  { %62 = vst.msk [vmem:[#allocation0 + $0x1c] sm:$0x70] %vm48_vm0, %v122_v4  }
   0xb   :  { %v66_v5 = vld [vmem:[#allocation1] sm:$0x3]   ;;  %64 = vst.msk [vmem:[#allocation0 + $0x21] sm:$0x80] %vm48_vm0, %v122_v4  }
   0xc   :  { %69 = vst.msk [vmem:[#allocation0 + $0x29] sm:$0x3] %vm48_vm0, %v66_v5   ;;  %v72_v6 = vld [vmem:[#allocation0] sm:$0xf] }
   0xd   :  { %v73_v7 = vpack.c.bf16 0.0, %v72_v6  ;;  %v78_v8 = vld [vmem:[#allocation0 + $0x8] sm:$0xf] }
   0xe   :  { %v79_v9 = vpack.c.bf16 0.0, %v78_v8 }
   0xf   :  { %76 = vst [vmem:[%s158_s1] sm:$0x3] %v73_v7  ;;  %v85_v10 = vld [vmem:[#allocation0 + $0x10] sm:$0xf] }
  0x10   :  { %114 = vst [vmem:[%s158_s1 + $0x2] sm:$0x3] %v79_v9  ;;  %v86_v11 = vpack.c.bf16 0.0, %v85_v10  ;;  %v92_v12 = vld [vmem:[#allocation0 + $0x18] sm:$0xf] }
  0x11   :  { %v93_v13 = vpack.c.bf16 0.0, %v92_v12  ;;  %v99_v14 = vld [vmem:[#allocation0 + $0x20] sm:$0xf] }
  0x12   :  { %115 = vst [vmem:[%s158_s1 + $0x4] sm:$0x3] %v86_v11  ;;  %v100_v15 = vpack.c.bf16 0.0, %v99_v14 }
  0x13   :  { %116 = vst [vmem:[%s158_s1 + $0x6] sm:$0x3] %v93_v13  ;;  %v106_v16 = vld [vmem:[#allocation0 + $0x28] sm:$0xf] }
  0x14   :  { %117 = vst [vmem:[%s158_s1 + $0x8] sm:$0x3] %v100_v15  ;;  %v107_v17 = vpack.c.bf16 0.0, %v106_v16 }
  0x16   :  { %118 = vst [vmem:[%s158_s1 + $0xa] sm:$0x3] %v107_v17 }

// kernel: _lambda_.8
= control target key start
LH: loop header
LB: loop body
LE: loop exit
PB: predicated region body
PF: predicated region fallthrough
CT: control target
= control target key end

     0   :  { %s708_s12 = smov 0   ;;  %s710_s13 = smov 0   ;;  %s782_s0 = inlined_call_operand.vmem [shape: bf16[2,96,128], index: 0, kind: input, shape index: {}]   ;;  %s783_s1 = inlined_call_operand.vmem [shape: bf16[2,128,128], index: 1, kind: input, shape index: {}]   ;;  %s784_s2 = inlined_call_operand.vmem [shape: f32[2,1,128], index: 2, kind: input, shape index: {}]   ;;  %s785_s3 = inlined_call_operand.vmem [shape: f32[2,96,128], index: 3, kind: output, shape index: {}]  }
   0x1   :  { %s712_s14 = smov 0  }
   0x2 LB: > { %s25_s15 = sadd.s32 1, %s682_s13  ;;  %p535_p0 = scmp.ge.s32.totalorder %s686_s14, 1  ;;  %s686_s14 = sphi %s712_s14, %s13_s14   ;;  %s682_s13 = sphi %s710_s13, %s787_s13   ;;  %s678_s12 = sphi %s708_s12, %s786_s12  }
   0x3   : > { %p27_p1 = scmp.ge.s32.totalorder %s25_s15, 2  ;;  %p176_p2 = scmp.lt.s32.totalorder %s686_s14, 3 }
   0x5   : > { %s789_s15 = smov (%p27_p1, %s25_s15), 0  ;;  %p177_p3 = pnand %p535_p0, %p176_p2 }
   0x6   : > { %p217_p4 = scmp.lt.s32.totalorder (!%p177_p3), %s678_s12, 1 }
   0x7   : > { %180 = sbr.rel (%p177_p3) target bundleno = 209 (0xd1), region = 32 }
   0xc   : > { %s791_s12 = smov (!%p217_p4, %s678_s12), 1 }
   0xd   : > { %s598_s16 = sshll.u32 %s791_s12, 6  ;;  %s233_s22 = scalar_lea.vmem %s784_s2, %s791_s12 }
   0xe   : > { %s732_s19 = scalar_lea.vmem %s783_s1, %s598_s16  ;;  %s637_s23 = smul.u32 48, %s791_s12  ;;  %v663_v14 = vld [vmem:[%s233_s22] ss:$0 sm:$0xff] }
   0xf   : > { %v612_v0 = vld [vmem:[%s732_s19 + $0x38] sm:$0xff]  ;;  %v611_v1 = vld [vmem:[%s732_s19 + $0x30] sm:$0xff]  ;;  %v610_v2 = vld [vmem:[%s732_s19 + $0x28] sm:$0xff]  ;;  %s638_s29 = smul.u32 96, %s791_s12 }
  0x10   : > { %614 = vmatpush.bf16.msra.mxu2 %v612_v0  ;;  %615 = vmatpush.bf16.msra.mxu3 %v612_v0  ;;  %v609_v3 = vld [vmem:[%s732_s19 + $0x20] sm:$0xff]  ;;  %v608_v4 = vld [vmem:[%s732_s19 + $0x18] sm:$0xff]  ;;  %v607_v5 = vld [vmem:[%s732_s19 + $0x10] sm:$0xff]  ;;  %s224_s26 = scalar_lea.vmem %s782_s0, %s637_s23 }
  0x11   : > { %360 = vmatpush.bf16.msra.mxu0 %v612_v0  ;;  %613 = vmatpush.bf16.msra.mxu1 %v612_v0  ;;  %v606_v6 = vld [vmem:[%s732_s19 + $0x8] sm:$0xff]  ;;  %v605_v7 = vld [vmem:[%s732_s19] sm:$0xff]  ;;  %v601_v8 = vld [vmem:[%s224_s26 + $0x10] sm:$0xff]  ;;  %s759_s5 = scalar_lea.vmem %s785_s3, %s638_s29 }
  0x12   : > { %v603_v9 = vld [vmem:[%s224_s26 + $0x20] sm:$0xff]  ;;  %v600_v11 = vld [vmem:[%s224_s26 + $0x8] sm:$0xff]  ;;  %v602_v12 = vld [vmem:[%s224_s26 + $0x18] sm:$0xff] }
  0x13   : > { %v599_v10 = vld [vmem:[%s224_s26] sm:$0xff]  ;;  %v604_v13 = vld [vmem:[%s224_s26 + $0x28] sm:$0xff] }
  0x14   : > { %617 = vmatpush.bf16.msra.mxu2 %v611_v1  ;;  %618 = vmatpush.bf16.msra.mxu3 %v611_v1 }
  0x15   : > { %361 = vmatpush.bf16.msra.mxu0 %v611_v1  ;;  %616 = vmatpush.bf16.msra.mxu1 %v611_v1 }
  0x18   : > { %620 = vmatpush.bf16.msra.mxu2 %v610_v2  ;;  %621 = vmatpush.bf16.msra.mxu3 %v610_v2 }
  0x19   : > { %362 = vmatpush.bf16.msra.mxu0 %v610_v2  ;;  %619 = vmatpush.bf16.msra.mxu1 %v610_v2 }
  0x1c   : > { %623 = vmatpush.bf16.msra.mxu2 %v609_v3  ;;  %624 = vmatpush.bf16.msra.mxu3 %v609_v3 }
  0x1d   : > { %363 = vmatpush.bf16.msra.mxu0 %v609_v3  ;;  %622 = vmatpush.bf16.msra.mxu1 %v609_v3 }
  0x20   : > { %626 = vmatpush.bf16.msra.mxu2 %v608_v4  ;;  %627 = vmatpush.bf16.msra.mxu3 %v608_v4 }
  0x21   : > { %364 = vmatpush.bf16.msra.mxu0 %v608_v4  ;;  %625 = vmatpush.bf16.msra.mxu1 %v608_v4 }
  0x24   : > { %629 = vmatpush.bf16.msra.mxu2 %v607_v5  ;;  %630 = vmatpush.bf16.msra.mxu3 %v607_v5 }
  0x25   : > { %365 = vmatpush.bf16.msra.mxu0 %v607_v5  ;;  %628 = vmatpush.bf16.msra.mxu1 %v607_v5 }
  0x28   : > { %632 = vmatpush.bf16.msra.mxu2 %v606_v6  ;;  %633 = vmatpush.bf16.msra.mxu3 %v606_v6 }
  0x29   : > { %366 = vmatpush.bf16.msra.mxu0 %v606_v6  ;;  %631 = vmatpush.bf16.msra.mxu1 %v606_v6 }
  0x2c   : > { %635 = vmatpush.bf16.msra.mxu2 %v605_v7  ;;  %636 = vmatpush.bf16.msra.mxu3 %v605_v7 }
  0x2d   : > { %367 = vmatpush.bf16.msra.mxu0 %v605_v7  ;;  %634 = vmatpush.bf16.msra.mxu1 %v605_v7 }
  0x2f   : > { %378 = vmatmul.bf16.vlgmr.msra.gmra.mxu2 %v601_v8  ;;  %388 = vmatmul.bf16.vlgmr.msra.gmra.mxu3 %v603_v9 }
  0x30   : > { %368 = vmatmul.bf16.vlgmr.msra.gmra.mxu0 %v599_v10  ;;  %373 = vmatmul.bf16.vlgmr.msra.gmra.mxu1 %v600_v11 }
  0x3f   : > { %383 = vmatmul.bf16.gmra.mxu2 %v602_v12  ;;  %393 = vmatmul.bf16.gmra.mxu3 %v604_v13 }
  0xad   : > { %v369_v15 = vpop.f32.mrf.mxu0  ;;  %v374_v16 = vpop.f32.mrf.mxu1 }
  0xae   : > { %v370_v17 = vadd.f32 %v663_v14, %v369_v15  ;;  %v375_v18 = vadd.f32 %v663_v14, %v374_v16 }
  0xb0   : > { %v399_v19 = vmax.f32 %v370_v17, 0.0  ;;  %v401_v20 = vmax.f32 %v375_v18, 0.0 }
  0xb2   : > { %v379_v21 = vpop.f32.mrf.mxu2  ;;  %v389_v22 = vpop.f32.mrf.mxu3  ;;  %411 = vst [vmem:[%s759_s5] sm:$0xff] %v399_v19 }
  0xb3   : > { %v380_v23 = vadd.f32 %v663_v14, %v379_v21  ;;  %v390_v24 = vadd.f32 %v663_v14, %v389_v22  ;;  %413 = vst [vmem:[%s759_s5 + $0x10] sm:$0xff] %v401_v20 }
  0xb5   : > { %v403_v25 = vmax.f32 %v380_v23, 0.0  ;;  %v407_v26 = vmax.f32 %v390_v24, 0.0  ;;  %v371_v27 = vpop.f32.mrf.mxu0  ;;  %v376_v28 = vpop.f32.mrf.mxu1 }
  0xb6   : > { %v372_v29 = vadd.f32 %v663_v14, %v371_v27  ;;  %v377_v30 = vadd.f32 %v663_v14, %v376_v28 }
  0xb7   : > { %415 = vst [vmem:[%s759_s5 + $0x20] sm:$0xff] %v403_v25 }
  0xb8   : > { %419 = vst [vmem:[%s759_s5 + $0x40] sm:$0xff] %v407_v26  ;;  %v400_v31 = vmax.f32 %v372_v29, 0.0  ;;  %v402_v32 = vmax.f32 %v377_v30, 0.0 }
  0xba   : > { %v381_v33 = vpop.f32.mrf.mxu2  ;;  %v391_v34 = vpop.f32.mrf.mxu3  ;;  %412 = vst [vmem:[%s759_s5 + $0x8] sm:$0xff] %v400_v31 }
  0xbb   : > { %v382_v35 = vadd.f32 %v663_v14, %v381_v33  ;;  %v392_v36 = vadd.f32 %v663_v14, %v391_v34  ;;  %414 = vst [vmem:[%s759_s5 + $0x18] sm:$0xff] %v402_v32 }
  0xbd   : > { %v404_v37 = vmax.f32 %v382_v35, 0.0  ;;  %v408_v38 = vmax.f32 %v392_v36, 0.0 }
  0xbf   : > { %416 = vst [vmem:[%s759_s5 + $0x28] sm:$0xff] %v404_v37 }
  0xc0   : > { %420 = vst [vmem:[%s759_s5 + $0x48] sm:$0xff] %v408_v38 }
  0xc2   : > { %v384_v39 = vpop.f32.mrf.mxu2  ;;  %v394_v40 = vpop.f32.mrf.mxu3 }
  0xc3   : > { %v385_v41 = vadd.f32 %v663_v14, %v384_v39  ;;  %v395_v42 = vadd.f32 %v663_v14, %v394_v40 }
  0xc5   : > { %v405_v43 = vmax.f32 %v385_v41, 0.0  ;;  %v409_v44 = vmax.f32 %v395_v42, 0.0 }
  0xc7   : > { %417 = vst [vmem:[%s759_s5 + $0x30] sm:$0xff] %v405_v43 }
  0xc8   : > { %421 = vst [vmem:[%s759_s5 + $0x50] sm:$0xff] %v409_v44 }
  0xca   : > { %v386_v45 = vpop.f32.mrf.mxu2  ;;  %v396_v46 = vpop.f32.mrf.mxu3 }
  0xcb   : > { %v387_v47 = vadd.f32 %v663_v14, %v386_v45  ;;  %v397_v48 = vadd.f32 %v663_v14, %v396_v46 }
  0xcd   : > { %v406_v49 = vmax.f32 %v387_v47, 0.0  ;;  %v410_v50 = vmax.f32 %v397_v48, 0.0 }
  0xcf   : > { %418 = vst [vmem:[%s759_s5 + $0x38] sm:$0xff] %v406_v49 }
  0xd0   : > { %422 = vst [vmem:[%s759_s5 + $0x58] sm:$0xff] %v410_v50 }
  0xd1 PF: > { %s13_s14 = sadd.s32 1, %s686_s14   ;;  %s786_s12 = smov %s682_s13 }
  0xd2   : > { %p10_p5 = scmp.ge.s32.totalorder %s13_s14, 4   ;;  %s787_s13 = smov %s789_s15 }
  0xd4   :  { %12 = sbr.rel (!%p10_p5) target bundleno = 2 (0x2), region = 68 }

// kernel: _lambda_.9
= control target key start
LH: loop header
LB: loop body
LE: loop exit
PB: predicated region body
PF: predicated region fallthrough
CT: control target
= control target key end

     0   :  { %s872_s12 = smov 0   ;;  %s874_s13 = smov 0   ;;  %s958_s0 = inlined_call_operand.vmem [shape: bf16[2,24,384], index: 0, kind: input, shape index: {}]   ;;  %s959_s1 = inlined_call_operand.vmem [shape: bf16[2,384,128], index: 1, kind: input, shape index: {}]   ;;  %s960_s2 = inlined_call_operand.vmem [shape: f32[2,1,128], index: 2, kind: input, shape index: {}]   ;;  %s961_s3 = inlined_call_operand.vmem [shape: f32[2,24,128], index: 3, kind: output, shape index: {}]  }
   0x1   :  { %s876_s14 = smov 0  }
   0x2 LB: > { %s25_s15 = sadd.s32 1, %s846_s13  ;;  %p651_p0 = scmp.ge.s32.totalorder %s850_s14, 1  ;;  %s850_s14 = sphi %s876_s14, %s13_s14   ;;  %s846_s13 = sphi %s874_s13, %s963_s13   ;;  %s842_s12 = sphi %s872_s12, %s962_s12  }
   0x3   : > { %p27_p1 = scmp.ge.s32.totalorder %s25_s15, 2  ;;  %p177_p2 = scmp.lt.s32.totalorder %s850_s14, 3 }
   0x5   : > { %s965_s15 = smov (%p27_p1, %s25_s15), 0  ;;  %p178_p3 = pnand %p651_p0, %p177_p2 }
   0x6   : > { %p219_p4 = scmp.lt.s32.totalorder (!%p178_p3), %s842_s12, 1 }
   0x7   : > { %181 = sbr.rel (%p178_p3) target bundleno = 206 (0xce), region = 32 }
   0xc   : > { %s967_s12 = smov (!%p219_p4, %s842_s12), 1 }
   0xd   : > { %s801_s16 = smul.u32 192, %s967_s12  ;;  %s236_s19 = scalar_lea.vmem %s960_s2, %s967_s12 }
   0xe   : > { %s800_s23 = smul.u32 36, %s967_s12  ;;  %v827_v41 = vld [vmem:[%s236_s19] ss:$0 sm:$0xff] }
   0xf   : > { %s900_s22 = scalar_lea.vmem %s959_s1, %s801_s16  ;;  %s802_s29 = smul.u32 24, %s967_s12 }
  0x10   : > { %v775_v0 = vld [vmem:[%s900_s22 + $0x38] sm:$0xff]  ;;  %v774_v3 = vld [vmem:[%s900_s22 + $0x30] sm:$0xff]  ;;  %v773_v6 = vld [vmem:[%s900_s22 + $0x28] sm:$0xff]  ;;  %s926_s26 = scalar_lea.vmem %s958_s0, %s800_s23 }
  0x11   : > { %v783_v1 = vld [vmem:[%s900_s22 + $0x78] sm:$0xff]  ;;  %476 = vmatpush.bf16.msra.mxu0 %v775_v0  ;;  %v782_v4 = vld [vmem:[%s900_s22 + $0x70] sm:$0xff]  ;;  %792 = vmatpush.bf16.msra.mxu3 %v775_v0  ;;  %v781_v7 = vld [vmem:[%s900_s22 + $0x68] sm:$0xff]  ;;  %s245_s5 = scalar_lea.vmem %s961_s3, %s802_s29 }
  0x12   : > { %v791_v2 = vld [vmem:[%s900_s22 + $0xb8] sm:$0xff]  ;;  %494 = vmatpush.bf16.msra.mxu1 %v783_v1  ;;  %v790_v5 = vld [vmem:[%s900_s22 + $0xb0] sm:$0xff]  ;;  %v789_v8 = vld [vmem:[%s900_s22 + $0xa8] sm:$0xff] }
  0x13   : > { %512 = vmatpush.bf16.msra.mxu2 %v791_v2  ;;  %v772_v9 = vld [vmem:[%s900_s22 + $0x20] sm:$0xff]  ;;  %v771_v12 = vld [vmem:[%s900_s22 + $0x18] sm:$0xff]  ;;  %v770_v15 = vld [vmem:[%s900_s22 + $0x10] sm:$0xff] }
  0x14   : > { %v780_v10 = vld [vmem:[%s900_s22 + $0x60] sm:$0xff]  ;;  %v779_v13 = vld [vmem:[%s900_s22 + $0x58] sm:$0xff]  ;;  %v778_v16 = vld [vmem:[%s900_s22 + $0x50] sm:$0xff] }
  0x15   : > { %477 = vmatpush.bf16.msra.mxu0 %v774_v3  ;;  %793 = vmatpush.bf16.msra.mxu3 %v774_v3  ;;  %v788_v11 = vld [vmem:[%s900_s22 + $0xa0] sm:$0xff]  ;;  %v787_v14 = vld [vmem:[%s900_s22 + $0x98] sm:$0xff]  ;;  %v786_v17 = vld [vmem:[%s900_s22 + $0x90] sm:$0xff] }
  0x16   : > { %495 = vmatpush.bf16.msra.mxu1 %v782_v4  ;;  %v769_v18 = vld [vmem:[%s900_s22 + $0x8] sm:$0xff]  ;;  %v251_v21 = vld [vmem:[%s926_s26 + $0x18] sm:$0xff]  ;;  %v768_v22 = vld [vmem:[%s900_s22] sm:$0xff] }
  0x17   : > { %513 = vmatpush.bf16.msra.mxu2 %v790_v5  ;;  %v777_v19 = vld [vmem:[%s900_s22 + $0x48] sm:$0xff]  ;;  %v776_v23 = vld [vmem:[%s900_s22 + $0x40] sm:$0xff]  ;;  %v659_v27 = vld [vmem:[%s926_s26 + $0xc] sm:$0xf0]  ;;  %v317_v28 = vunpack.c.l.b16 %v251_v21  ;;  %v318_v37 = vunpack.c.h.b16 %v251_v21 }
  0x18   : > { %v785_v20 = vld [vmem:[%s900_s22 + $0x88] sm:$0xff]  ;;  %v657_v24 = vld [vmem:[%s926_s26] sm:$0xf]  ;;  %v765_v26 = vld [vmem:[%s926_s26 + $0x4] sm:$0xf] }
  0x19   : > { %478 = vmatpush.bf16.msra.mxu0 %v773_v6  ;;  %794 = vmatpush.bf16.msra.mxu3 %v773_v6  ;;  %v766_v25 = vld [vmem:[%s926_s26 + $0x8] sm:$0xf0]  ;;  %v784_v29 = vld [vmem:[%s900_s22 + $0x80] sm:$0xff]  ;;  %v665_v30 = vld [vmem:[%s926_s26 + $0x8] sm:$0xf]  ;;  %v662_v33 = vor.u32 %v765_v26, %v659_v27  ;;  %v323_v35 = vpack.c.b16 %v317_v28, %v317_v28  ;;  %v324_v39 = vpack.c.b16 %v318_v37, %v318_v37 }
  0x1a   : > { %496 = vmatpush.bf16.msra.mxu1 %v781_v7  ;;  %v767_v31 = vld [vmem:[%s926_s26 + $0x10] sm:$0xf0]  ;;  %v658_v32 = vor.u32 %v766_v25, %v657_v24  ;;  %v252_v36 = vld [vmem:[%s926_s26 + $0x20] sm:$0xf] }
  0x1b   : > { %514 = vmatpush.bf16.msra.mxu2 %v789_v8  ;;  %v666_v34 = vor.u32 %v767_v31, %v665_v30  ;;  %v319_v38 = vunpack.c.l.b16 %v252_v36 }
  0x1d   : > { %479 = vmatpush.bf16.msra.mxu0 %v772_v9  ;;  %795 = vmatpush.bf16.msra.mxu3 %v772_v9  ;;  %v325_v40 = vpack.c.b16 %v319_v38, %v319_v38 }
  0x1e   : > { %497 = vmatpush.bf16.msra.mxu1 %v780_v10 }
  0x1f   : > { %515 = vmatpush.bf16.msra.mxu2 %v788_v11 }
  0x21   : > { %480 = vmatpush.bf16.msra.mxu0 %v771_v12  ;;  %796 = vmatpush.bf16.msra.mxu3 %v771_v12 }
  0x22   : > { %498 = vmatpush.bf16.msra.mxu1 %v779_v13 }
  0x23   : > { %516 = vmatpush.bf16.msra.mxu2 %v787_v14 }
  0x25   : > { %481 = vmatpush.bf16.msra.mxu0 %v770_v15  ;;  %797 = vmatpush.bf16.msra.mxu3 %v770_v15 }
  0x26   : > { %499 = vmatpush.bf16.msra.mxu1 %v778_v16 }
  0x27   : > { %517 = vmatpush.bf16.msra.mxu2 %v786_v17 }
  0x29   : > { %482 = vmatpush.bf16.msra.mxu0 %v769_v18  ;;  %798 = vmatpush.bf16.msra.mxu3 %v769_v18 }
  0x2a   : > { %500 = vmatpush.bf16.msra.mxu1 %v777_v19 }
  0x2b   : > { %518 = vmatpush.bf16.msra.mxu2 %v785_v20 }
  0x2d   : > { %483 = vmatpush.bf16.msra.mxu0 %v768_v22  ;;  %799 = vmatpush.bf16.msra.mxu3 %v768_v22 }
  0x2e   : > { %501 = vmatpush.bf16.msra.mxu1 %v776_v23 }
  0x2f   : > { %519 = vmatpush.bf16.msra.mxu2 %v784_v29 }
  0x30   : > { %484 = vmatmul.bf16.vlgmr.msra.gmra.mxu0 %v658_v32  ;;  %489 = vmatmul.bf16.vlgmr.msra.gmra.mxu3 %v323_v35 }
  0x31   : > { %502 = vmatmul.bf16.vlgmr.msra.gmra.mxu1 %v662_v33 }
  0x32   : > { %520 = vmatmul.bf16.vlgmr.msra.gmra.mxu2 %v666_v34 }
  0x41   : > { %507 = vmatmul.bf16.gmra.mxu1 %v324_v39 }
  0x42   : > { %525 = vmatmul.bf16.gmra.mxu2 %v325_v40 }
  0xad   : > { %v485_v42 = vpop.f32.mrf.mxu0 }
  0xae   : > { %v503_v43 = vpop.f32.mrf.mxu1  ;;  %v486_v44 = vadd.f32 %v827_v41, %v485_v42 }
  0xb0   : > { %v504_v45 = vadd.f32 %v503_v43, %v486_v44 }
  0xb3   : > { %v490_v47 = vpop.f32.mrf.mxu3 }
  0xb4   : > { %v491_v56 = vadd.f32 %v827_v41, %v490_v47 }
  0xb5   : > { %v521_v46 = vpop.f32.mrf.mxu2  ;;  %v487_v49 = vpop.f32.mrf.mxu0 }
  0xb6   : > { %v522_v48 = vadd.f32 %v521_v46, %v504_v45  ;;  %v505_v50 = vpop.f32.mrf.mxu1  ;;  %v488_v52 = vadd.f32 %v827_v41, %v487_v49 }
  0xb8   : > { %v530_v51 = vmax.f32 %v522_v48, 0.0  ;;  %v506_v53 = vadd.f32 %v505_v50, %v488_v52 }
  0xba   : > { %533 = vst [vmem:[%s245_s5] sm:$0xff] %v530_v51 }
  0xbb   : > { %v492_v55 = vpop.f32.mrf.mxu3 }
  0xbd   : > { %v523_v54 = vpop.f32.mrf.mxu2 }
  0xbe   : > { %v524_v57 = vadd.f32 %v523_v54, %v506_v53  ;;  %v508_v58 = vpop.f32.mrf.mxu1 }
  0xbf   : > { %v509_v60 = vadd.f32 %v508_v58, %v491_v56 }
  0xc0   : > { %v531_v59 = vmax.f32 %v524_v57, 0.0 }
  0xc2   : > { %534 = vst [vmem:[%s245_s5 + $0x8] sm:$0xff] %v531_v59 }
  0xc5   : > { %v526_v61 = vpop.f32.mrf.mxu2 }
  0xc6   : > { %v527_v62 = vadd.f32 %v526_v61, %v509_v60  ;;  %v510_v63 = vpop.f32.mrf.mxu1 }
  0xc8   : > { %v532_v0 = vmax.f32 %v527_v62, 0.0 }
  0xca   : > { %535 = vst [vmem:[%s245_s5 + $0x10] sm:$0xff] %v532_v0 }
  0xcd   : > { %v528_v1 = vpop.f32.mrf.mxu2 }
  0xce PF: > { %s13_s14 = sadd.s32 1, %s850_s14   ;;  %s962_s12 = smov %s846_s13 }
  0xcf   : > { %p10_p5 = scmp.ge.s32.totalorder %s13_s14, 4   ;;  %s963_s13 = smov %s965_s15 }
  0xd1   :  { %12 = sbr.rel (!%p10_p5) target bundleno = 2 (0x2), region = 68 }

// kernel: _lambda_.10
= control target key start
LH: loop header
LB: loop body
LE: loop exit
PB: predicated region body
PF: predicated region fallthrough
CT: control target
= control target key end

     0   :  { %s593_s12 = smov 0   ;;  %s595_s13 = smov 0   ;;  %s638_s0 = inlined_call_operand.vmem [shape: bf16[2,24,128], index: 0, kind: input, shape index: {}]   ;;  %s639_s1 = inlined_call_operand.vmem [shape: bf16[2,128,128], index: 1, kind: input, shape index: {}]   ;;  %s640_s2 = inlined_call_operand.vmem [shape: f32[2,1,128], index: 2, kind: input, shape index: {}]   ;;  %s641_s3 = inlined_call_operand.vmem [shape: f32[2,24,128], index: 3, kind: output, shape index: {}]  }
   0x1   :  { %s597_s14 = smov 0  }
   0x2 LB: > { %s25_s15 = sadd.s32 1, %s567_s13  ;;  %p461_p0 = scmp.ge.s32.totalorder %s571_s14, 1  ;;  %s571_s14 = sphi %s597_s14, %s13_s14   ;;  %s567_s13 = sphi %s595_s13, %s643_s13   ;;  %s563_s12 = sphi %s593_s12, %s642_s12  }
   0x3   : > { %p27_p1 = scmp.ge.s32.totalorder %s25_s15, 2  ;;  %p176_p2 = scmp.lt.s32.totalorder %s571_s14, 3 }
   0x5   : > { %s645_s15 = smov (%p27_p1, %s25_s15), 0  ;;  %p177_p3 = pnand %p461_p0, %p176_p2 }
   0x6   : > { %p217_p4 = scmp.lt.s32.totalorder (!%p177_p3), %s563_s12, 1 }
   0x7   : > { %180 = sbr.rel (%p177_p3) target bundleno = 186 (0xba), region = 32 }
   0xc   : > { %s647_s12 = smov (!%p217_p4, %s563_s12), 1 }
   0xd   : > { %s504_s16 = sshll.u32 %s647_s12, 6  ;;  %s233_s22 = scalar_lea.vmem %s640_s2, %s647_s12 }
   0xe   : > { %s230_s19 = scalar_lea.vmem %s639_s1, %s504_s16  ;;  %s522_s23 = smul.u32 12, %s647_s12  ;;  %v548_v12 = vld [vmem:[%s233_s22] ss:$0 sm:$0xff] }
   0xf   : > { %v513_v0 = vld [vmem:[%s230_s19 + $0x38] sm:$0xff]  ;;  %v512_v1 = vld [vmem:[%s230_s19 + $0x30] sm:$0xff]  ;;  %v511_v2 = vld [vmem:[%s230_s19 + $0x28] sm:$0xff]  ;;  %s523_s27 = smul.u32 24, %s647_s12 }
  0x10   : > { %325 = vmatpush.bf16.msra.mxu0 %v513_v0  ;;  %514 = vmatpush.bf16.msra.mxu1 %v513_v0  ;;  %v510_v3 = vld [vmem:[%s230_s19 + $0x20] sm:$0xff]  ;;  %v509_v4 = vld [vmem:[%s230_s19 + $0x18] sm:$0xff]  ;;  %v508_v5 = vld [vmem:[%s230_s19 + $0x10] sm:$0xff]  ;;  %s224_s26 = scalar_lea.vmem %s638_s0, %s522_s23 }
  0x11   : > { %v507_v6 = vld [vmem:[%s230_s19 + $0x8] sm:$0xff]  ;;  %v506_v9 = vld [vmem:[%s230_s19] sm:$0xff]  ;;  %s242_s30 = scalar_lea.vmem %s641_s3, %s523_s27 }
  0x12   : > { %v246_v7 = vld [vmem:[%s224_s26 + $0x8] sm:$0xf]  ;;  %v505_v10 = vld [vmem:[%s224_s26] sm:$0xff] }
  0x13   : > { %v272_v8 = vunpack.c.l.b16 %v246_v7 }
  0x14   : > { %326 = vmatpush.bf16.msra.mxu0 %v512_v1  ;;  %515 = vmatpush.bf16.msra.mxu1 %v512_v1 }
  0x15   : > { %v274_v11 = vpack.c.b16 %v272_v8, %v272_v8 }
  0x18   : > { %327 = vmatpush.bf16.msra.mxu0 %v511_v2  ;;  %516 = vmatpush.bf16.msra.mxu1 %v511_v2 }
  0x1c   : > { %328 = vmatpush.bf16.msra.mxu0 %v510_v3  ;;  %517 = vmatpush.bf16.msra.mxu1 %v510_v3 }
  0x20   : > { %329 = vmatpush.bf16.msra.mxu0 %v509_v4  ;;  %518 = vmatpush.bf16.msra.mxu1 %v509_v4 }
  0x24   : > { %330 = vmatpush.bf16.msra.mxu0 %v508_v5  ;;  %519 = vmatpush.bf16.msra.mxu1 %v508_v5 }
  0x28   : > { %331 = vmatpush.bf16.msra.mxu0 %v507_v6  ;;  %520 = vmatpush.bf16.msra.mxu1 %v507_v6 }
  0x2c   : > { %332 = vmatpush.bf16.msra.mxu0 %v506_v9  ;;  %521 = vmatpush.bf16.msra.mxu1 %v506_v9 }
  0x2f   : > { %333 = vmatmul.bf16.vlgmr.msra.gmra.mxu0 %v505_v10  ;;  %338 = vmatmul.bf16.vlgmr.msra.gmra.mxu1 %v274_v11 }
  0xac   : > { %v334_v13 = vpop.f32.mrf.mxu0  ;;  %v339_v14 = vpop.f32.mrf.mxu1 }
  0xad   : > { %v335_v15 = vadd.f32 %v548_v12, %v334_v13  ;;  %v340_v16 = vadd.f32 %v548_v12, %v339_v14 }
  0xaf   : > { %v343_v17 = vmax.f32 %v335_v15, 0.0  ;;  %v345_v18 = vmax.f32 %v340_v16, 0.0 }
  0xb1   : > { %346 = vst [vmem:[%s242_s30] sm:$0xff] %v343_v17 }
  0xb2   : > { %348 = vst [vmem:[%s242_s30 + $0x10] sm:$0xff] %v345_v18 }
  0xb4   : > { %v336_v19 = vpop.f32.mrf.mxu0  ;;  %v341_v20 = vpop.f32.mrf.mxu1 }
  0xb5   : > { %v337_v21 = vadd.f32 %v548_v12, %v336_v19 }
  0xb7   : > { %v344_v22 = vmax.f32 %v337_v21, 0.0 }
  0xb9   : > { %347 = vst [vmem:[%s242_s30 + $0x8] sm:$0xff] %v344_v22 }
  0xba PF: > { %s13_s14 = sadd.s32 1, %s571_s14   ;;  %s642_s12 = smov %s567_s13 }
  0xbb   : > { %p10_p5 = scmp.ge.s32.totalorder %s13_s14, 4   ;;  %s643_s13 = smov %s645_s15 }
  0xbd   :  { %12 = sbr.rel (!%p10_p5) target bundleno = 2 (0x2), region = 68 }

// kernel: _lambda_.11
= control target key start
LH: loop header
LB: loop body
LE: loop exit
PB: predicated region body
PF: predicated region fallthrough
CT: control target
= control target key end

     0   :  { %s843_s12 = smov 0   ;;  %s845_s13 = smov 0   ;;  %s962_s0 = inlined_call_operand.vmem [shape: bf16[1,384,128], index: 0, kind: input, shape index: {}]   ;;  %s963_s1 = inlined_call_operand.vmem [shape: bf16[1,128,128], index: 1, kind: input, shape index: {}]   ;;  %s964_s2 = inlined_call_operand.vmem [shape: f32[1,1,128], index: 2, kind: input, shape index: {}]   ;;  %s965_s3 = inlined_call_operand.vmem [shape: f32[1,384,128], index: 3, kind: output, shape index: {}]  }
   0x1   :  { %s847_s14 = smov 0  }
   0x2 LB: > { %s22_s15 = sadd.s32 1, %s817_s13  ;;  %p645_p0 = scmp.ge.s32.totalorder %s821_s14, 1  ;;  %s821_s14 = sphi %s847_s14, %s13_s14   ;;  %s817_s13 = sphi %s845_s13, %s967_s13   ;;  %s813_s12 = sphi %s843_s12, %s966_s12  }
   0x3   : > { %p23_p1 = scmp.ge.s32.totalorder %s22_s15, 2  ;;  %p176_p2 = scmp.lt.s32.totalorder %s821_s14, 3 }
   0x5   : > { %s969_s15 = smov (%p23_p1, %s22_s15), 0  ;;  %p177_p3 = pnand %p645_p0, %p176_p2 }
   0x6   : > { %s216_s24 = smul.u32 (!%p177_p3), 24, %s813_s12 }
   0x7   : > { %180 = sbr.rel (%p177_p3) target bundleno = 223 (0xdf), region = 32 }
   0x8   : > { %p219_p4 = scmp.lt.s32.totalorder (!%p177_p3), %s216_s24, 47 }
   0xc   : > { %v749_v0 = vld [vmem:[%s963_s1 + $0x38] sm:$0xff]  ;;  %v748_v1 = vld [vmem:[%s963_s1 + $0x30] sm:$0xff]  ;;  %v747_v2 = vld [vmem:[%s963_s1 + $0x28] sm:$0xff]  ;;  %s971_s24 = smov (!%p219_p4, %s216_s24), 47 }
   0xd   : > { %408 = vmatpush.bf16.msra.mxu0 %v749_v0  ;;  %750 = vmatpush.bf16.msra.mxu1 %v749_v0  ;;  %v746_v3 = vld [vmem:[%s963_s1 + $0x20] sm:$0xff]  ;;  %v745_v4 = vld [vmem:[%s963_s1 + $0x18] sm:$0xff]  ;;  %v744_v5 = vld [vmem:[%s963_s1 + $0x10] sm:$0xff]  ;;  %s646_s4 = sshll.u32 %s971_s24, 2  ;;  %s647_s12 = sshll.u32 %s971_s24, 3 }
   0xe   : > { %751 = vmatpush.bf16.msra.mxu2 %v749_v0  ;;  %752 = vmatpush.bf16.msra.mxu3 %v749_v0  ;;  %v743_v6 = vld [vmem:[%s963_s1 + $0x8] sm:$0xff]  ;;  %v742_v7 = vld [vmem:[%s963_s1] sm:$0xff]  ;;  %s224_s9 = scalar_lea.vmem %s962_s0, %s646_s4  ;;  %s905_s18 = scalar_lea.vmem %s965_s3, %s647_s12 }
   0xf   : > { %v730_v8 = vld [vmem:[%s224_s9] sm:$0xff]  ;;  %v733_v9 = vld [vmem:[%s224_s9 + $0x18] sm:$0xff]  ;;  %v736_v10 = vld [vmem:[%s224_s9 + $0x30] sm:$0xff] }
  0x10   : > { %v739_v11 = vld [vmem:[%s224_s9 + $0x48] sm:$0xff]  ;;  %v734_v13 = vld [vmem:[%s224_s9 + $0x20] sm:$0xff]  ;;  %v737_v14 = vld [vmem:[%s224_s9 + $0x38] sm:$0xff] }
  0x11   : > { %409 = vmatpush.bf16.msra.mxu0 %v748_v1  ;;  %753 = vmatpush.bf16.msra.mxu1 %v748_v1  ;;  %v731_v12 = vld [vmem:[%s224_s9 + $0x8] sm:$0xff]  ;;  %v740_v15 = vld [vmem:[%s224_s9 + $0x50] sm:$0xff]  ;;  %v738_v18 = vld [vmem:[%s224_s9 + $0x40] sm:$0xff] }
  0x12   : > { %754 = vmatpush.bf16.msra.mxu2 %v748_v1  ;;  %755 = vmatpush.bf16.msra.mxu3 %v748_v1  ;;  %v732_v16 = vld [vmem:[%s224_s9 + $0x10] sm:$0xff]  ;;  %v735_v17 = vld [vmem:[%s224_s9 + $0x28] sm:$0xff]  ;;  %v741_v19 = vld [vmem:[%s224_s9 + $0x58] sm:$0xff] }
  0x13   : > { %v897_v20 = vld [vmem:[%s964_s2] ss:$0 sm:$0xff] }
  0x15   : > { %410 = vmatpush.bf16.msra.mxu0 %v747_v2  ;;  %756 = vmatpush.bf16.msra.mxu1 %v747_v2 }
  0x16   : > { %757 = vmatpush.bf16.msra.mxu2 %v747_v2  ;;  %758 = vmatpush.bf16.msra.mxu3 %v747_v2 }
  0x19   : > { %411 = vmatpush.bf16.msra.mxu0 %v746_v3  ;;  %759 = vmatpush.bf16.msra.mxu1 %v746_v3 }
  0x1a   : > { %760 = vmatpush.bf16.msra.mxu2 %v746_v3  ;;  %761 = vmatpush.bf16.msra.mxu3 %v746_v3 }
  0x1d   : > { %412 = vmatpush.bf16.msra.mxu0 %v745_v4  ;;  %762 = vmatpush.bf16.msra.mxu1 %v745_v4 }
  0x1e   : > { %763 = vmatpush.bf16.msra.mxu2 %v745_v4  ;;  %764 = vmatpush.bf16.msra.mxu3 %v745_v4 }
  0x21   : > { %413 = vmatpush.bf16.msra.mxu0 %v744_v5  ;;  %765 = vmatpush.bf16.msra.mxu1 %v744_v5 }
  0x22   : > { %766 = vmatpush.bf16.msra.mxu2 %v744_v5  ;;  %767 = vmatpush.bf16.msra.mxu3 %v744_v5 }
  0x25   : > { %414 = vmatpush.bf16.msra.mxu0 %v743_v6  ;;  %768 = vmatpush.bf16.msra.mxu1 %v743_v6 }
  0x26   : > { %769 = vmatpush.bf16.msra.mxu2 %v743_v6  ;;  %770 = vmatpush.bf16.msra.mxu3 %v743_v6 }
  0x29   : > { %415 = vmatpush.bf16.msra.mxu0 %v742_v7  ;;  %771 = vmatpush.bf16.msra.mxu1 %v742_v7 }
  0x2a   : > { %772 = vmatpush.bf16.msra.mxu2 %v742_v7  ;;  %773 = vmatpush.bf16.msra.mxu3 %v742_v7 }
  0x2c   : > { %416 = vmatmul.bf16.vlgmr.msra.gmra.mxu0 %v730_v8  ;;  %431 = vmatmul.bf16.vlgmr.msra.gmra.mxu1 %v733_v9 }
  0x2d   : > { %446 = vmatmul.bf16.vlgmr.msra.gmra.mxu2 %v736_v10  ;;  %461 = vmatmul.bf16.vlgmr.msra.gmra.mxu3 %v739_v11 }
  0x3c   : > { %421 = vmatmul.bf16.gmra.mxu0 %v731_v12  ;;  %436 = vmatmul.bf16.gmra.mxu1 %v734_v13 }
  0x3d   : > { %451 = vmatmul.bf16.gmra.mxu2 %v737_v14  ;;  %466 = vmatmul.bf16.gmra.mxu3 %v740_v15 }
  0x4c   : > { %426 = vmatmul.bf16.gmra.mxu0 %v732_v16  ;;  %441 = vmatmul.bf16.gmra.mxu1 %v735_v17 }
  0x4d   : > { %456 = vmatmul.bf16.gmra.mxu2 %v738_v18  ;;  %471 = vmatmul.bf16.gmra.mxu3 %v741_v19 }
  0xa9   : > { %v417_v21 = vpop.f32.mrf.mxu0  ;;  %v432_v22 = vpop.f32.mrf.mxu1 }
  0xaa   : > { %v418_v23 = vadd.f32 %v897_v20, %v417_v21  ;;  %v433_v24 = vadd.f32 %v897_v20, %v432_v22 }
  0xac   : > { %v477_v25 = vmax.f32 %v418_v23, 0.0  ;;  %v483_v26 = vmax.f32 %v433_v24, 0.0 }
  0xae   : > { %501 = vst [vmem:[%s905_s18] sm:$0xff] %v477_v25 }
  0xaf   : > { %507 = vst [vmem:[%s905_s18 + $0x30] sm:$0xff] %v483_v26 }
  0xb0   : > { %v447_v27 = vpop.f32.mrf.mxu2  ;;  %v462_v28 = vpop.f32.mrf.mxu3 }
  0xb1   : > { %v448_v29 = vadd.f32 %v897_v20, %v447_v27  ;;  %v463_v30 = vadd.f32 %v897_v20, %v462_v28  ;;  %v419_v31 = vpop.f32.mrf.mxu0  ;;  %v434_v32 = vpop.f32.mrf.mxu1 }
  0xb2   : > { %v420_v33 = vadd.f32 %v897_v20, %v419_v31  ;;  %v435_v34 = vadd.f32 %v897_v20, %v434_v32 }
  0xb3   : > { %v489_v35 = vmax.f32 %v448_v29, 0.0  ;;  %v495_v36 = vmax.f32 %v463_v30, 0.0 }
  0xb4   : > { %v478_v37 = vmax.f32 %v420_v33, 0.0  ;;  %v484_v38 = vmax.f32 %v435_v34, 0.0 }
  0xb5   : > { %513 = vst [vmem:[%s905_s18 + $0x60] sm:$0xff] %v489_v35 }
  0xb6   : > { %519 = vst [vmem:[%s905_s18 + $0x90] sm:$0xff] %v495_v36 }
  0xb7   : > { %502 = vst [vmem:[%s905_s18 + $0x8] sm:$0xff] %v478_v37 }
  0xb8   : > { %508 = vst [vmem:[%s905_s18 + $0x38] sm:$0xff] %v484_v38  ;;  %v449_v39 = vpop.f32.mrf.mxu2  ;;  %v464_v40 = vpop.f32.mrf.mxu3 }
  0xb9   : > { %v450_v41 = vadd.f32 %v897_v20, %v449_v39  ;;  %v465_v42 = vadd.f32 %v897_v20, %v464_v40  ;;  %v422_v43 = vpop.f32.mrf.mxu0  ;;  %v437_v44 = vpop.f32.mrf.mxu1 }
  0xba   : > { %v423_v45 = vadd.f32 %v897_v20, %v422_v43  ;;  %v438_v46 = vadd.f32 %v897_v20, %v437_v44 }
  0xbb   : > { %v490_v47 = vmax.f32 %v450_v41, 0.0  ;;  %v496_v48 = vmax.f32 %v465_v42, 0.0 }
  0xbc   : > { %v479_v49 = vmax.f32 %v423_v45, 0.0  ;;  %v485_v50 = vmax.f32 %v438_v46, 0.0 }
  0xbd   : > { %514 = vst [vmem:[%s905_s18 + $0x68] sm:$0xff] %v490_v47 }
  0xbe   : > { %520 = vst [vmem:[%s905_s18 + $0x98] sm:$0xff] %v496_v48 }
  0xbf   : > { %503 = vst [vmem:[%s905_s18 + $0x10] sm:$0xff] %v479_v49 }
  0xc0   : > { %509 = vst [vmem:[%s905_s18 + $0x40] sm:$0xff] %v485_v50  ;;  %v452_v51 = vpop.f32.mrf.mxu2  ;;  %v467_v52 = vpop.f32.mrf.mxu3 }
  0xc1   : > { %v453_v53 = vadd.f32 %v897_v20, %v452_v51  ;;  %v468_v54 = vadd.f32 %v897_v20, %v467_v52  ;;  %v424_v55 = vpop.f32.mrf.mxu0  ;;  %v439_v56 = vpop.f32.mrf.mxu1 }
  0xc2   : > { %v425_v57 = vadd.f32 %v897_v20, %v424_v55  ;;  %v440_v58 = vadd.f32 %v897_v20, %v439_v56 }
  0xc3   : > { %v491_v59 = vmax.f32 %v453_v53, 0.0  ;;  %v497_v60 = vmax.f32 %v468_v54, 0.0 }
  0xc4   : > { %v480_v61 = vmax.f32 %v425_v57, 0.0  ;;  %v486_v62 = vmax.f32 %v440_v58, 0.0 }
  0xc5   : > { %515 = vst [vmem:[%s905_s18 + $0x70] sm:$0xff] %v491_v59 }
  0xc6   : > { %521 = vst [vmem:[%s905_s18 + $0xa0] sm:$0xff] %v497_v60 }
  0xc7   : > { %504 = vst [vmem:[%s905_s18 + $0x18] sm:$0xff] %v480_v61 }
  0xc8   : > { %510 = vst [vmem:[%s905_s18 + $0x48] sm:$0xff] %v486_v62  ;;  %v454_v63 = vpop.f32.mrf.mxu2  ;;  %v469_v0 = vpop.f32.mrf.mxu3 }
  0xc9   : > { %v455_v1 = vadd.f32 %v897_v20, %v454_v63  ;;  %v470_v2 = vadd.f32 %v897_v20, %v469_v0  ;;  %v427_v3 = vpop.f32.mrf.mxu0  ;;  %v442_v4 = vpop.f32.mrf.mxu1 }
  0xca   : > { %v428_v5 = vadd.f32 %v897_v20, %v427_v3  ;;  %v443_v6 = vadd.f32 %v897_v20, %v442_v4 }
  0xcb   : > { %v492_v7 = vmax.f32 %v455_v1, 0.0  ;;  %v498_v8 = vmax.f32 %v470_v2, 0.0 }
  0xcc   : > { %v481_v9 = vmax.f32 %v428_v5, 0.0  ;;  %v487_v10 = vmax.f32 %v443_v6, 0.0 }
  0xcd   : > { %516 = vst [vmem:[%s905_s18 + $0x78] sm:$0xff] %v492_v7 }
  0xce   : > { %522 = vst [vmem:[%s905_s18 + $0xa8] sm:$0xff] %v498_v8 }
  0xcf   : > { %505 = vst [vmem:[%s905_s18 + $0x20] sm:$0xff] %v481_v9 }
  0xd0   : > { %511 = vst [vmem:[%s905_s18 + $0x50] sm:$0xff] %v487_v10  ;;  %v457_v11 = vpop.f32.mrf.mxu2  ;;  %v472_v12 = vpop.f32.mrf.mxu3 }
  0xd1   : > { %v458_v13 = vadd.f32 %v897_v20, %v457_v11  ;;  %v473_v14 = vadd.f32 %v897_v20, %v472_v12  ;;  %v429_v15 = vpop.f32.mrf.mxu0  ;;  %v444_v16 = vpop.f32.mrf.mxu1 }
  0xd2   : > { %v430_v17 = vadd.f32 %v897_v20, %v429_v15  ;;  %v445_v18 = vadd.f32 %v897_v20, %v444_v16 }
  0xd3   : > { %v493_v19 = vmax.f32 %v458_v13, 0.0  ;;  %v499_v21 = vmax.f32 %v473_v14, 0.0 }
  0xd4   : > { %v482_v22 = vmax.f32 %v430_v17, 0.0  ;;  %v488_v23 = vmax.f32 %v445_v18, 0.0 }
  0xd5   : > { %517 = vst [vmem:[%s905_s18 + $0x80] sm:$0xff] %v493_v19 }
  0xd6   : > { %523 = vst [vmem:[%s905_s18 + $0xb0] sm:$0xff] %v499_v21 }
  0xd7   : > { %506 = vst [vmem:[%s905_s18 + $0x28] sm:$0xff] %v482_v22 }
  0xd8   : > { %512 = vst [vmem:[%s905_s18 + $0x58] sm:$0xff] %v488_v23  ;;  %v459_v24 = vpop.f32.mrf.mxu2  ;;  %v474_v25 = vpop.f32.mrf.mxu3 }
  0xd9   : > { %v460_v26 = vadd.f32 %v897_v20, %v459_v24  ;;  %v475_v27 = vadd.f32 %v897_v20, %v474_v25 }
  0xdb   : > { %v494_v28 = vmax.f32 %v460_v26, 0.0  ;;  %v500_v29 = vmax.f32 %v475_v27, 0.0 }
  0xdd   : > { %518 = vst [vmem:[%s905_s18 + $0x88] sm:$0xff] %v494_v28 }
  0xde   : > { %524 = vst [vmem:[%s905_s18 + $0xb8] sm:$0xff] %v500_v29 }
  0xdf PF: > { %s13_s14 = sadd.s32 1, %s821_s14   ;;  %s966_s12 = smov %s817_s13 }
  0xe0   : > { %p10_p5 = scmp.ge.s32.totalorder %s13_s14, 4   ;;  %s967_s13 = smov %s969_s15 }
  0xe2   :  { %12 = sbr.rel (!%p10_p5) target bundleno = 2 (0x2), region = 68 }

// kernel: squeeze.0
= control target key start
LH: loop header
LB: loop body
LE: loop exit
PB: predicated region body
PF: predicated region fallthrough
CT: control target
= control target key end

     0   :  { %vm33_vm0 = vcmask 523264   ;;  %s136_s0 = inlined_call_operand.vmem [shape: bf16[1,6,192], index: 0, kind: input, shape index: {}]   ;;  %s137_s1 = inlined_call_operand.vmem [shape: bf16[2,3,1,3,64], index: 1, kind: output, shape index: {}]  }
   0x1   :  { %v100_v0 = vld [vmem:[%s136_s0] sm:$0xff]   ;;  %s104_s0 = smov 64  }
   0x2   :  { %v101_v1 = vunpack.c.l.bf16 %v100_v0  ;;  %v102_v2 = vunpack.c.h.bf16 %v100_v0 }
   0x4   :  { %18 = vst [vmem:[#allocation1 + $0x8] sm:$0xff] %v102_v2 }
   0x5   :  { %31 = vst [vmem:[#allocation1] sm:$0xff] %v101_v1 }
   0xb   :  { %v37_v3 = vld [vmem:[#allocation1 + $0x8] sm:$0x3f]  }
   0xc   :  { %v32_v4 = vld [vmem:[#allocation1] sm:$0x3f]   ;;  %40 = vst.msk [vmem:[#allocation0 + $0x2] ss:$8 sm:$0xf] %vm33_vm0, %v37_v3  }
   0xd   :  { %34 = vst.msk [vmem:[#allocation0] ss:$8 sm:$0xf] %vm33_vm0, %v32_v4   ;;  %v43_v5 = vld [vmem:[#allocation1] sm:$0x3f]  }
   0xe   :  { %35 = vst.msk [vmem:[#allocation0] ss:$8 sm:$0x30] %vm33_vm0, %v32_v4   ;;  %44 = vrot.lane.b32.xlu0 %v43_v5, %s104_s0 }
   0xf   :  { %42 = vst.msk [vmem:[#allocation0 + $0x2] ss:$8 sm:$0x30] %vm33_vm0, %v37_v3  }
  0x80   :  { %v45_v6 = vpop.permute.xlu0 %44  }
  0x81   :  { %48 = vst.msk [vmem:[#allocation0 + $0x1] ss:$8 sm:$0xf] %vm33_vm0, %v45_v6  }
  0x82   :  { %50 = vst.msk [vmem:[#allocation0 + $0x1] ss:$8 sm:$0x30] %vm33_vm0, %v45_v6  }
  0x88   :  { %v53_v7 = vld [vmem:[#allocation0] sm:$0xf]  ;;  %v59_v8 = vld [vmem:[#allocation0 + $0x8] sm:$0xf]  ;;  %v66_v9 = vld [vmem:[#allocation0 + $0x10] sm:$0xf] }
  0x89   :  { %v54_v10 = vpack.c.bf16 0.0, %v53_v7  ;;  %v60_v11 = vpack.c.bf16 0.0, %v59_v8  ;;  %v67_v12 = vpack.c.bf16 0.0, %v66_v9  ;;  %v73_v13 = vld [vmem:[#allocation0 + $0x18] sm:$0xf] }
  0x8a   :  { %v74_v14 = vpack.c.bf16 0.0, %v73_v13  ;;  %v80_v15 = vld [vmem:[#allocation0 + $0x20] sm:$0xf]  ;;  %v87_v16 = vld [vmem:[#allocation0 + $0x28] sm:$0xf] }
  0x8b   :  { %57 = vst [vmem:[%s137_s1] sm:$0x3] %v54_v10  ;;  %v81_v17 = vpack.c.bf16 0.0, %v80_v15  ;;  %v88_v18 = vpack.c.bf16 0.0, %v87_v16 }
  0x8c   :  { %94 = vst [vmem:[%s137_s1 + $0x2] sm:$0x3] %v60_v11 }
  0x8d   :  { %95 = vst [vmem:[%s137_s1 + $0x4] sm:$0x3] %v67_v12 }
  0x8e   :  { %96 = vst [vmem:[%s137_s1 + $0x6] sm:$0x3] %v74_v14 }
  0x8f   :  { %97 = vst [vmem:[%s137_s1 + $0x8] sm:$0x3] %v81_v17 }
  0x90   :  { %98 = vst [vmem:[%s137_s1 + $0xa] sm:$0x3] %v88_v18 }

// kernel: _lambda_.12
= control target key start
LH: loop header
LB: loop body
LE: loop exit
PB: predicated region body
PF: predicated region fallthrough
CT: control target
= control target key end

     0   :  { %s888_s1 = inlined_call_operand.vmem [shape: bf16[1,512,128], index: 1, kind: input, shape index: {}]   ;;  %s889_s2 = inlined_call_operand.vmem [shape: f32[1,1,128], index: 2, kind: input, shape index: {}]   ;;  %s890_s0 = inlined_call_operand.vmem [shape: bf16[1,48,512], index: 0, kind: input, shape index: {}]   ;;  %s891_s3 = inlined_call_operand.vmem [shape: f32[1,48,128], index: 3, kind: output, shape index: {}]  }
   0x1   :  { %v653_v0 = vld [vmem:[%s888_s1 + $0x38] sm:$0xff]  ;;  %v652_v4 = vld [vmem:[%s888_s1 + $0x30] sm:$0xff]  ;;  %v651_v8 = vld [vmem:[%s888_s1 + $0x28] sm:$0xff] }
   0x2   :  { %v661_v1 = vld [vmem:[%s888_s1 + $0x78] sm:$0xff]  ;;  %346 = vmatpush.bf16.msra.mxu0 %v653_v0  ;;  %v660_v5 = vld [vmem:[%s888_s1 + $0x70] sm:$0xff]  ;;  %v659_v9 = vld [vmem:[%s888_s1 + $0x68] sm:$0xff] }
   0x3   :  { %v669_v2 = vld [vmem:[%s888_s1 + $0xb8] sm:$0xff]  ;;  %370 = vmatpush.bf16.msra.mxu1 %v661_v1  ;;  %v668_v6 = vld [vmem:[%s888_s1 + $0xb0] sm:$0xff]  ;;  %v667_v10 = vld [vmem:[%s888_s1 + $0xa8] sm:$0xff] }
   0x4   :  { %v677_v3 = vld [vmem:[%s888_s1 + $0xf8] sm:$0xff]  ;;  %394 = vmatpush.bf16.msra.mxu2 %v669_v2  ;;  %v676_v7 = vld [vmem:[%s888_s1 + $0xf0] sm:$0xff]  ;;  %v675_v11 = vld [vmem:[%s888_s1 + $0xe8] sm:$0xff] }
   0x5   :  { %418 = vmatpush.bf16.msra.mxu3 %v677_v3  ;;  %v650_v12 = vld [vmem:[%s888_s1 + $0x20] sm:$0xff]  ;;  %v649_v16 = vld [vmem:[%s888_s1 + $0x18] sm:$0xff]  ;;  %v648_v20 = vld [vmem:[%s888_s1 + $0x10] sm:$0xff] }
   0x6   :  { %347 = vmatpush.bf16.msra.mxu0 %v652_v4  ;;  %v658_v13 = vld [vmem:[%s888_s1 + $0x60] sm:$0xff]  ;;  %v657_v17 = vld [vmem:[%s888_s1 + $0x58] sm:$0xff]  ;;  %v656_v21 = vld [vmem:[%s888_s1 + $0x50] sm:$0xff] }
   0x7   :  { %371 = vmatpush.bf16.msra.mxu1 %v660_v5  ;;  %v666_v14 = vld [vmem:[%s888_s1 + $0xa0] sm:$0xff]  ;;  %v665_v18 = vld [vmem:[%s888_s1 + $0x98] sm:$0xff]  ;;  %v664_v22 = vld [vmem:[%s888_s1 + $0x90] sm:$0xff] }
   0x8   :  { %395 = vmatpush.bf16.msra.mxu2 %v668_v6  ;;  %v674_v15 = vld [vmem:[%s888_s1 + $0xe0] sm:$0xff]  ;;  %v673_v19 = vld [vmem:[%s888_s1 + $0xd8] sm:$0xff]  ;;  %v672_v23 = vld [vmem:[%s888_s1 + $0xd0] sm:$0xff] }
   0x9   :  { %419 = vmatpush.bf16.msra.mxu3 %v676_v7  ;;  %v647_v24 = vld [vmem:[%s888_s1 + $0x8] sm:$0xff]  ;;  %v646_v28 = vld [vmem:[%s888_s1] sm:$0xff]  ;;  %v636_v33 = vld [vmem:[%s890_s0 + $0xc] sm:$0xf0] }
   0xa   :  { %348 = vmatpush.bf16.msra.mxu0 %v651_v8  ;;  %v655_v25 = vld [vmem:[%s888_s1 + $0x48] sm:$0xff]  ;;  %v654_v29 = vld [vmem:[%s888_s1 + $0x40] sm:$0xff]  ;;  %v462_v35 = vld [vmem:[%s890_s0 + $0x10] sm:$0xf0] }
   0xb   :  { %372 = vmatpush.bf16.msra.mxu1 %v659_v9  ;;  %v663_v26 = vld [vmem:[%s888_s1 + $0x88] sm:$0xff]  ;;  %v662_v30 = vld [vmem:[%s888_s1 + $0x80] sm:$0xff]  ;;  %v637_v37 = vld [vmem:[%s890_s0 + $0x14] sm:$0xf0] }
   0xc   :  { %396 = vmatpush.bf16.msra.mxu2 %v667_v10  ;;  %v671_v27 = vld [vmem:[%s888_s1 + $0xc8] sm:$0xff]  ;;  %v670_v31 = vld [vmem:[%s888_s1 + $0xc0] sm:$0xff]  ;;  %v470_v39 = vld [vmem:[%s890_s0 + $0x18] sm:$0xf0] }
   0xd   :  { %420 = vmatpush.bf16.msra.mxu3 %v675_v11  ;;  %v460_v32 = vld [vmem:[%s890_s0] sm:$0xf]  ;;  %v634_v34 = vld [vmem:[%s890_s0 + $0x4] sm:$0xf]  ;;  %v468_v36 = vld [vmem:[%s890_s0 + $0x8] sm:$0xf] }
   0xe   :  { %349 = vmatpush.bf16.msra.mxu0 %v650_v12  ;;  %v635_v38 = vld [vmem:[%s890_s0 + $0xc] sm:$0xf]  ;;  %v461_v40 = vor.u32 %v636_v33, %v460_v32  ;;  %v465_v41 = vor.u32 %v634_v34, %v462_v35  ;;  %v469_v42 = vor.u32 %v637_v37, %v468_v36  ;;  %v476_v44 = vld [vmem:[%s890_s0 + $0x20] sm:$0xf]  ;;  %v640_v45 = vld [vmem:[%s890_s0 + $0x2c] sm:$0xf0] }
   0xf   :  { %373 = vmatpush.bf16.msra.mxu1 %v658_v13  ;;  %v473_v43 = vor.u32 %v635_v38, %v470_v39  ;;  %v638_v46 = vld [vmem:[%s890_s0 + $0x24] sm:$0xf]  ;;  %v478_v47 = vld [vmem:[%s890_s0 + $0x30] sm:$0xf0]  ;;  %v484_v48 = vld [vmem:[%s890_s0 + $0x28] sm:$0xf]  ;;  %v477_v52 = vor.u32 %v640_v45, %v476_v44 }
  0x10   :  { %397 = vmatpush.bf16.msra.mxu2 %v666_v14  ;;  %v641_v49 = vld [vmem:[%s890_s0 + $0x34] sm:$0xf0]  ;;  %v639_v50 = vld [vmem:[%s890_s0 + $0x2c] sm:$0xf]  ;;  %v486_v51 = vld [vmem:[%s890_s0 + $0x38] sm:$0xf0]  ;;  %v481_v53 = vor.u32 %v638_v46, %v478_v47 }
  0x11   :  { %421 = vmatpush.bf16.msra.mxu3 %v674_v15  ;;  %v485_v54 = vor.u32 %v641_v49, %v484_v48  ;;  %v489_v55 = vor.u32 %v639_v50, %v486_v51  ;;  %v492_v56 = vld [vmem:[%s890_s0 + $0x40] sm:$0xf]  ;;  %v644_v57 = vld [vmem:[%s890_s0 + $0x4c] sm:$0xf0]  ;;  %v642_v58 = vld [vmem:[%s890_s0 + $0x44] sm:$0xf] }
  0x12   :  { %350 = vmatpush.bf16.msra.mxu0 %v649_v16  ;;  %v494_v59 = vld [vmem:[%s890_s0 + $0x50] sm:$0xf0]  ;;  %v500_v60 = vld [vmem:[%s890_s0 + $0x48] sm:$0xf]  ;;  %v645_v61 = vld [vmem:[%s890_s0 + $0x54] sm:$0xf0]  ;;  %v493_v0 = vor.u32 %v644_v57, %v492_v56 }
  0x13   :  { %374 = vmatpush.bf16.msra.mxu1 %v657_v17  ;;  %v643_v62 = vld [vmem:[%s890_s0 + $0x4c] sm:$0xf]  ;;  %v502_v63 = vld [vmem:[%s890_s0 + $0x58] sm:$0xf0]  ;;  %v497_v1 = vor.u32 %v642_v58, %v494_v59  ;;  %v501_v2 = vor.u32 %v645_v61, %v500_v60  ;;  %v678_v4 = vld [vmem:[%s889_s2] ss:$0 sm:$0xff] }
  0x14   :  { %398 = vmatpush.bf16.msra.mxu2 %v665_v18  ;;  %v505_v3 = vor.u32 %v643_v62, %v502_v63 }
  0x15   :  { %422 = vmatpush.bf16.msra.mxu3 %v673_v19 }
  0x16   :  { %351 = vmatpush.bf16.msra.mxu0 %v648_v20 }
  0x17   :  { %375 = vmatpush.bf16.msra.mxu1 %v656_v21 }
  0x18   :  { %399 = vmatpush.bf16.msra.mxu2 %v664_v22 }
  0x19   :  { %423 = vmatpush.bf16.msra.mxu3 %v672_v23 }
  0x1a   :  { %352 = vmatpush.bf16.msra.mxu0 %v647_v24 }
  0x1b   :  { %376 = vmatpush.bf16.msra.mxu1 %v655_v25 }
  0x1c   :  { %400 = vmatpush.bf16.msra.mxu2 %v663_v26 }
  0x1d   :  { %424 = vmatpush.bf16.msra.mxu3 %v671_v27 }
  0x1e   :  { %353 = vmatpush.bf16.msra.mxu0 %v646_v28 }
  0x1f   :  { %377 = vmatpush.bf16.msra.mxu1 %v654_v29 }
  0x20   :  { %401 = vmatpush.bf16.msra.mxu2 %v662_v30 }
  0x21   :  { %425 = vmatpush.bf16.msra.mxu3 %v670_v31  ;;  %354 = vmatmul.bf16.vlgmr.msra.gmra.mxu0 %v461_v40 }
  0x22   :  { %378 = vmatmul.bf16.vlgmr.msra.gmra.mxu1 %v465_v41 }
  0x23   :  { %402 = vmatmul.bf16.vlgmr.msra.gmra.mxu2 %v469_v42 }
  0x24   :  { %426 = vmatmul.bf16.vlgmr.msra.gmra.mxu3 %v473_v43 }
  0x31   :  { %359 = vmatmul.bf16.gmra.mxu0 %v477_v52 }
  0x32   :  { %383 = vmatmul.bf16.gmra.mxu1 %v481_v53 }
  0x33   :  { %407 = vmatmul.bf16.gmra.mxu2 %v485_v54 }
  0x34   :  { %431 = vmatmul.bf16.gmra.mxu3 %v489_v55 }
  0x41   :  { %364 = vmatmul.bf16.gmra.mxu0 %v493_v0 }
  0x42   :  { %388 = vmatmul.bf16.gmra.mxu1 %v497_v1 }
  0x43   :  { %412 = vmatmul.bf16.gmra.mxu2 %v501_v2 }
  0x44   :  { %436 = vmatmul.bf16.gmra.mxu3 %v505_v3 }
  0x9e   :  { %v355_v5 = vpop.f32.mrf.mxu0 }
  0x9f   :  { %v379_v6 = vpop.f32.mrf.mxu1  ;;  %v356_v7 = vadd.f32 %v678_v4, %v355_v5 }
  0xa1   :  { %v380_v8 = vadd.f32 %v379_v6, %v356_v7 }
  0xa6   :  { %v403_v9 = vpop.f32.mrf.mxu2  ;;  %v357_v12 = vpop.f32.mrf.mxu0 }
  0xa7   :  { %v427_v10 = vpop.f32.mrf.mxu3  ;;  %v404_v11 = vadd.f32 %v403_v9, %v380_v8  ;;  %v381_v13 = vpop.f32.mrf.mxu1  ;;  %v358_v15 = vadd.f32 %v678_v4, %v357_v12 }
  0xa9   :  { %v428_v14 = vadd.f32 %v427_v10, %v404_v11  ;;  %v382_v17 = vadd.f32 %v381_v13, %v358_v15 }
  0xab   :  { %v442_v16 = vmax.f32 %v428_v14, 0.0 }
  0xad   :  { %448 = vst [vmem:[%s891_s3] sm:$0xff] %v442_v16 }
  0xae   :  { %v405_v18 = vpop.f32.mrf.mxu2  ;;  %v360_v21 = vpop.f32.mrf.mxu0 }
  0xaf   :  { %v429_v19 = vpop.f32.mrf.mxu3  ;;  %v406_v20 = vadd.f32 %v405_v18, %v382_v17  ;;  %v384_v22 = vpop.f32.mrf.mxu1  ;;  %v361_v23 = vadd.f32 %v678_v4, %v360_v21 }
  0xb1   :  { %v430_v24 = vadd.f32 %v429_v19, %v406_v20  ;;  %v385_v26 = vadd.f32 %v384_v22, %v361_v23 }
  0xb3   :  { %v443_v25 = vmax.f32 %v430_v24, 0.0 }
  0xb5   :  { %449 = vst [vmem:[%s891_s3 + $0x8] sm:$0xff] %v443_v25 }
  0xb6   :  { %v408_v27 = vpop.f32.mrf.mxu2  ;;  %v362_v30 = vpop.f32.mrf.mxu0 }
  0xb7   :  { %v432_v28 = vpop.f32.mrf.mxu3  ;;  %v409_v29 = vadd.f32 %v408_v27, %v385_v26  ;;  %v386_v31 = vpop.f32.mrf.mxu1  ;;  %v363_v33 = vadd.f32 %v678_v4, %v362_v30 }
  0xb9   :  { %v433_v32 = vadd.f32 %v432_v28, %v409_v29  ;;  %v387_v35 = vadd.f32 %v386_v31, %v363_v33 }
  0xbb   :  { %v444_v34 = vmax.f32 %v433_v32, 0.0 }
  0xbd   :  { %450 = vst [vmem:[%s891_s3 + $0x10] sm:$0xff] %v444_v34 }
  0xbe   :  { %v410_v36 = vpop.f32.mrf.mxu2  ;;  %v365_v39 = vpop.f32.mrf.mxu0 }
  0xbf   :  { %v434_v37 = vpop.f32.mrf.mxu3  ;;  %v411_v38 = vadd.f32 %v410_v36, %v387_v35  ;;  %v366_v40 = vadd.f32 %v678_v4, %v365_v39  ;;  %v389_v42 = vpop.f32.mrf.mxu1 }
  0xc1   :  { %v435_v41 = vadd.f32 %v434_v37, %v411_v38  ;;  %v390_v44 = vadd.f32 %v389_v42, %v366_v40 }
  0xc3   :  { %v445_v43 = vmax.f32 %v435_v41, 0.0 }
  0xc5   :  { %451 = vst [vmem:[%s891_s3 + $0x18] sm:$0xff] %v445_v43 }
  0xc6   :  { %v413_v45 = vpop.f32.mrf.mxu2  ;;  %v367_v48 = vpop.f32.mrf.mxu0 }
  0xc7   :  { %v437_v46 = vpop.f32.mrf.mxu3  ;;  %v414_v47 = vadd.f32 %v413_v45, %v390_v44  ;;  %v368_v50 = vadd.f32 %v678_v4, %v367_v48  ;;  %v391_v52 = vpop.f32.mrf.mxu1 }
  0xc9   :  { %v438_v49 = vadd.f32 %v437_v46, %v414_v47  ;;  %v392_v53 = vadd.f32 %v391_v52, %v368_v50 }
  0xcb   :  { %v446_v51 = vmax.f32 %v438_v49, 0.0 }
  0xcd   :  { %452 = vst [vmem:[%s891_s3 + $0x20] sm:$0xff] %v446_v51 }
  0xce   :  { %v415_v54 = vpop.f32.mrf.mxu2 }
  0xcf   :  { %v416_v55 = vadd.f32 %v415_v54, %v392_v53  ;;  %v439_v56 = vpop.f32.mrf.mxu3 }
  0xd1   :  { %v440_v57 = vadd.f32 %v439_v56, %v416_v55 }
  0xd3   :  { %v447_v58 = vmax.f32 %v440_v57, 0.0 }
  0xd5   :  { %453 = vst [vmem:[%s891_s3 + $0x28] sm:$0xff] %v447_v58 }

// kernel: _lambda_.13
= control target key start
LH: loop header
LB: loop body
LE: loop exit
PB: predicated region body
PF: predicated region fallthrough
CT: control target
= control target key end

     0   :  { %s1287_s1 = inlined_call_operand.vmem [shape: bf16[1,512,256], index: 1, kind: input, shape index: {}]   ;;  %s1288_s0 = inlined_call_operand.vmem [shape: bf16[1,8,512], index: 0, kind: input, shape index: {}]   ;;  %s1289_s2 = inlined_call_operand.vmem [shape: f32[1,1,256], index: 2, kind: input, shape index: {}]   ;;  %s1290_s3 = inlined_call_operand.vmem [shape: f32[1,8,256], index: 3, kind: output, shape index: {}]  }
   0x1   :  { %v590_v0 = vld [vmem:[%s1287_s1 + $0x70] sm:$0xf]  ;;  %v803_v1 = vld [vmem:[%s1287_s1 + $0x74] sm:$0xf0]  ;;  %v582_v11 = vld [vmem:[%s1287_s1 + $0x60] sm:$0xf] }
   0x2   :  { %v654_v2 = vld [vmem:[%s1287_s1 + $0xf0] sm:$0xf]  ;;  %v591_v3 = vor.u32 %v803_v1, %v590_v0  ;;  %v819_v4 = vld [vmem:[%s1287_s1 + $0xf4] sm:$0xf0]  ;;  %v801_v13 = vld [vmem:[%s1287_s1 + $0x64] sm:$0xf0] }
   0x3   :  { %v718_v5 = vld [vmem:[%s1287_s1 + $0x170] sm:$0xf]  ;;  %v835_v6 = vld [vmem:[%s1287_s1 + $0x174] sm:$0xf0]  ;;  %v655_v7 = vor.u32 %v819_v4, %v654_v2  ;;  %v646_v14 = vld [vmem:[%s1287_s1 + $0xe0] sm:$0xf]  ;;  %v583_v16 = vor.u32 %v801_v13, %v582_v11 }
   0x4   :  { %v719_v8 = vor.u32 %v835_v6, %v718_v5  ;;  %v782_v9 = vld [vmem:[%s1287_s1 + $0x1f0] sm:$0xf]  ;;  %v851_v10 = vld [vmem:[%s1287_s1 + $0x1f4] sm:$0xf0]  ;;  %420 = vmatpush.bf16.msra.mxu0 %v591_v3  ;;  %v817_v15 = vld [vmem:[%s1287_s1 + $0xe4] sm:$0xf0] }
   0x5   :  { %v783_v12 = vor.u32 %v851_v10, %v782_v9  ;;  %433 = vmatpush.bf16.msra.mxu1 %v655_v7  ;;  %v647_v17 = vor.u32 %v817_v15, %v646_v14  ;;  %v710_v18 = vld [vmem:[%s1287_s1 + $0x160] sm:$0xf]  ;;  %v833_v19 = vld [vmem:[%s1287_s1 + $0x164] sm:$0xf0]  ;;  %v574_v23 = vld [vmem:[%s1287_s1 + $0x50] sm:$0xf] }
   0x6   :  { %446 = vmatpush.bf16.msra.mxu2 %v719_v8  ;;  %v774_v20 = vld [vmem:[%s1287_s1 + $0x1e0] sm:$0xf]  ;;  %v711_v21 = vor.u32 %v833_v19, %v710_v18  ;;  %v849_v22 = vld [vmem:[%s1287_s1 + $0x1e4] sm:$0xf0]  ;;  %v799_v24 = vld [vmem:[%s1287_s1 + $0x54] sm:$0xf0] }
   0x7   :  { %459 = vmatpush.bf16.msra.mxu3 %v783_v12  ;;  %v775_v25 = vor.u32 %v849_v22, %v774_v20  ;;  %v638_v26 = vld [vmem:[%s1287_s1 + $0xd0] sm:$0xf]  ;;  %v815_v27 = vld [vmem:[%s1287_s1 + $0xd4] sm:$0xf0]  ;;  %v575_v29 = vor.u32 %v799_v24, %v574_v23  ;;  %v566_v35 = vld [vmem:[%s1287_s1 + $0x40] sm:$0xf] }
   0x8   :  { %v702_v28 = vld [vmem:[%s1287_s1 + $0x150] sm:$0xf]  ;;  %421 = vmatpush.bf16.msra.mxu0 %v583_v16  ;;  %v831_v30 = vld [vmem:[%s1287_s1 + $0x154] sm:$0xf0]  ;;  %v639_v33 = vor.u32 %v815_v27, %v638_v26  ;;  %v797_v36 = vld [vmem:[%s1287_s1 + $0x44] sm:$0xf0] }
   0x9   :  { %v766_v31 = vld [vmem:[%s1287_s1 + $0x1d0] sm:$0xf]  ;;  %v847_v32 = vld [vmem:[%s1287_s1 + $0x1d4] sm:$0xf0]  ;;  %434 = vmatpush.bf16.msra.mxu1 %v647_v17  ;;  %v703_v34 = vor.u32 %v831_v30, %v702_v28  ;;  %v630_v37 = vld [vmem:[%s1287_s1 + $0xc0] sm:$0xf]  ;;  %v567_v44 = vor.u32 %v797_v36, %v566_v35 }
   0xa   :  { %447 = vmatpush.bf16.msra.mxu2 %v711_v21  ;;  %v767_v38 = vor.u32 %v847_v32, %v766_v31  ;;  %v813_v39 = vld [vmem:[%s1287_s1 + $0xc4] sm:$0xf0]  ;;  %v694_v40 = vld [vmem:[%s1287_s1 + $0x140] sm:$0xf]  ;;  %v558_v47 = vld [vmem:[%s1287_s1 + $0x30] sm:$0xf] }
   0xb   :  { %460 = vmatpush.bf16.msra.mxu3 %v775_v25  ;;  %v829_v41 = vld [vmem:[%s1287_s1 + $0x144] sm:$0xf0]  ;;  %v758_v42 = vld [vmem:[%s1287_s1 + $0x1c0] sm:$0xf]  ;;  %v631_v45 = vor.u32 %v813_v39, %v630_v37  ;;  %v795_v48 = vld [vmem:[%s1287_s1 + $0x34] sm:$0xf0] }
   0xc   :  { %v845_v43 = vld [vmem:[%s1287_s1 + $0x1c4] sm:$0xf0]  ;;  %422 = vmatpush.bf16.msra.mxu0 %v575_v29  ;;  %v695_v46 = vor.u32 %v829_v41, %v694_v40  ;;  %v622_v49 = vld [vmem:[%s1287_s1 + $0xb0] sm:$0xf]  ;;  %v811_v51 = vld [vmem:[%s1287_s1 + $0xb4] sm:$0xf0]  ;;  %v559_v56 = vor.u32 %v795_v48, %v558_v47 }
   0xd   :  { %435 = vmatpush.bf16.msra.mxu1 %v639_v33  ;;  %v759_v50 = vor.u32 %v845_v43, %v758_v42  ;;  %v686_v52 = vld [vmem:[%s1287_s1 + $0x130] sm:$0xf]  ;;  %v827_v53 = vld [vmem:[%s1287_s1 + $0x134] sm:$0xf0]  ;;  %v623_v57 = vor.u32 %v811_v51, %v622_v49  ;;  %v550_v59 = vld [vmem:[%s1287_s1 + $0x20] sm:$0xf] }
   0xe   :  { %448 = vmatpush.bf16.msra.mxu2 %v703_v34  ;;  %v750_v54 = vld [vmem:[%s1287_s1 + $0x1b0] sm:$0xf]  ;;  %v843_v55 = vld [vmem:[%s1287_s1 + $0x1b4] sm:$0xf0]  ;;  %v687_v58 = vor.u32 %v827_v53, %v686_v52  ;;  %v793_v60 = vld [vmem:[%s1287_s1 + $0x24] sm:$0xf0] }
   0xf   :  { %461 = vmatpush.bf16.msra.mxu3 %v767_v38  ;;  %v614_v61 = vld [vmem:[%s1287_s1 + $0xa0] sm:$0xf]  ;;  %v751_v62 = vor.u32 %v843_v55, %v750_v54  ;;  %v809_v63 = vld [vmem:[%s1287_s1 + $0xa4] sm:$0xf0]  ;;  %v551_v4 = vor.u32 %v793_v60, %v550_v59  ;;  %v542_v7 = vld [vmem:[%s1287_s1 + $0x10] sm:$0xf] }
  0x10   :  { %423 = vmatpush.bf16.msra.mxu0 %v567_v44  ;;  %v678_v0 = vld [vmem:[%s1287_s1 + $0x120] sm:$0xf]  ;;  %v825_v1 = vld [vmem:[%s1287_s1 + $0x124] sm:$0xf0]  ;;  %v615_v5 = vor.u32 %v809_v63, %v614_v61  ;;  %v791_v8 = vld [vmem:[%s1287_s1 + $0x14] sm:$0xf0] }
  0x11   :  { %436 = vmatpush.bf16.msra.mxu1 %v631_v45  ;;  %v742_v2 = vld [vmem:[%s1287_s1 + $0x1a0] sm:$0xf]  ;;  %v841_v3 = vld [vmem:[%s1287_s1 + $0x1a4] sm:$0xf0]  ;;  %v679_v6 = vor.u32 %v825_v1, %v678_v0  ;;  %v606_v9 = vld [vmem:[%s1287_s1 + $0x90] sm:$0xf]  ;;  %v543_v16 = vor.u32 %v791_v8, %v542_v7 }
  0x12   :  { %449 = vmatpush.bf16.msra.mxu2 %v695_v46  ;;  %v743_v10 = vor.u32 %v841_v3, %v742_v2  ;;  %v807_v11 = vld [vmem:[%s1287_s1 + $0x94] sm:$0xf0]  ;;  %v670_v12 = vld [vmem:[%s1287_s1 + $0x110] sm:$0xf]  ;;  %v534_v17 = vld [vmem:[%s1287_s1] sm:$0xf] }
  0x13   :  { %462 = vmatpush.bf16.msra.mxu3 %v759_v50  ;;  %v823_v13 = vld [vmem:[%s1287_s1 + $0x114] sm:$0xf0]  ;;  %v734_v14 = vld [vmem:[%s1287_s1 + $0x190] sm:$0xf]  ;;  %v789_v18 = vld [vmem:[%s1287_s1 + $0x4] sm:$0xf0]  ;;  %v607_v20 = vor.u32 %v807_v11, %v606_v9 }
  0x14   :  { %424 = vmatpush.bf16.msra.mxu0 %v559_v56  ;;  %v839_v15 = vld [vmem:[%s1287_s1 + $0x194] sm:$0xf0]  ;;  %v598_v19 = vld [vmem:[%s1287_s1 + $0x80] sm:$0xf]  ;;  %v671_v21 = vor.u32 %v823_v13, %v670_v12  ;;  %v805_v22 = vld [vmem:[%s1287_s1 + $0x84] sm:$0xf0]  ;;  %v535_v32 = vor.u32 %v789_v18, %v534_v17 }
  0x15   :  { %437 = vmatpush.bf16.msra.mxu1 %v623_v57  ;;  %v662_v23 = vld [vmem:[%s1287_s1 + $0x100] sm:$0xf]  ;;  %v821_v24 = vld [vmem:[%s1287_s1 + $0x104] sm:$0xf0]  ;;  %v735_v25 = vor.u32 %v839_v15, %v734_v14  ;;  %v802_v28 = vld [vmem:[%s1287_s1 + $0x74] sm:$0xf]  ;;  %v599_v37 = vor.u32 %v805_v22, %v598_v19 }
  0x16   :  { %450 = vmatpush.bf16.msra.mxu2 %v687_v58  ;;  %v726_v26 = vld [vmem:[%s1287_s1 + $0x180] sm:$0xf]  ;;  %v837_v27 = vld [vmem:[%s1287_s1 + $0x184] sm:$0xf0]  ;;  %v592_v29 = vld [vmem:[%s1287_s1 + $0x78] sm:$0xf0]  ;;  %v663_v38 = vor.u32 %v821_v24, %v662_v23 }
  0x17   :  { %463 = vmatpush.bf16.msra.mxu3 %v751_v62  ;;  %v818_v30 = vld [vmem:[%s1287_s1 + $0xf4] sm:$0xf]  ;;  %v15_v31 = vld [vmem:[%s1288_s0 + $0x8] sm:$0xff]  ;;  %v656_v33 = vld [vmem:[%s1287_s1 + $0xf8] sm:$0xf0]  ;;  %v727_v42 = vor.u32 %v837_v27, %v726_v26  ;;  %v595_v43 = vor.u32 %v802_v28, %v592_v29 }
  0x18   :  { %425 = vmatpush.bf16.msra.mxu0 %v551_v4  ;;  %v834_v34 = vld [vmem:[%s1287_s1 + $0x174] sm:$0xf]  ;;  %v720_v35 = vld [vmem:[%s1287_s1 + $0x178] sm:$0xf0]  ;;  %v90_v36 = vunpack.c.l.b16 %v15_v31  ;;  %v91_v41 = vunpack.c.h.b16 %v15_v31  ;;  %v14_v44 = vld [vmem:[%s1288_s0] sm:$0xff]  ;;  %v659_v45 = vor.u32 %v818_v30, %v656_v33 }
  0x19   :  { %438 = vmatpush.bf16.msra.mxu1 %v615_v5  ;;  %v850_v39 = vld [vmem:[%s1287_s1 + $0x1f4] sm:$0xf]  ;;  %v784_v40 = vld [vmem:[%s1287_s1 + $0x1f8] sm:$0xf0]  ;;  %v723_v46 = vor.u32 %v834_v34, %v720_v35  ;;  %v800_v47 = vld [vmem:[%s1287_s1 + $0x64] sm:$0xf]  ;;  %v88_v50 = vunpack.c.l.b16 %v14_v44  ;;  %v89_v51 = vunpack.c.h.b16 %v14_v44 }
  0x1a   :  { %451 = vmatpush.bf16.msra.mxu2 %v679_v6  ;;  %v584_v48 = vld [vmem:[%s1287_s1 + $0x68] sm:$0xf0]  ;;  %v816_v49 = vld [vmem:[%s1287_s1 + $0xe4] sm:$0xf]  ;;  %v787_v52 = vor.u32 %v850_v39, %v784_v40  ;;  %v1112_v56 = vpack.c.b16 %v90_v36, %v90_v36  ;;  %v1120_v59 = vpack.c.b16 %v91_v41, %v91_v41  ;;  %v798_v1 = vld [vmem:[%s1287_s1 + $0x54] sm:$0xf] }
  0x1b   :  { %464 = vmatpush.bf16.msra.mxu3 %v743_v10  ;;  %v648_v53 = vld [vmem:[%s1287_s1 + $0xe8] sm:$0xf0]  ;;  %v832_v54 = vld [vmem:[%s1287_s1 + $0x164] sm:$0xf]  ;;  %v1122_v60 = vpack.c.b16 %v88_v50, %v88_v50  ;;  %v587_v61 = vor.u32 %v800_v47, %v584_v48  ;;  %v1124_v62 = vpack.c.b16 %v89_v51, %v89_v51  ;;  %v576_v2 = vld [vmem:[%s1287_s1 + $0x58] sm:$0xf0] }
  0x1c   :  { %426 = vmatpush.bf16.msra.mxu0 %v543_v16  ;;  %v712_v55 = vld [vmem:[%s1287_s1 + $0x168] sm:$0xf0]  ;;  %v848_v57 = vld [vmem:[%s1287_s1 + $0x1e4] sm:$0xf]  ;;  %v651_v63 = vor.u32 %v816_v49, %v648_v53  ;;  %v814_v3 = vld [vmem:[%s1287_s1 + $0xd4] sm:$0xf]  ;;  %v579_v10 = vor.u32 %v798_v1, %v576_v2 }
  0x1d   :  { %439 = vmatpush.bf16.msra.mxu1 %v607_v20  ;;  %v776_v58 = vld [vmem:[%s1287_s1 + $0x1e8] sm:$0xf0]  ;;  %v715_v0 = vor.u32 %v832_v54, %v712_v55  ;;  %v640_v5 = vld [vmem:[%s1287_s1 + $0xd8] sm:$0xf0]  ;;  %v830_v6 = vld [vmem:[%s1287_s1 + $0x154] sm:$0xf] }
  0x1e   :  { %452 = vmatpush.bf16.msra.mxu2 %v671_v21  ;;  %v779_v4 = vor.u32 %v848_v57, %v776_v58  ;;  %v704_v7 = vld [vmem:[%s1287_s1 + $0x158] sm:$0xf0]  ;;  %v846_v8 = vld [vmem:[%s1287_s1 + $0x1d4] sm:$0xf]  ;;  %v643_v11 = vor.u32 %v814_v3, %v640_v5  ;;  %v796_v13 = vld [vmem:[%s1287_s1 + $0x44] sm:$0xf] }
  0x1f   :  { %465 = vmatpush.bf16.msra.mxu3 %v735_v25  ;;  %v768_v9 = vld [vmem:[%s1287_s1 + $0x1d8] sm:$0xf0]  ;;  %v707_v12 = vor.u32 %v830_v6, %v704_v7  ;;  %v568_v14 = vld [vmem:[%s1287_s1 + $0x48] sm:$0xf0]  ;;  %v812_v15 = vld [vmem:[%s1287_s1 + $0xc4] sm:$0xf] }
  0x20   :  { %427 = vmatpush.bf16.msra.mxu0 %v535_v32  ;;  %v771_v16 = vor.u32 %v846_v8, %v768_v9  ;;  %v632_v17 = vld [vmem:[%s1287_s1 + $0xc8] sm:$0xf0]  ;;  %v828_v18 = vld [vmem:[%s1287_s1 + $0x144] sm:$0xf]  ;;  %v571_v22 = vor.u32 %v796_v13, %v568_v14  ;;  %v794_v25 = vld [vmem:[%s1287_s1 + $0x34] sm:$0xf] }
  0x21   :  { %440 = vmatpush.bf16.msra.mxu1 %v599_v37  ;;  %v696_v19 = vld [vmem:[%s1287_s1 + $0x148] sm:$0xf0]  ;;  %v844_v20 = vld [vmem:[%s1287_s1 + $0x1c4] sm:$0xf]  ;;  %v635_v23 = vor.u32 %v812_v15, %v632_v17  ;;  %v560_v26 = vld [vmem:[%s1287_s1 + $0x38] sm:$0xf0] }
  0x22   :  { %453 = vmatpush.bf16.msra.mxu2 %v663_v38  ;;  %v760_v21 = vld [vmem:[%s1287_s1 + $0x1c8] sm:$0xf0]  ;;  %v699_v24 = vor.u32 %v828_v18, %v696_v19  ;;  %v810_v27 = vld [vmem:[%s1287_s1 + $0xb4] sm:$0xf]  ;;  %v624_v29 = vld [vmem:[%s1287_s1 + $0xb8] sm:$0xf0]  ;;  %v563_v34 = vor.u32 %v794_v25, %v560_v26 }
  0x23   :  { %466 = vmatpush.bf16.msra.mxu3 %v727_v42  ;;  %428 = vmatmul.bf16.vlgmr.msra.gmra.mxu0 %v1122_v60  ;;  %v763_v28 = vor.u32 %v844_v20, %v760_v21  ;;  %v826_v30 = vld [vmem:[%s1287_s1 + $0x134] sm:$0xf]  ;;  %v688_v31 = vld [vmem:[%s1287_s1 + $0x138] sm:$0xf0]  ;;  %v627_v35 = vor.u32 %v810_v27, %v624_v29  ;;  %v792_v37 = vld [vmem:[%s1287_s1 + $0x24] sm:$0xf] }
  0x24   :  { %472 = vmatpush.bf16.msrb.mxu0 %v595_v43  ;;  %441 = vmatmul.bf16.vlgmr.msra.gmra.mxu1 %v1124_v62  ;;  %v842_v32 = vld [vmem:[%s1287_s1 + $0x1b4] sm:$0xf]  ;;  %v752_v33 = vld [vmem:[%s1287_s1 + $0x1b8] sm:$0xf0]  ;;  %v691_v36 = vor.u32 %v826_v30, %v688_v31  ;;  %v552_v38 = vld [vmem:[%s1287_s1 + $0x28] sm:$0xf0] }
  0x25   :  { %485 = vmatpush.bf16.msrb.mxu1 %v659_v45  ;;  %454 = vmatmul.bf16.vlgmr.msra.gmra.mxu2 %v1112_v56  ;;  %v808_v39 = vld [vmem:[%s1287_s1 + $0xa4] sm:$0xf]  ;;  %v755_v40 = vor.u32 %v842_v32, %v752_v33  ;;  %v616_v41 = vld [vmem:[%s1287_s1 + $0xa8] sm:$0xf0]  ;;  %v790_v49 = vld [vmem:[%s1287_s1 + $0x14] sm:$0xf] }
  0x26   :  { %498 = vmatpush.bf16.msrb.mxu2 %v723_v46  ;;  %467 = vmatmul.bf16.vlgmr.msra.gmra.mxu3 %v1120_v59  ;;  %v824_v42 = vld [vmem:[%s1287_s1 + $0x124] sm:$0xf]  ;;  %v680_v43 = vld [vmem:[%s1287_s1 + $0x128] sm:$0xf0]  ;;  %v555_v46 = vor.u32 %v792_v37, %v552_v38  ;;  %v619_v47 = vor.u32 %v808_v39, %v616_v41  ;;  %v544_v50 = vld [vmem:[%s1287_s1 + $0x18] sm:$0xf0] }
  0x27   :  { %511 = vmatpush.bf16.msrb.mxu3 %v787_v52  ;;  %v840_v44 = vld [vmem:[%s1287_s1 + $0x1a4] sm:$0xf]  ;;  %v744_v45 = vld [vmem:[%s1287_s1 + $0x1a8] sm:$0xf0]  ;;  %v683_v48 = vor.u32 %v824_v42, %v680_v43  ;;  %v806_v51 = vld [vmem:[%s1287_s1 + $0x94] sm:$0xf] }
  0x28   :  { %473 = vmatpush.bf16.msrb.mxu0 %v587_v61  ;;  %v747_v52 = vor.u32 %v840_v44, %v744_v45  ;;  %v608_v53 = vld [vmem:[%s1287_s1 + $0x98] sm:$0xf0]  ;;  %v822_v54 = vld [vmem:[%s1287_s1 + $0x114] sm:$0xf]  ;;  %v547_v61 = vor.u32 %v790_v49, %v544_v50  ;;  %v788_v1 = vld [vmem:[%s1287_s1 + $0x4] sm:$0xf] }
  0x29   :  { %486 = vmatpush.bf16.msrb.mxu1 %v651_v63  ;;  %v672_v55 = vld [vmem:[%s1287_s1 + $0x118] sm:$0xf0]  ;;  %v838_v57 = vld [vmem:[%s1287_s1 + $0x194] sm:$0xf]  ;;  %v611_v63 = vor.u32 %v806_v51, %v608_v53  ;;  %v536_v2 = vld [vmem:[%s1287_s1 + $0x8] sm:$0xf0] }
  0x2a   :  { %499 = vmatpush.bf16.msrb.mxu2 %v715_v0  ;;  %v736_v58 = vld [vmem:[%s1287_s1 + $0x198] sm:$0xf0]  ;;  %v675_v0 = vor.u32 %v822_v54, %v672_v55  ;;  %v804_v3 = vld [vmem:[%s1287_s1 + $0x84] sm:$0xf]  ;;  %v600_v5 = vld [vmem:[%s1287_s1 + $0x88] sm:$0xf0] }
  0x2b   :  { %512 = vmatpush.bf16.msrb.mxu3 %v779_v4  ;;  %v739_v4 = vor.u32 %v838_v57, %v736_v58  ;;  %v820_v6 = vld [vmem:[%s1287_s1 + $0x104] sm:$0xf]  ;;  %v664_v7 = vld [vmem:[%s1287_s1 + $0x108] sm:$0xf0]  ;;  %v80_v14 = vld [vmem:[%s1289_s2] sm:$0x3] }
  0x2c   :  { %474 = vmatpush.bf16.msrb.mxu0 %v579_v10  ;;  %v836_v8 = vld [vmem:[%s1287_s1 + $0x184] sm:$0xf]  ;;  %v728_v9 = vld [vmem:[%s1287_s1 + $0x188] sm:$0xf0]  ;;  %v539_v10 = vor.u32 %v788_v1, %v536_v2  ;;  %v82_v15 = vperm.slane %v80_v14, 0  ;;  %v83_v25 = vperm.slane %v80_v14, 1 }
  0x2d   :  { %487 = vmatpush.bf16.msrb.mxu1 %v643_v11  ;;  %v603_v11 = vor.u32 %v804_v3, %v600_v5  ;;  %v731_v13 = vor.u32 %v836_v8, %v728_v9 }
  0x2e   :  { %500 = vmatpush.bf16.msrb.mxu2 %v707_v12  ;;  %v667_v12 = vor.u32 %v820_v6, %v664_v7 }
  0x2f   :  { %513 = vmatpush.bf16.msrb.mxu3 %v771_v16 }
  0x30   :  { %475 = vmatpush.bf16.msrb.mxu0 %v571_v22 }
  0x31   :  { %488 = vmatpush.bf16.msrb.mxu1 %v635_v23 }
  0x32   :  { %501 = vmatpush.bf16.msrb.mxu2 %v699_v24 }
  0x33   :  { %514 = vmatpush.bf16.msrb.mxu3 %v763_v28 }
  0x34   :  { %476 = vmatpush.bf16.msrb.mxu0 %v563_v34 }
  0x35   :  { %489 = vmatpush.bf16.msrb.mxu1 %v627_v35 }
  0x36   :  { %502 = vmatpush.bf16.msrb.mxu2 %v691_v36 }
  0x37   :  { %515 = vmatpush.bf16.msrb.mxu3 %v755_v40 }
  0x38   :  { %477 = vmatpush.bf16.msrb.mxu0 %v555_v46 }
  0x39   :  { %490 = vmatpush.bf16.msrb.mxu1 %v619_v47 }
  0x3a   :  { %503 = vmatpush.bf16.msrb.mxu2 %v683_v48 }
  0x3b   :  { %516 = vmatpush.bf16.msrb.mxu3 %v747_v52 }
  0x3c   :  { %478 = vmatpush.bf16.msrb.mxu0 %v547_v61 }
  0x3d   :  { %491 = vmatpush.bf16.msrb.mxu1 %v611_v63 }
  0x3e   :  { %504 = vmatpush.bf16.msrb.mxu2 %v675_v0 }
  0x3f   :  { %517 = vmatpush.bf16.msrb.mxu3 %v739_v4 }
  0x40   :  { %479 = vmatpush.bf16.msrb.mxu0 %v539_v10 }
  0x41   :  { %492 = vmatpush.bf16.msrb.mxu1 %v603_v11 }
  0x42   :  { %505 = vmatpush.bf16.msrb.mxu2 %v667_v12 }
  0x43   :  { %518 = vmatpush.bf16.msrb.mxu3 %v731_v13  ;;  %480 = vmatmul.bf16.vlgmr.msrb.gmra.mxu0 %v1122_v60 }
  0x44   :  { %493 = vmatmul.bf16.vlgmr.msrb.gmra.mxu1 %v1124_v62 }
  0x45   :  { %506 = vmatmul.bf16.vlgmr.msrb.gmra.mxu2 %v1112_v56 }
  0x46   :  { %519 = vmatmul.bf16.vlgmr.msrb.gmra.mxu3 %v1120_v59 }
  0xa0   :  { %v429_v16 = vpop.f32.mrf.mxu0 }
  0xa1   :  { %v430_v17 = vadd.f32 %v429_v16, %v82_v15  ;;  %v442_v18 = vpop.f32.mrf.mxu1 }
  0xa3   :  { %v443_v19 = vadd.f32 %v442_v18, %v430_v17 }
  0xa8   :  { %v455_v20 = vpop.f32.mrf.mxu2  ;;  %v431_v60 = vpop.f32.mrf.mxu0 }
  0xa9   :  { %v456_v21 = vadd.f32 %v455_v20, %v443_v19  ;;  %v468_v22 = vpop.f32.mrf.mxu3  ;;  %v444_v24 = vpop.f32.mrf.mxu1 }
  0xab   :  { %v469_v23 = vadd.f32 %v468_v22, %v456_v21 }
  0xad   :  { %v524_v62 = vmax.f32 %v469_v23, 0.0 }
  0xaf   :  { %526 = vst [vmem:[%s1290_s3] sm:$0xff] %v524_v62 }
  0xb0   :  { %v457_v56 = vpop.f32.mrf.mxu2 }
  0xb1   :  { %v470_v59 = vpop.f32.mrf.mxu3 }
  0xc0   :  { %v481_v26 = vpop.f32.mrf.mxu0 }
  0xc1   :  { %v482_v27 = vadd.f32 %v481_v26, %v83_v25  ;;  %v494_v28 = vpop.f32.mrf.mxu1 }
  0xc3   :  { %v495_v29 = vadd.f32 %v494_v28, %v482_v27 }
  0xc8   :  { %v507_v30 = vpop.f32.mrf.mxu2  ;;  %v483_v33 = vpop.f32.mrf.mxu0 }
  0xc9   :  { %v508_v31 = vadd.f32 %v507_v30, %v495_v29  ;;  %v520_v32 = vpop.f32.mrf.mxu3  ;;  %v496_v34 = vpop.f32.mrf.mxu1 }
  0xcb   :  { %v521_v35 = vadd.f32 %v520_v32, %v508_v31 }
  0xcd   :  { %v525_v36 = vmax.f32 %v521_v35, 0.0 }
  0xcf   :  { %527 = vst [vmem:[%s1290_s3 + $0x8] sm:$0xff] %v525_v36 }
  0xd0   :  { %v509_v37 = vpop.f32.mrf.mxu2 }
  0xd1   :  { %v522_v38 = vpop.f32.mrf.mxu3 }

// kernel: _lambda_.14
= control target key start
LH: loop header
LB: loop body
LE: loop exit
PB: predicated region body
PF: predicated region fallthrough
CT: control target
= control target key end

     0   :  { %s1049_s1 = inlined_call_operand.vmem [shape: bf16[1,256,384], index: 1, kind: input, shape index: {}]   ;;  %s1050_s0 = inlined_call_operand.vmem [shape: bf16[1,16,256], index: 0, kind: input, shape index: {}]   ;;  %s1051_s2 = inlined_call_operand.vmem [shape: f32[1,1,384], index: 2, kind: input, shape index: {}]   ;;  %s1052_s3 = inlined_call_operand.vmem [shape: f32[1,16,384], index: 3, kind: output, shape index: {}]  }
   0x1   :  { %v542_v0 = vld [vmem:[%s1049_s1 + $0xa8] sm:$0xf]  ;;  %v672_v1 = vld [vmem:[%s1049_s1 + $0xb0] sm:$0xf0]  ;;  %v530_v5 = vld [vmem:[%s1049_s1 + $0x90] sm:$0xf] }
   0x2   :  { %v638_v2 = vld [vmem:[%s1049_s1 + $0x168] sm:$0xf]  ;;  %v543_v3 = vor.u32 %v672_v1, %v542_v0  ;;  %v696_v4 = vld [vmem:[%s1049_s1 + $0x170] sm:$0xf0]  ;;  %v669_v6 = vld [vmem:[%s1049_s1 + $0x98] sm:$0xf0] }
   0x3   :  { %v639_v7 = vor.u32 %v696_v4, %v638_v2  ;;  %v626_v8 = vld [vmem:[%s1049_s1 + $0x150] sm:$0xf]  ;;  %v693_v9 = vld [vmem:[%s1049_s1 + $0x158] sm:$0xf0]  ;;  %v531_v10 = vor.u32 %v669_v6, %v530_v5  ;;  %v518_v12 = vld [vmem:[%s1049_s1 + $0x78] sm:$0xf] }
   0x4   :  { %354 = vmatpush.bf16.msra.mxu0 %v543_v3  ;;  %v627_v11 = vor.u32 %v693_v9, %v626_v8  ;;  %v666_v13 = vld [vmem:[%s1049_s1 + $0x80] sm:$0xf0]  ;;  %v614_v14 = vld [vmem:[%s1049_s1 + $0x138] sm:$0xf]  ;;  %v671_v16 = vld [vmem:[%s1049_s1 + $0xac] sm:$0xf] }
   0x5   :  { %368 = vmatpush.bf16.msra.mxu1 %v639_v7  ;;  %v690_v15 = vld [vmem:[%s1049_s1 + $0x140] sm:$0xf0]  ;;  %v544_v17 = vld [vmem:[%s1049_s1 + $0xb4] sm:$0xf0]  ;;  %v519_v19 = vor.u32 %v666_v13, %v518_v12  ;;  %v506_v20 = vld [vmem:[%s1049_s1 + $0x60] sm:$0xf] }
   0x6   :  { %v547_v18 = vor.u32 %v671_v16, %v544_v17  ;;  %v695_v21 = vld [vmem:[%s1049_s1 + $0x16c] sm:$0xf]  ;;  %v640_v22 = vld [vmem:[%s1049_s1 + $0x174] sm:$0xf0]  ;;  %v615_v23 = vor.u32 %v690_v15, %v614_v14  ;;  %v668_v26 = vld [vmem:[%s1049_s1 + $0x94] sm:$0xf] }
   0x7   :  { %v663_v24 = vld [vmem:[%s1049_s1 + $0x68] sm:$0xf0]  ;;  %v643_v25 = vor.u32 %v695_v21, %v640_v22  ;;  %v532_v27 = vld [vmem:[%s1049_s1 + $0x9c] sm:$0xf0]  ;;  %v692_v31 = vld [vmem:[%s1049_s1 + $0x154] sm:$0xf] }
   0x8   :  { %355 = vmatpush.bf16.msra.mxu0 %v531_v10  ;;  %382 = vmatpush.bf16.msra.mxu2 %v547_v18  ;;  %v602_v28 = vld [vmem:[%s1049_s1 + $0x120] sm:$0xf]  ;;  %v687_v29 = vld [vmem:[%s1049_s1 + $0x128] sm:$0xf0]  ;;  %v535_v30 = vor.u32 %v668_v26, %v532_v27  ;;  %v665_v33 = vld [vmem:[%s1049_s1 + $0x7c] sm:$0xf]  ;;  %v507_v34 = vor.u32 %v663_v24, %v506_v20 }
   0x9   :  { %369 = vmatpush.bf16.msra.mxu1 %v627_v11  ;;  %396 = vmatpush.bf16.msra.mxu3 %v643_v25  ;;  %v628_v32 = vld [vmem:[%s1049_s1 + $0x15c] sm:$0xf0]  ;;  %v494_v35 = vld [vmem:[%s1049_s1 + $0x48] sm:$0xf]  ;;  %v660_v36 = vld [vmem:[%s1049_s1 + $0x50] sm:$0xf0]  ;;  %v603_v39 = vor.u32 %v687_v29, %v602_v28 }
   0xa   :  { %v631_v37 = vor.u32 %v692_v31, %v628_v32  ;;  %v520_v38 = vld [vmem:[%s1049_s1 + $0x84] sm:$0xf0]  ;;  %v684_v41 = vld [vmem:[%s1049_s1 + $0x110] sm:$0xf0]  ;;  %v689_v43 = vld [vmem:[%s1049_s1 + $0x13c] sm:$0xf]  ;;  %v495_v48 = vor.u32 %v660_v36, %v494_v35 }
   0xb   :  { %v590_v40 = vld [vmem:[%s1049_s1 + $0x108] sm:$0xf]  ;;  %v523_v42 = vor.u32 %v665_v33, %v520_v38  ;;  %v662_v45 = vld [vmem:[%s1049_s1 + $0x64] sm:$0xf]  ;;  %v508_v46 = vld [vmem:[%s1049_s1 + $0x6c] sm:$0xf0] }
   0xc   :  { %356 = vmatpush.bf16.msra.mxu0 %v519_v19  ;;  %383 = vmatpush.bf16.msra.mxu2 %v535_v30  ;;  %v616_v44 = vld [vmem:[%s1049_s1 + $0x144] sm:$0xf0]  ;;  %v686_v49 = vld [vmem:[%s1049_s1 + $0x124] sm:$0xf]  ;;  %v604_v50 = vld [vmem:[%s1049_s1 + $0x12c] sm:$0xf0]  ;;  %v591_v51 = vor.u32 %v684_v41, %v590_v40  ;;  %v511_v55 = vor.u32 %v662_v45, %v508_v46 }
   0xd   :  { %370 = vmatpush.bf16.msra.mxu1 %v615_v23  ;;  %397 = vmatpush.bf16.msra.mxu3 %v631_v37  ;;  %v619_v47 = vor.u32 %v689_v43, %v616_v44  ;;  %v482_v52 = vld [vmem:[%s1049_s1 + $0x30] sm:$0xf]  ;;  %v657_v53 = vld [vmem:[%s1049_s1 + $0x38] sm:$0xf0]  ;;  %v659_v57 = vld [vmem:[%s1049_s1 + $0x4c] sm:$0xf]  ;;  %v607_v59 = vor.u32 %v686_v49, %v604_v50 }
   0xe   :  { %v578_v54 = vld [vmem:[%s1049_s1 + $0xf0] sm:$0xf]  ;;  %v681_v56 = vld [vmem:[%s1049_s1 + $0xf8] sm:$0xf0]  ;;  %v496_v58 = vld [vmem:[%s1049_s1 + $0x54] sm:$0xf0]  ;;  %v483_v60 = vor.u32 %v657_v53, %v482_v52 }
   0xf   :  { %v683_v61 = vld [vmem:[%s1049_s1 + $0x10c] sm:$0xf]  ;;  %v592_v62 = vld [vmem:[%s1049_s1 + $0x114] sm:$0xf0]  ;;  %v579_v63 = vor.u32 %v681_v56, %v578_v54  ;;  %v654_v1 = vld [vmem:[%s1049_s1 + $0x20] sm:$0xf0]  ;;  %v499_v3 = vor.u32 %v659_v57, %v496_v58 }
  0x10   :  { %357 = vmatpush.bf16.msra.mxu0 %v507_v34  ;;  %384 = vmatpush.bf16.msra.mxu2 %v523_v42  ;;  %v470_v0 = vld [vmem:[%s1049_s1 + $0x18] sm:$0xf]  ;;  %v678_v4 = vld [vmem:[%s1049_s1 + $0xe0] sm:$0xf0]  ;;  %v656_v5 = vld [vmem:[%s1049_s1 + $0x34] sm:$0xf]  ;;  %v595_v8 = vor.u32 %v683_v61, %v592_v62 }
  0x11   :  { %371 = vmatpush.bf16.msra.mxu1 %v603_v39  ;;  %398 = vmatpush.bf16.msra.mxu3 %v619_v47  ;;  %v566_v2 = vld [vmem:[%s1049_s1 + $0xd8] sm:$0xf]  ;;  %v484_v6 = vld [vmem:[%s1049_s1 + $0x3c] sm:$0xf0]  ;;  %v471_v9 = vor.u32 %v654_v1, %v470_v0  ;;  %v651_v10 = vld [vmem:[%s1049_s1 + $0x8] sm:$0xf0] }
  0x12   :  { %v458_v7 = vld [vmem:[%s1049_s1] sm:$0xf]  ;;  %v680_v11 = vld [vmem:[%s1049_s1 + $0xf4] sm:$0xf]  ;;  %v567_v13 = vor.u32 %v678_v4, %v566_v2  ;;  %v675_v15 = vld [vmem:[%s1049_s1 + $0xc8] sm:$0xf0]  ;;  %v487_v17 = vor.u32 %v656_v5, %v484_v6 }
  0x13   :  { %v580_v12 = vld [vmem:[%s1049_s1 + $0xfc] sm:$0xf0]  ;;  %v550_v16 = vld [vmem:[%s1049_s1 + $0xb0] sm:$0xf]  ;;  %v673_v18 = vld [vmem:[%s1049_s1 + $0xb8] sm:$0xf0]  ;;  %v459_v25 = vor.u32 %v651_v10, %v458_v7 }
  0x14   :  { %358 = vmatpush.bf16.msra.mxu0 %v495_v48  ;;  %385 = vmatpush.bf16.msra.mxu2 %v511_v55  ;;  %v554_v14 = vld [vmem:[%s1049_s1 + $0xc0] sm:$0xf]  ;;  %v646_v19 = vld [vmem:[%s1049_s1 + $0x170] sm:$0xf]  ;;  %v697_v20 = vld [vmem:[%s1049_s1 + $0x178] sm:$0xf0]  ;;  %v583_v22 = vor.u32 %v680_v11, %v580_v12  ;;  %v551_v30 = vor.u32 %v673_v18, %v550_v16 }
  0x15   :  { %372 = vmatpush.bf16.msra.mxu1 %v591_v51  ;;  %399 = vmatpush.bf16.msra.mxu3 %v607_v59  ;;  %v450_v21 = vld [vmem:[%s1050_s0] sm:$0xf]  ;;  %v653_v23 = vld [vmem:[%s1049_s1 + $0x1c] sm:$0xf]  ;;  %v472_v24 = vld [vmem:[%s1049_s1 + $0x24] sm:$0xf0]  ;;  %v555_v29 = vor.u32 %v675_v15, %v554_v14  ;;  %v647_v33 = vor.u32 %v697_v20, %v646_v19 }
  0x16   :  { %v649_v26 = vld [vmem:[%s1050_s0 + $0x4] sm:$0xf0]  ;;  %v677_v27 = vld [vmem:[%s1049_s1 + $0xdc] sm:$0xf]  ;;  %v648_v31 = vld [vmem:[%s1050_s0 + $0x4] sm:$0xf]  ;;  %v475_v37 = vor.u32 %v653_v23, %v472_v24 }
  0x17   :  { %v568_v28 = vld [vmem:[%s1049_s1 + $0xe4] sm:$0xf0]  ;;  %v452_v32 = vld [vmem:[%s1050_s0 + $0x8] sm:$0xf0]  ;;  %v538_v34 = vld [vmem:[%s1049_s1 + $0x98] sm:$0xf]  ;;  %v934_v39 = vor.u32 %v649_v26, %v450_v21 }
  0x18   :  { %359 = vmatpush.bf16.msra.mxu0 %v483_v60  ;;  %386 = vmatpush.bf16.msra.mxu2 %v499_v3  ;;  %v670_v35 = vld [vmem:[%s1049_s1 + $0xa0] sm:$0xf0]  ;;  %v634_v36 = vld [vmem:[%s1049_s1 + $0x158] sm:$0xf]  ;;  %v571_v40 = vor.u32 %v677_v27, %v568_v28  ;;  %v460_v42 = vld [vmem:[%s1049_s1 + $0xc] sm:$0xf0]  ;;  %v942_v43 = vor.u32 %v648_v31, %v452_v32 }
  0x19   :  { %373 = vmatpush.bf16.msra.mxu1 %v579_v63  ;;  %400 = vmatpush.bf16.msra.mxu3 %v595_v8  ;;  %v694_v38 = vld [vmem:[%s1049_s1 + $0x160] sm:$0xf0]  ;;  %v556_v45 = vld [vmem:[%s1049_s1 + $0xcc] sm:$0xf0]  ;;  %v539_v46 = vor.u32 %v670_v35, %v538_v34  ;;  %v526_v48 = vld [vmem:[%s1049_s1 + $0x80] sm:$0xf] }
  0x1a   :  { %v650_v41 = vld [vmem:[%s1049_s1 + $0x4] sm:$0xf]  ;;  %v635_v47 = vor.u32 %v694_v38, %v634_v36  ;;  %v667_v49 = vld [vmem:[%s1049_s1 + $0x88] sm:$0xf0]  ;;  %v622_v51 = vld [vmem:[%s1049_s1 + $0x140] sm:$0xf] }
  0x1b   :  { %v674_v44 = vld [vmem:[%s1049_s1 + $0xc4] sm:$0xf]  ;;  %v463_v50 = vor.u32 %v650_v41, %v460_v42  ;;  %v691_v52 = vld [vmem:[%s1049_s1 + $0x148] sm:$0xf0]  ;;  %v527_v54 = vor.u32 %v667_v49, %v526_v48  ;;  %v514_v56 = vld [vmem:[%s1049_s1 + $0x68] sm:$0xf] }
  0x1c   :  { %360 = vmatpush.bf16.msra.mxu0 %v471_v9  ;;  %387 = vmatpush.bf16.msra.mxu2 %v487_v17  ;;  %v559_v53 = vor.u32 %v674_v44, %v556_v45  ;;  %v623_v55 = vor.u32 %v691_v52, %v622_v51  ;;  %v664_v57 = vld [vmem:[%s1049_s1 + $0x70] sm:$0xf0]  ;;  %v610_v58 = vld [vmem:[%s1049_s1 + $0x128] sm:$0xf]  ;;  %v502_v62 = vld [vmem:[%s1049_s1 + $0x50] sm:$0xf] }
  0x1d   :  { %374 = vmatpush.bf16.msra.mxu1 %v567_v13  ;;  %401 = vmatpush.bf16.msra.mxu3 %v583_v22  ;;  %v688_v59 = vld [vmem:[%s1049_s1 + $0x130] sm:$0xf0]  ;;  %v515_v60 = vor.u32 %v664_v57, %v514_v56  ;;  %v661_v63 = vld [vmem:[%s1049_s1 + $0x58] sm:$0xf0]  ;;  %v598_v0 = vld [vmem:[%s1049_s1 + $0x110] sm:$0xf] }
  0x1e   :  { %v611_v61 = vor.u32 %v688_v59, %v610_v58  ;;  %v685_v1 = vld [vmem:[%s1049_s1 + $0x118] sm:$0xf0]  ;;  %v503_v2 = vor.u32 %v661_v63, %v502_v62  ;;  %v490_v4 = vld [vmem:[%s1049_s1 + $0x38] sm:$0xf]  ;;  %v658_v5 = vld [vmem:[%s1049_s1 + $0x40] sm:$0xf0] }
  0x1f   :  { %v599_v3 = vor.u32 %v685_v1, %v598_v0  ;;  %v586_v6 = vld [vmem:[%s1049_s1 + $0xf8] sm:$0xf]  ;;  %v682_v7 = vld [vmem:[%s1049_s1 + $0x100] sm:$0xf0]  ;;  %v491_v8 = vor.u32 %v658_v5, %v490_v4  ;;  %v478_v10 = vld [vmem:[%s1049_s1 + $0x20] sm:$0xf] }
  0x20   :  { %361 = vmatpush.bf16.msra.mxu0 %v459_v25  ;;  %388 = vmatpush.bf16.msra.mxu2 %v475_v37  ;;  %v587_v9 = vor.u32 %v682_v7, %v586_v6  ;;  %v655_v11 = vld [vmem:[%s1049_s1 + $0x28] sm:$0xf0]  ;;  %v574_v12 = vld [vmem:[%s1049_s1 + $0xe0] sm:$0xf]  ;;  %v466_v16 = vld [vmem:[%s1049_s1 + $0x8] sm:$0xf] }
  0x21   :  { %375 = vmatpush.bf16.msra.mxu1 %v555_v29  ;;  %402 = vmatpush.bf16.msra.mxu3 %v571_v40  ;;  %v679_v13 = vld [vmem:[%s1049_s1 + $0xe8] sm:$0xf0]  ;;  %v479_v14 = vor.u32 %v655_v11, %v478_v10  ;;  %v652_v17 = vld [vmem:[%s1049_s1 + $0x10] sm:$0xf0]  ;;  %v562_v18 = vld [vmem:[%s1049_s1 + $0xc8] sm:$0xf] }
  0x22   :  { %v575_v15 = vor.u32 %v679_v13, %v574_v12  ;;  %v676_v19 = vld [vmem:[%s1049_s1 + $0xd0] sm:$0xf0]  ;;  %v467_v20 = vor.u32 %v652_v17, %v466_v16  ;;  %v80_v22 = vld [vmem:[%s1051_s2] sm:$0x7] }
  0x23   :  { %362 = vmatmul.bf16.vlgmr.msra.gmra.mxu0 %v934_v39  ;;  %v563_v21 = vor.u32 %v676_v19, %v562_v18  ;;  %v82_v23 = vperm.slane %v80_v22, 0  ;;  %v83_v31 = vperm.slane %v80_v22, 1  ;;  %v84_v41 = vperm.slane %v80_v22, 2 }
  0x24   :  { %410 = vmatpush.bf16.msrb.mxu0 %v551_v30  ;;  %376 = vmatmul.bf16.vlgmr.msra.gmra.mxu1 %v942_v43 }
  0x25   :  { %424 = vmatpush.bf16.msrb.mxu1 %v647_v33  ;;  %389 = vmatpush.bf16.msra.mxu2 %v463_v50 }
  0x26   :  { %403 = vmatpush.bf16.msra.mxu3 %v559_v53 }
  0x28   :  { %411 = vmatpush.bf16.msrb.mxu0 %v539_v46  ;;  %390 = vmatmul.bf16.vlgmr.msra.gmra.mxu2 %v934_v39 }
  0x29   :  { %425 = vmatpush.bf16.msrb.mxu1 %v635_v47  ;;  %404 = vmatmul.bf16.vlgmr.msra.gmra.mxu3 %v942_v43 }
  0x2c   :  { %412 = vmatpush.bf16.msrb.mxu0 %v527_v54 }
  0x2d   :  { %426 = vmatpush.bf16.msrb.mxu1 %v623_v55 }
  0x30   :  { %413 = vmatpush.bf16.msrb.mxu0 %v515_v60 }
  0x31   :  { %427 = vmatpush.bf16.msrb.mxu1 %v611_v61 }
  0x34   :  { %414 = vmatpush.bf16.msrb.mxu0 %v503_v2 }
  0x35   :  { %428 = vmatpush.bf16.msrb.mxu1 %v599_v3 }
  0x38   :  { %415 = vmatpush.bf16.msrb.mxu0 %v491_v8 }
  0x39   :  { %429 = vmatpush.bf16.msrb.mxu1 %v587_v9 }
  0x3c   :  { %416 = vmatpush.bf16.msrb.mxu0 %v479_v14 }
  0x3d   :  { %430 = vmatpush.bf16.msrb.mxu1 %v575_v15 }
  0x40   :  { %417 = vmatpush.bf16.msrb.mxu0 %v467_v20 }
  0x41   :  { %431 = vmatpush.bf16.msrb.mxu1 %v563_v21 }
  0x43   :  { %418 = vmatmul.bf16.vlgmr.msrb.gmra.mxu0 %v934_v39 }
  0x44   :  { %432 = vmatmul.bf16.vlgmr.msrb.gmra.mxu1 %v942_v43 }
  0xa0   :  { %v363_v24 = vpop.f32.mrf.mxu0 }
  0xa1   :  { %v364_v25 = vadd.f32 %v363_v24, %v82_v23  ;;  %v377_v26 = vpop.f32.mrf.mxu1 }
  0xa3   :  { %v378_v27 = vadd.f32 %v377_v26, %v364_v25 }
  0xa5   :  { %438 = vst [vmem:[%s1052_s3] sm:$0xff] %v378_v27 }
  0xa8   :  { %v365_v28 = vpop.f32.mrf.mxu0 }
  0xa9   :  { %v366_v29 = vadd.f32 %v365_v28, %v82_v23  ;;  %v379_v30 = vpop.f32.mrf.mxu1 }
  0xab   :  { %v380_v32 = vadd.f32 %v379_v30, %v366_v29  ;;  %v391_v33 = vpop.f32.mrf.mxu2 }
  0xac   :  { %v392_v34 = vadd.f32 %v391_v33, %v83_v31  ;;  %v405_v35 = vpop.f32.mrf.mxu3 }
  0xad   :  { %441 = vst [vmem:[%s1052_s3 + $0x18] sm:$0xff] %v380_v32 }
  0xae   :  { %v406_v36 = vadd.f32 %v405_v35, %v392_v34 }
  0xb0   :  { %439 = vst [vmem:[%s1052_s3 + $0x8] sm:$0xff] %v406_v36 }
  0xb3   :  { %v393_v37 = vpop.f32.mrf.mxu2 }
  0xb4   :  { %v394_v38 = vadd.f32 %v393_v37, %v83_v31  ;;  %v407_v39 = vpop.f32.mrf.mxu3 }
  0xb6   :  { %v408_v40 = vadd.f32 %v407_v39, %v394_v38 }
  0xb8   :  { %442 = vst [vmem:[%s1052_s3 + $0x20] sm:$0xff] %v408_v40 }
  0xc0   :  { %v419_v42 = vpop.f32.mrf.mxu0 }
  0xc1   :  { %v420_v43 = vadd.f32 %v419_v42, %v84_v41  ;;  %v433_v44 = vpop.f32.mrf.mxu1 }
  0xc3   :  { %v434_v45 = vadd.f32 %v433_v44, %v420_v43 }
  0xc5   :  { %440 = vst [vmem:[%s1052_s3 + $0x10] sm:$0xff] %v434_v45 }
  0xc8   :  { %v421_v46 = vpop.f32.mrf.mxu0 }
  0xc9   :  { %v422_v47 = vadd.f32 %v421_v46, %v84_v41  ;;  %v435_v48 = vpop.f32.mrf.mxu1 }
  0xcb   :  { %v436_v49 = vadd.f32 %v435_v48, %v422_v47 }
  0xcd   :  { %443 = vst [vmem:[%s1052_s3 + $0x28] sm:$0xff] %v436_v49 }

// kernel: _lambda_.15
= control target key start
LH: loop header
LB: loop body
LE: loop exit
PB: predicated region body
PF: predicated region fallthrough
CT: control target
= control target key end

     0   :  { %12 = vsyncpa [#allocation5], 0  ;;  %s2190_s0 = inlined_call_operand.vmem [shape: f32[2,8,384], index: 0, kind: input, shape index: {}]   ;;  %s2191_s1 = inlined_call_operand.vmem [shape: bf16[128,384], index: 1, kind: input, shape index: {}]   ;;  %s2192_s2 = inlined_call_operand.vmem [shape: f32[1,384], index: 2, kind: input, shape index: {}]   ;;  %s2193_s3 = inlined_call_operand.vmem [shape: bf16[128,384], index: 3, kind: input, shape index: {}]   ;;  %s2194_s4 = inlined_call_operand.vmem [shape: f32[1,384], index: 4, kind: input, shape index: {}]   ;;  %s2195_s5 = inlined_call_operand.vmem [shape: bf16[128,384], index: 5, kind: input, shape index: {}]   ;;  %s2196_s6 = inlined_call_operand.vmem [shape: f32[1,384], index: 6, kind: input, shape index: {}]   ;;  %s2197_s7 = inlined_call_operand.hbm [shape: f32[2,1,128], index: 7, kind: output, shape index: {}]  }
   0x1   :  { %14 = vsyncpa [#allocation5 + $0x1], 0  ;;  %s1623_s24 = smov 0   ;;  %s1625_s25 = smov 0  }
   0x2   :  { %s1627_s26 = smov 0   ;;  %s1629_s27 = smov 0  }
   0x3 LB: > { %s1644_s28 = sadd.s32 4294967295, %s1580_s27   ;;  %s1085_s29 = sadd.s32 4294967294, %s1580_s27   ;;  %s1580_s27 = sphi %s1629_s27, %s2203_s27   ;;  %s1576_s26 = sphi %s1627_s26, %s2202_s26   ;;  %s1572_s25 = sphi %s1625_s25, %s2201_s25   ;;  %s1568_s24 = sphi %s1623_s24, %s2200_s24  }
   0x4   : > { %s1648_s30 = sadd.s32 1, %s1580_s27   ;;  %s179_s8 = sadd.s32 1, %s1576_s26 }
   0x5   : > { %s176_s9 = ssub.s32 %s1580_s27, %s1648_s30  ;;  %p189_p0 = scmp.ne.s32.totalorder %s1576_s26, %s1572_s25 }
   0x6   : > { %p177_p1 = scmp.eq.s32.totalorder %s176_s9, 0  ;;  %p190_p2 = scmp.eq.s32.totalorder %s1644_s28, 1 }
   0x7   : > { %p195_p3 = scmp.ne.s32.totalorder %s1572_s25, %s1568_s24  ;;  %p196_p4 = scmp.eq.s32.totalorder %s1085_s29, 1 }
   0x8   : > { %s1659_s10 = scalar_select %p177_p1, %s1576_s26, %s179_s8  }
   0x9   : > { %p1661_p5 = por %p190_p2, %p189_p0  ;;  %p1665_p6 = por %p196_p4, %p195_p3 }
   0xa   : > { %p1088_p7 = scmp.ge.s32.totalorder %s1580_s27, 1  ;;  %p240_p8 = scmp.lt.s32.totalorder %s1580_s27, 3 }
   0xc   : > { %p241_p9 = pnand %p1088_p7, %p240_p8 }
   0xd   : > { %s269_s13 = sand.u32 (!%p241_p9), 1, %s1572_s25   ;;  %p271_p10 = scmp.lt.s32.totalorder (!%p241_p9), %s1644_s28, 1 }
   0xe   : > { %244 = sbr.rel (%p241_p9) target bundleno = 441 (0x1b9), region = 48  ;;  %s1681_s19 = scalar_lea.vmem (!%p241_p9), [#allocation4], %s269_s13 }
   0xf   : > { %p1090_p11 = scmp.ne.s32.totalorder (!%p241_p9), %s1644_s28, 0 }
  0x13   : > { %s272_s14 = scalar_select %p271_p10, %s1644_s28, 1 }
  0x14   : > { %279 = sbr.rel (%p1090_p11) target bundleno = 28 (0x1c), region = 52 }
  0x15   : > { %s1457_s15 = smul.u32 24, %s272_s14 }
  0x17   : > { %s1677_s18 = scalar_lea.vmem %s2190_s0, %s1457_s15 }
  0x19   : > { %v1582_v0 = vmov 0.0  }
  0x1a   : > { %280 = vst [vmem:[#allocation2] sm:$0xff] %v1582_v0 }
  0x1b   : > { %281 = vst [vmem:[#allocation3] sm:$0xff] %v1582_v0 }
  0x1c PF: > { %v1177_v1 = vld [vmem:[%s2191_s1 + $0xa8] sm:$0xf]  ;;  %v1407_v2 = vld [vmem:[%s2191_s1 + $0xb0] sm:$0xf0]  ;;  %v1406_v3 = vld [vmem:[%s2191_s1 + $0xac] sm:$0xf]  ;;  %s1026_s15 = scalar_lea.hbm %s2197_s7, %s1644_s28 }
  0x1d   : > { %v1178_v4 = vor.u32 %v1407_v2, %v1177_v1  ;;  %v1179_v5 = vld [vmem:[%s2191_s1 + $0xb4] sm:$0xf0]  ;;  %v1165_v6 = vld [vmem:[%s2191_s1 + $0x90] sm:$0xf]  ;;  %v1404_v7 = vld [vmem:[%s2191_s1 + $0x98] sm:$0xf0] }
  0x1e   : > { %v1182_v8 = vor.u32 %v1406_v3, %v1179_v5  ;;  %v1403_v9 = vld [vmem:[%s2191_s1 + $0x94] sm:$0xf]  ;;  %v1167_v10 = vld [vmem:[%s2191_s1 + $0x9c] sm:$0xf0]  ;;  %v1166_v11 = vor.u32 %v1404_v7, %v1165_v6  ;;  %v1153_v13 = vld [vmem:[%s2191_s1 + $0x78] sm:$0xf] }
  0x1f   : > { %455 = vmatpush.bf16.msra.mxu0 %v1178_v4  ;;  %v1170_v12 = vor.u32 %v1403_v9, %v1167_v10  ;;  %v1401_v14 = vld [vmem:[%s2191_s1 + $0x80] sm:$0xf0]  ;;  %v1400_v15 = vld [vmem:[%s2191_s1 + $0x7c] sm:$0xf]  ;;  %v1155_v16 = vld [vmem:[%s2191_s1 + $0x84] sm:$0xf0] }
  0x20   : > { %468 = vmatpush.bf16.msra.mxu1 %v1182_v8  ;;  %v1185_v17 = vld [vmem:[%s2191_s1 + $0xb0] sm:$0xf]  ;;  %v1154_v18 = vor.u32 %v1401_v14, %v1153_v13  ;;  %v1408_v19 = vld [vmem:[%s2191_s1 + $0xb8] sm:$0xf0]  ;;  %v1158_v20 = vor.u32 %v1400_v15, %v1155_v16  ;;  %v1141_v21 = vld [vmem:[%s2191_s1 + $0x60] sm:$0xf] }
  0x21   : > { %v1398_v22 = vld [vmem:[%s2191_s1 + $0x68] sm:$0xf0]  ;;  %v1186_v23 = vor.u32 %v1408_v19, %v1185_v17  ;;  %v1173_v24 = vld [vmem:[%s2191_s1 + $0x98] sm:$0xf]  ;;  %v1397_v25 = vld [vmem:[%s2191_s1 + $0x64] sm:$0xf] }
  0x22   : > { %v1143_v26 = vld [vmem:[%s2191_s1 + $0x6c] sm:$0xf0]  ;;  %v1405_v27 = vld [vmem:[%s2191_s1 + $0xa0] sm:$0xf0]  ;;  %v1142_v29 = vor.u32 %v1398_v22, %v1141_v21  ;;  %v1161_v30 = vld [vmem:[%s2191_s1 + $0x80] sm:$0xf] }
  0x23   : > { %456 = vmatpush.bf16.msra.mxu0 %v1166_v11  ;;  %481 = vmatpush.bf16.msra.mxu2 %v1186_v23  ;;  %v1174_v28 = vor.u32 %v1405_v27, %v1173_v24  ;;  %v1402_v31 = vld [vmem:[%s2191_s1 + $0x88] sm:$0xf0]  ;;  %v1146_v32 = vor.u32 %v1397_v25, %v1143_v26  ;;  %v1129_v33 = vld [vmem:[%s2191_s1 + $0x48] sm:$0xf]  ;;  %v1395_v34 = vld [vmem:[%s2191_s1 + $0x50] sm:$0xf0] }
  0x24   : > { %469 = vmatpush.bf16.msra.mxu1 %v1170_v12  ;;  %v1394_v35 = vld [vmem:[%s2191_s1 + $0x4c] sm:$0xf]  ;;  %v1131_v36 = vld [vmem:[%s2191_s1 + $0x54] sm:$0xf0]  ;;  %v1162_v37 = vor.u32 %v1402_v31, %v1161_v30  ;;  %v1130_v38 = vor.u32 %v1395_v34, %v1129_v33  ;;  %v1149_v39 = vld [vmem:[%s2191_s1 + $0x68] sm:$0xf] }
  0x25   : > { %v1399_v40 = vld [vmem:[%s2191_s1 + $0x70] sm:$0xf0]  ;;  %v1134_v41 = vor.u32 %v1394_v35, %v1131_v36  ;;  %v1117_v42 = vld [vmem:[%s2191_s1 + $0x30] sm:$0xf]  ;;  %v1392_v43 = vld [vmem:[%s2191_s1 + $0x38] sm:$0xf0] }
  0x26   : > { %v1391_v44 = vld [vmem:[%s2191_s1 + $0x34] sm:$0xf]  ;;  %v1119_v45 = vld [vmem:[%s2191_s1 + $0x3c] sm:$0xf0]  ;;  %v1150_v46 = vor.u32 %v1399_v40, %v1149_v39  ;;  %v1118_v47 = vor.u32 %v1392_v43, %v1117_v42  ;;  %v1137_v48 = vld [vmem:[%s2191_s1 + $0x50] sm:$0xf] }
  0x27   : > { %457 = vmatpush.bf16.msra.mxu0 %v1154_v18  ;;  %482 = vmatpush.bf16.msra.mxu2 %v1174_v28  ;;  %v1396_v49 = vld [vmem:[%s2191_s1 + $0x58] sm:$0xf0]  ;;  %v1122_v50 = vor.u32 %v1391_v44, %v1119_v45  ;;  %v1105_v51 = vld [vmem:[%s2191_s1 + $0x18] sm:$0xf]  ;;  %v1389_v52 = vld [vmem:[%s2191_s1 + $0x20] sm:$0xf0] }
  0x28   : > { %470 = vmatpush.bf16.msra.mxu1 %v1158_v20  ;;  %v1388_v53 = vld [vmem:[%s2191_s1 + $0x1c] sm:$0xf]  ;;  %v1107_v54 = vld [vmem:[%s2191_s1 + $0x24] sm:$0xf0]  ;;  %v1138_v55 = vor.u32 %v1396_v49, %v1137_v48  ;;  %v1106_v56 = vor.u32 %v1389_v52, %v1105_v51  ;;  %v1125_v57 = vld [vmem:[%s2191_s1 + $0x38] sm:$0xf] }
  0x29   : > { %v1393_v58 = vld [vmem:[%s2191_s1 + $0x40] sm:$0xf0]  ;;  %v1110_v59 = vor.u32 %v1388_v53, %v1107_v54  ;;  %v1093_v60 = vld [vmem:[%s2191_s1] sm:$0xf]  ;;  %v1386_v61 = vld [vmem:[%s2191_s1 + $0x8] sm:$0xf0] }
  0x2a   : > { %v1385_v62 = vld [vmem:[%s2191_s1 + $0x4] sm:$0xf]  ;;  %v1095_v63 = vld [vmem:[%s2191_s1 + $0xc] sm:$0xf0]  ;;  %v1126_v0 = vor.u32 %v1393_v58, %v1125_v57  ;;  %v1094_v1 = vor.u32 %v1386_v61, %v1093_v60  ;;  %v1113_v3 = vld [vmem:[%s2191_s1 + $0x20] sm:$0xf] }
  0x2b   : > { %458 = vmatpush.bf16.msra.mxu0 %v1142_v29  ;;  %483 = vmatpush.bf16.msra.mxu2 %v1162_v37  ;;  %v1816_v2 = vld [vmem:[#allocation2] sm:$0xff]  ;;  %v1390_v4 = vld [vmem:[%s2191_s1 + $0x28] sm:$0xf0]  ;;  %v1098_v5 = vor.u32 %v1385_v62, %v1095_v63  ;;  %v1101_v8 = vld [vmem:[%s2191_s1 + $0x8] sm:$0xf]  ;;  %s1028_s16 = sshll.u32 %s1681_s19, 4  ;;  %s1029_s16 = int_to_ptr.vmem [resolvable:$true] %s1028_s16 }
  0x2c   : > { %471 = vmatpush.bf16.msra.mxu1 %v1146_v32  ;;  %v286_v6 = vpack.c.bf16 %v1816_v2, %v1816_v2  ;;  %v1114_v7 = vor.u32 %v1390_v4, %v1113_v3  ;;  %v1387_v9 = vld [vmem:[%s2191_s1 + $0x10] sm:$0xf0]  ;;  %v1275_v11 = vld [vmem:[%s2193_s3 + $0xa8] sm:$0xf]  ;;  %v1263_v14 = vld [vmem:[%s2193_s3 + $0x90] sm:$0xf] }
  0x2d   : > { %v1102_v10 = vor.u32 %v1387_v9, %v1101_v8  ;;  %v1431_v12 = vld [vmem:[%s2193_s3 + $0xb0] sm:$0xf0]  ;;  %v1428_v15 = vld [vmem:[%s2193_s3 + $0x98] sm:$0xf0]  ;;  %v1251_v17 = vld [vmem:[%s2193_s3 + $0x78] sm:$0xf] }
  0x2e   : > { %v1276_v13 = vor.u32 %v1431_v12, %v1275_v11  ;;  %v1264_v16 = vor.u32 %v1428_v15, %v1263_v14  ;;  %v1425_v18 = vld [vmem:[%s2193_s3 + $0x80] sm:$0xf0]  ;;  %v1239_v20 = vld [vmem:[%s2193_s3 + $0x60] sm:$0xf]  ;;  %v1422_v21 = vld [vmem:[%s2193_s3 + $0x68] sm:$0xf0] }
  0x2f   : > { %459 = vmatpush.bf16.msra.mxu0 %v1130_v38  ;;  %484 = vmatpush.bf16.msra.mxu2 %v1150_v46  ;;  %v1252_v19 = vor.u32 %v1425_v18, %v1251_v17  ;;  %v1371_v22 = vld [vmem:[%s2195_s5 + $0xa8] sm:$0xf]  ;;  %v1240_v23 = vor.u32 %v1422_v21, %v1239_v20  ;;  %v1455_v24 = vld [vmem:[%s2195_s5 + $0xb0] sm:$0xf0]  ;;  %v1430_v25 = vld [vmem:[%s2193_s3 + $0xac] sm:$0xf] }
  0x30   : > { %472 = vmatpush.bf16.msra.mxu1 %v1134_v41  ;;  %712 = vmatpush.bf16.msra.mxu3 %v1276_v13  ;;  %v1277_v26 = vld [vmem:[%s2193_s3 + $0xb4] sm:$0xf0]  ;;  %v1372_v27 = vor.u32 %v1455_v24, %v1371_v22  ;;  %v1283_v29 = vld [vmem:[%s2193_s3 + $0xb0] sm:$0xf]  ;;  %v1432_v30 = vld [vmem:[%s2193_s3 + $0xb8] sm:$0xf0] }
  0x31   : > { %v1280_v28 = vor.u32 %v1430_v25, %v1277_v26  ;;  %v1284_v31 = vor.u32 %v1432_v30, %v1283_v29  ;;  %v1227_v32 = vld [vmem:[%s2193_s3 + $0x48] sm:$0xf]  ;;  %v1419_v33 = vld [vmem:[%s2193_s3 + $0x50] sm:$0xf0]  ;;  %v1359_v34 = vld [vmem:[%s2195_s5 + $0x90] sm:$0xf] }
  0x32   : > { %v1228_v35 = vor.u32 %v1419_v33, %v1227_v32  ;;  %v1452_v36 = vld [vmem:[%s2195_s5 + $0x98] sm:$0xf0]  ;;  %v1427_v37 = vld [vmem:[%s2193_s3 + $0x94] sm:$0xf]  ;;  %v1265_v38 = vld [vmem:[%s2193_s3 + $0x9c] sm:$0xf0] }
  0x33   : > { %460 = vmatpush.bf16.msra.mxu0 %v1118_v47  ;;  %485 = vmatpush.bf16.msra.mxu2 %v1138_v55  ;;  %v1360_v39 = vor.u32 %v1452_v36, %v1359_v34  ;;  %v1268_v40 = vor.u32 %v1427_v37, %v1265_v38  ;;  %v1271_v41 = vld [vmem:[%s2193_s3 + $0x98] sm:$0xf]  ;;  %v1429_v42 = vld [vmem:[%s2193_s3 + $0xa0] sm:$0xf0]  ;;  %v1901_v43 = vld [vmem:[%s2192_s2] sm:$0x7] }
  0x34   : > { %473 = vmatpush.bf16.msra.mxu1 %v1122_v50  ;;  %713 = vmatpush.bf16.msra.mxu3 %v1264_v16  ;;  %v1272_v44 = vor.u32 %v1429_v42, %v1271_v41  ;;  %v1215_v45 = vld [vmem:[%s2193_s3 + $0x30] sm:$0xf]  ;;  %v1416_v46 = vld [vmem:[%s2193_s3 + $0x38] sm:$0xf0]  ;;  %v1347_v47 = vld [vmem:[%s2195_s5 + $0x78] sm:$0xf] }
  0x35   : > { %v1216_v48 = vor.u32 %v1416_v46, %v1215_v45  ;;  %v1449_v49 = vld [vmem:[%s2195_s5 + $0x80] sm:$0xf0]  ;;  %v1424_v50 = vld [vmem:[%s2193_s3 + $0x7c] sm:$0xf]  ;;  %v1253_v51 = vld [vmem:[%s2193_s3 + $0x84] sm:$0xf0] }
  0x36   : > { %v1348_v52 = vor.u32 %v1449_v49, %v1347_v47  ;;  %v1256_v53 = vor.u32 %v1424_v50, %v1253_v51  ;;  %v1259_v54 = vld [vmem:[%s2193_s3 + $0x80] sm:$0xf]  ;;  %v1426_v55 = vld [vmem:[%s2193_s3 + $0x88] sm:$0xf0]  ;;  %v1203_v58 = vld [vmem:[%s2193_s3 + $0x18] sm:$0xf] }
  0x37   : > { %461 = vmatpush.bf16.msra.mxu0 %v1106_v56  ;;  %486 = vmatpush.bf16.msra.mxu2 %v1126_v0  ;;  %v321_v56 = vperm.slane %v1901_v43, 0  ;;  %v1260_v57 = vor.u32 %v1426_v55, %v1259_v54  ;;  %v1335_v60 = vld [vmem:[%s2195_s5 + $0x60] sm:$0xf]  ;;  %v1446_v62 = vld [vmem:[%s2195_s5 + $0x68] sm:$0xf0]  ;;  %s1018_s17 = scalar_lea.sflag [#allocation5], %s269_s13 }
  0x38   : > { %474 = vmatpush.bf16.msra.mxu1 %v1110_v59  ;;  %714 = vmatpush.bf16.msra.mxu3 %v1252_v19  ;;  %v1413_v59 = vld [vmem:[%s2193_s3 + $0x20] sm:$0xf0]  ;;  %v1241_v0 = vld [vmem:[%s2193_s3 + $0x6c] sm:$0xf0]  ;;  %v1336_v3 = vor.u32 %v1446_v62, %v1335_v60  ;;  %v284_v8 = vld [vmem:[%s1677_s18 + $0x8] sm:$0xff]  ;;  %s1538_s28 = scalar_lea.hbm %s2197_s7, 2 }
  0x39   : > { %v1204_v61 = vor.u32 %v1413_v59, %v1203_v58  ;;  %v1421_v63 = vld [vmem:[%s2193_s3 + $0x64] sm:$0xf]  ;;  %v1191_v11 = vld [vmem:[%s2193_s3] sm:$0xf]  ;;  %v1410_v12 = vld [vmem:[%s2193_s3 + $0x8] sm:$0xf0] }
  0x3a   : > { %v1244_v4 = vor.u32 %v1421_v63, %v1241_v0  ;;  %v1323_v13 = vld [vmem:[%s2195_s5 + $0x48] sm:$0xf]  ;;  %v1192_v16 = vor.u32 %v1410_v12, %v1191_v11  ;;  %v1443_v17 = vld [vmem:[%s2195_s5 + $0x50] sm:$0xf0]  ;;  %v1418_v18 = vld [vmem:[%s2193_s3 + $0x4c] sm:$0xf] }
  0x3b   : > { %462 = vmatpush.bf16.msra.mxu0 %v1094_v1  ;;  %487 = vmatpush.bf16.msra.mxu2 %v1114_v7  ;;  %v322_v1 = vperm.slane %v1901_v43, 1  ;;  %v283_v7 = vld [vmem:[%s1677_s18] sm:$0xff]  ;;  %v1229_v19 = vld [vmem:[%s2193_s3 + $0x54] sm:$0xf0]  ;;  %v1324_v21 = vor.u32 %v1443_v17, %v1323_v13  ;;  %v1420_v24 = vld [vmem:[%s2193_s3 + $0x58] sm:$0xf0] }
  0x3c   : > { %475 = vmatpush.bf16.msra.mxu1 %v1098_v5  ;;  %715 = vmatpush.bf16.msra.mxu3 %v1240_v23  ;;  %v1247_v5 = vld [vmem:[%s2193_s3 + $0x68] sm:$0xf]  ;;  %v1232_v22 = vor.u32 %v1418_v18, %v1229_v19  ;;  %v1235_v23 = vld [vmem:[%s2193_s3 + $0x50] sm:$0xf]  ;;  %v1454_v25 = vld [vmem:[%s2195_s5 + $0xac] sm:$0xf] }
  0x3d   : > { %v1440_v32 = vld [vmem:[%s2195_s5 + $0x38] sm:$0xf0]  ;;  %v1217_v36 = vld [vmem:[%s2193_s3 + $0x3c] sm:$0xf0]  ;;  %v1451_v42 = vld [vmem:[%s2195_s5 + $0x94] sm:$0xf] }
  0x3e   : > { %463 = vmatmul.bf16.vlgmr.msra.gmra.mxu0 %v286_v6  ;;  %v1299_v45 = vld [vmem:[%s2195_s5 + $0x18] sm:$0xf]  ;;  %v1412_v49 = vld [vmem:[%s2193_s3 + $0x1c] sm:$0xf]  ;;  %v1205_v50 = vld [vmem:[%s2193_s3 + $0x24] sm:$0xf0] }
  0x3f   : > { %476 = vmatmul.bf16.vlgmr.msra.gmra.mxu1 %v286_v6  ;;  %488 = vmatpush.bf16.msra.mxu2 %v1102_v10  ;;  %v1211_v54 = vld [vmem:[%s2193_s3 + $0x20] sm:$0xf]  ;;  %v1414_v55 = vld [vmem:[%s2193_s3 + $0x28] sm:$0xf0]  ;;  %v1349_v58 = vld [vmem:[%s2195_s5 + $0x84] sm:$0xf0] }
  0x40   : > { %725 = vmatpush.bf16.msrb.mxu0 %v1280_v28  ;;  %738 = vmatpush.bf16.msrb.mxu1 %v1284_v31  ;;  %v1373_v28 = vld [vmem:[%s2195_s5 + $0xb4] sm:$0xf0]  ;;  %v1311_v31 = vld [vmem:[%s2195_s5 + $0x30] sm:$0xf]  ;;  %v1287_v59 = vld [vmem:[%s2195_s5] sm:$0xf] }
  0x41   : > { %716 = vmatpush.bf16.msra.mxu3 %v1228_v35  ;;  %v1376_v30 = vor.u32 %v1454_v25, %v1373_v28  ;;  %v1312_v34 = vor.u32 %v1440_v32, %v1311_v31  ;;  %v1415_v35 = vld [vmem:[%s2193_s3 + $0x34] sm:$0xf]  ;;  %v1434_v60 = vld [vmem:[%s2195_s5 + $0x8] sm:$0xf0]  ;;  %v1409_v62 = vld [vmem:[%s2193_s3 + $0x4] sm:$0xf] }
  0x42   : > { %489 = vmatmul.bf16.vlgmr.msra.gmra.mxu2 %v286_v6  ;;  %v1423_v6 = vld [vmem:[%s2193_s3 + $0x70] sm:$0xf0]  ;;  %v1220_v38 = vor.u32 %v1415_v35, %v1217_v36  ;;  %v1193_v63 = vld [vmem:[%s2193_s3 + $0xc] sm:$0xf0]  ;;  %v1199_v0 = vld [vmem:[%s2193_s3 + $0x8] sm:$0xf] }
  0x43   : > { %920 = vmatpush.bf16.msrb.mxu2 %v1372_v27  ;;  %v1248_v9 = vor.u32 %v1423_v6, %v1247_v5  ;;  %v1236_v27 = vor.u32 %v1420_v24, %v1235_v23  ;;  %v1445_v5 = vld [vmem:[%s2195_s5 + $0x64] sm:$0xf]  ;;  %v1337_v6 = vld [vmem:[%s2195_s5 + $0x6c] sm:$0xf0]  ;;  %v1325_v17 = vld [vmem:[%s2195_s5 + $0x54] sm:$0xf0] }
  0x44   : > { %726 = vmatpush.bf16.msrb.mxu0 %v1268_v40  ;;  %739 = vmatpush.bf16.msrb.mxu1 %v1272_v44  ;;  %v1417_v40 = vld [vmem:[%s2193_s3 + $0x40] sm:$0xf0]  ;;  %v1361_v44 = vld [vmem:[%s2195_s5 + $0x9c] sm:$0xf0]  ;;  %v1340_v13 = vor.u32 %v1445_v5, %v1337_v6  ;;  %v1379_v19 = vld [vmem:[%s2195_s5 + $0xb0] sm:$0xf] }
  0x45   : > { %717 = vmatpush.bf16.msra.mxu3 %v1216_v48  ;;  %v1364_v47 = vor.u32 %v1451_v42, %v1361_v44  ;;  %v1437_v48 = vld [vmem:[%s2195_s5 + $0x20] sm:$0xf0]  ;;  %v1313_v23 = vld [vmem:[%s2195_s5 + $0x3c] sm:$0xf0]  ;;  %v1367_v24 = vld [vmem:[%s2195_s5 + $0x98] sm:$0xf] }
  0x46   : > { %v1450_v35 = vld [vmem:[%s2195_s5 + $0x88] sm:$0xf0]  ;;  %v1441_v5 = vld [vmem:[%s2195_s5 + $0x40] sm:$0xf0] }
  0x47   : > { %921 = vmatpush.bf16.msrb.mxu2 %v1360_v39  ;;  %v1223_v39 = vld [vmem:[%s2193_s3 + $0x38] sm:$0xf] }
  0x48   : > { %727 = vmatpush.bf16.msrb.mxu0 %v1256_v53  ;;  %740 = vmatpush.bf16.msrb.mxu1 %v1260_v57  ;;  %v1224_v41 = vor.u32 %v1417_v40, %v1223_v39  ;;  %v1208_v53 = vor.u32 %v1412_v49, %v1205_v50  ;;  %v1212_v57 = vor.u32 %v1414_v55, %v1211_v54 }
  0x49   : > { %718 = vmatpush.bf16.msra.mxu3 %v1204_v61 }
  0x4b   : > { %922 = vmatpush.bf16.msrb.mxu2 %v1348_v52  ;;  %v1300_v52 = vor.u32 %v1437_v48, %v1299_v45 }
  0x4c   : > { %728 = vmatpush.bf16.msrb.mxu0 %v1244_v4  ;;  %741 = vmatpush.bf16.msrb.mxu1 %v1248_v9  ;;  %v1411_v4 = vld [vmem:[%s2193_s3 + $0x10] sm:$0xf0] }
  0x4d   : > { %719 = vmatpush.bf16.msra.mxu3 %v1192_v16  ;;  %v1200_v9 = vor.u32 %v1411_v4, %v1199_v0  ;;  %v1442_v16 = vld [vmem:[%s2195_s5 + $0x4c] sm:$0xf]  ;;  %v1319_v4 = vld [vmem:[%s2195_s5 + $0x38] sm:$0xf] }
  0x4e   : > { %v1328_v18 = vor.u32 %v1442_v16, %v1325_v17 }
  0x4f   : > { %923 = vmatpush.bf16.msrb.mxu2 %v1336_v3  ;;  %v1196_v3 = vor.u32 %v1409_v62, %v1193_v63  ;;  %v1331_v62 = vld [vmem:[%s2195_s5 + $0x50] sm:$0xf]  ;;  %v1444_v63 = vld [vmem:[%s2195_s5 + $0x58] sm:$0xf0] }
  0x50   : > { %729 = vmatpush.bf16.msrb.mxu0 %v1232_v22  ;;  %742 = vmatpush.bf16.msrb.mxu1 %v1236_v27  ;;  %v1439_v22 = vld [vmem:[%s2195_s5 + $0x34] sm:$0xf] }
  0x51   : > { %933 = vmatpush.bf16.msrb.mxu3 %v1376_v30  ;;  %v1316_v28 = vor.u32 %v1439_v22, %v1313_v23  ;;  %v1436_v30 = vld [vmem:[%s2195_s5 + $0x1c] sm:$0xf] }
  0x53   : > { %924 = vmatpush.bf16.msrb.mxu2 %v1324_v21 }
  0x54   : > { %730 = vmatpush.bf16.msrb.mxu0 %v1220_v38  ;;  %743 = vmatpush.bf16.msrb.mxu1 %v1224_v41 }
  0x55   : > { %934 = vmatpush.bf16.msrb.mxu3 %v1364_v47  ;;  %v1289_v47 = vld [vmem:[%s2195_s5 + $0xc] sm:$0xf0] }
  0x57   : > { %925 = vmatpush.bf16.msrb.mxu2 %v1312_v34  ;;  %v1355_v34 = vld [vmem:[%s2195_s5 + $0x80] sm:$0xf] }
  0x58   : > { %731 = vmatpush.bf16.msrb.mxu0 %v1208_v53  ;;  %744 = vmatpush.bf16.msrb.mxu1 %v1212_v57  ;;  %v1356_v42 = vor.u32 %v1450_v35, %v1355_v34  ;;  %v285_v53 = vld [vmem:[%s1677_s18 + $0x10] sm:$0xff]  ;;  %s1030_s18 = sshll.u32 %s1026_s15, 4  ;;  %s1031_s18 = int_to_ptr.hbm [resolvable:$true] %s1030_s18 }
  0x59   : > { %v1447_v57 = vld [vmem:[%s2195_s5 + $0x70] sm:$0xf0]  ;;  %s1532_s20 = sshra.s32 %s1031_s18, 4  ;;  %s1533_s20 = int_to_ptr.hbm [resolvable:$true] %s1532_s20 }
  0x5a   : > { %s1534_s21 = scalar_lea.hbm %s1533_s20, 1  ;;  %p1539_p1 = scmp.lt.s32.totalorder %s1533_s20, %s2197_s7 }
  0x5b   : > { %926 = vmatpush.bf16.msrb.mxu2 %v1300_v52  ;;  %p1535_p12 = scmp.ne.s32.totalorder %s1533_s20, %s1534_s21  ;;  %p1540_p2 = scmp.lt.s32.totalorder %s1538_s28, %s1534_s21 }
  0x5c   : > { %732 = vmatpush.bf16.msrb.mxu0 %v1196_v3  ;;  %745 = vmatpush.bf16.msrb.mxu1 %v1200_v9  ;;  %v1307_v9 = vld [vmem:[%s2195_s5 + $0x20] sm:$0xf] }
  0x5d   : > { %p1536_p13 = pnand %p1535_p12, %p1661_p5  ;;  %p1541_p3 = por %p1540_p2, %p1539_p1 }
  0x5f   : > { %p1537_p0 = pneg %p1536_p13 }
  0x61   : > { %p1542_p4 = pnand %p1541_p3, %p1537_p0 }
  0xbb   : > { %v464_v10 = vpop.f32.mrf.mxu0 }
  0xbc   : > { %v465_v14 = vadd.f32 %v464_v10, %v321_v56  ;;  %v477_v15 = vpop.f32.mrf.mxu1  ;;  %v1448_v56 = vld [vmem:[%s2195_s5 + $0x7c] sm:$0xf]  ;;  %v2057_v10 = vld [vmem:[#allocation3] sm:$0xff] }
  0xbd   : > { %v478_v20 = vadd.f32 %v477_v15, %v322_v1  ;;  %v1352_v61 = vor.u32 %v1448_v56, %v1349_v58  ;;  %v1288_v1 = vor.u32 %v1434_v60, %v1287_v59  ;;  %v2063_v15 = vpack.c.bf16 %v2057_v10, %v2057_v10  ;;  %v1343_v56 = vld [vmem:[%s2195_s5 + $0x68] sm:$0xf] }
  0xbe   : > { %v494_v26 = vadd.f32 %v465_v14, %v283_v7  ;;  %v1344_v60 = vor.u32 %v1447_v57, %v1343_v56 }
  0xbf   : > { %v514_v29 = vadd.f32 %v478_v20, %v284_v8  ;;  %935 = vmatpush.bf16.msrb.mxu3 %v1352_v61  ;;  %927 = vmatpush.bf16.msrb.mxu2 %v1288_v1  ;;  %v1456_v20 = vld [vmem:[%s2195_s5 + $0xb8] sm:$0xf0]  ;;  %v1332_v1 = vor.u32 %v1444_v63, %v1331_v62 }
  0xc0   : > { %v1187_v33 = vmul.f32 -1.442695, %v494_v26  ;;  %v1380_v21 = vor.u32 %v1456_v20, %v1379_v19  ;;  %v1453_v26 = vld [vmem:[%s2195_s5 + $0xa0] sm:$0xf0]  ;;  %v1435_v19 = vld [vmem:[%s2195_s5 + $0x10] sm:$0xf0] }
  0xc1   : > { %v1188_v37 = vmul.f32 -1.442695, %v514_v29  ;;  %v1368_v29 = vor.u32 %v1453_v26, %v1367_v24  ;;  %v784_v24 = vld [vmem:[%s2196_s6] sm:$0x7] }
  0xc2   : > { %1498 = vpow2.f32 %v1187_v33  ;;  %928 = vmatmul.bf16.vlgmr.msrb.gmra.mxu2 %v2063_v15  ;;  %946 = vmatpush.bf16.msra.mxu0 %v1380_v21  ;;  %v1301_v33 = vld [vmem:[%s2195_s5 + $0x24] sm:$0xf0] }
  0xc3   : > { %1500 = vpow2.f32 %v1188_v37  ;;  %v466_v46 = vpop.f32.mrf.mxu0  ;;  %936 = vmatpush.bf16.msrb.mxu3 %v1340_v13  ;;  %v323_v37 = vperm.slane %v1901_v43, 2  ;;  %v1304_v41 = vor.u32 %v1436_v30, %v1301_v33 }
  0xc4   : > { %v479_v51 = vpop.f32.mrf.mxu1  ;;  %v1433_v46 = vld [vmem:[%s2195_s5 + $0x4] sm:$0xf] }
  0xc5   : > { %v490_v8 = vpop.f32.mrf.mxu2  ;;  %v1292_v51 = vor.u32 %v1433_v46, %v1289_v47 }
  0xc6   : > { %947 = vmatpush.bf16.msra.mxu0 %v1368_v29  ;;  %v491_v48 = vadd.f32 %v490_v8, %v323_v37  ;;  %v1320_v8 = vor.u32 %v1441_v5, %v1319_v4 }
  0xc7   : > { %937 = vmatpush.bf16.msrb.mxu3 %v1328_v18  ;;  %v1295_v18 = vld [vmem:[%s2195_s5 + $0x8] sm:$0xf] }
  0xc8   : > { %v1499_v7 = vpop.eup %1498  ;;  %v1296_v21 = vor.u32 %v1435_v19, %v1295_v18 }
  0xc9   : > { %v1501_v11 = vpop.eup %1500  ;;  %v498_v12 = vadd.f32 1.0, %v1499_v7 }
  0xca   : > { %v2059_v14 = vadd.f32 1.0, %v1501_v11  ;;  %948 = vmatpush.bf16.msra.mxu0 %v1356_v42  ;;  %v1438_v11 = vld [vmem:[%s2195_s5 + $0x28] sm:$0xf0] }
  0xcb   : > { %1502 = vrcp.f32 %v498_v12  ;;  %v510_v40 = vand.u32 2147483648, %v498_v12  ;;  %938 = vmatpush.bf16.msrb.mxu3 %v1316_v28  ;;  %v508_v45 = vand.u32 2147483647, %v498_v12  ;;  %vm504_vm1 = vweird.f32 %v498_v12  ;;  %v576_v28 = vld [vmem:[%s2194_s4] sm:$0x7] }
  0xcc   : > { %1504 = vrcp.f32 %v2059_v14  ;;  %vm524_vm4 = vweird.f32 %v2059_v14  ;;  %v530_v59 = vand.u32 2147483648, %v2059_v14  ;;  %v528_v61 = vand.u32 2147483647, %v2059_v14 }
  0xcd   : > { %v492_v25 = vpop.f32.mrf.mxu2  ;;  %v511_v50 = vor.u32 1.1754944e-38, %v510_v40  ;;  %vm509_vm3 = vcmp.eq.f32.partialorder %v508_v45, 8.507059e+37  ;;  %v578_v29 = vperm.slane %v576_v28, 0  ;;  %v787_v40 = vperm.slane %v784_v24, 1 }
  0xce   : > { %949 = vmatpush.bf16.msra.mxu0 %v1344_v60  ;;  %v531_v6 = vor.u32 1.1754944e-38, %v530_v59  ;;  %vm529_vm7 = vcmp.eq.f32.partialorder %v528_v61, 8.507059e+37  ;;  %v580_v63 = vperm.slane %v576_v28, 2 }
  0xcf   : > { %939 = vmatpush.bf16.msrb.mxu3 %v1304_v41 }
  0xd1   : > { %v1503_v27 = vpop.eup %1502 }
  0xd2   : > { %v1505_v31 = vpop.eup %1504  ;;  %v500_v32 = vmul.f32 %v1503_v27, %v498_v12  ;;  %vm505_vm0 = vweird.f32 %v1503_v27  ;;  %950 = vmatpush.bf16.msra.mxu0 %v1332_v1 }
  0xd3   : > { %v520_v36 = vmul.f32 %v1505_v31, %v2059_v14  ;;  %vm506_vm2 = vmor %vm504_vm1, %vm505_vm0  ;;  %vm525_vm5 = vweird.f32 %v1505_v31  ;;  %940 = vmatpush.bf16.msrb.mxu3 %v1292_v51  ;;  %v1308_v14 = vor.u32 %v1438_v11, %v1307_v9  ;;  %vm1007_vm0 = vcmask 1042432  }
  0xd4   : > { %v501_v38 = vsub.f32 1.0, %v500_v32  ;;  %vm526_vm6 = vmor %vm524_vm4, %vm525_vm5 }
  0xd5   : > { %v521_v39 = vsub.f32 1.0, %v520_v36 }
  0xd6   : > { %v502_v44 = vmul.f32 %v1503_v27, %v501_v38  ;;  %951 = vmatpush.bf16.msra.mxu0 %v1320_v8 }
  0xd7   : > { %v522_v43 = vmul.f32 %v1505_v31, %v521_v39  ;;  %v579_v39 = vperm.slane %v576_v28, 1 }
  0xd8   : > { %v503_v49 = vadd.f32 %v1503_v27, %v502_v44 }
  0xd9   : > { %v523_v55 = vadd.f32 %v1505_v31, %v522_v43 }
  0xda   : > { %v507_v52 = vsel %vm506_vm2, %v1503_v27, %v503_v49  ;;  %952 = vmatpush.bf16.msra.mxu0 %v1308_v14  ;;  %v786_v27 = vperm.slane %v784_v24, 0 }
  0xdb   : > { %v512_v54 = vsel %vm509_vm3, %v511_v50, %v507_v52  ;;  %v527_v3 = vsel %vm526_vm6, %v1505_v31, %v523_v55 }
  0xdc   : > { %v534_v58 = vmul.f32 %v512_v54, %v491_v48  ;;  %v532_v7 = vsel %vm529_vm7, %v531_v6, %v527_v3  ;;  %v788_v54 = vperm.slane %v784_v24, 2 }
  0xdd   : > { %v537_v12 = vsub.f32 1.0, %v532_v7  ;;  %v539_v17 = vmul.f32 %v532_v7, %v1816_v2 }
  0xde   : > { %v535_v0 = vadd.f32 %v534_v58, %v285_v53  ;;  %953 = vmatpush.bf16.msra.mxu0 %v1296_v21 }
  0xe0   : > { %1506 = vtanh.f32 %v535_v0 }
  0xe6   : > { %v1507_v13 = vpop.eup %1506 }
  0xe7   : > { %v538_v16 = vmul.f32 %v1507_v13, %v537_v12 }
  0xe9   : > { %v540_v20 = vadd.f32 %v539_v17, %v538_v16 }
  0xeb   : > { %541 = vst [vmem:[#allocation2] sm:$0xff] %v540_v20  ;;  %v543_v22 = vpack.c.bf16 %v540_v20, %v540_v20 }
  0xed   : > { %720 = vmatmul.bf16.vlgmr.msra.gmra.mxu3 %v543_v22  ;;  %733 = vmatmul.bf16.vlgmr.msrb.gmra.mxu0 %v543_v22 }
  0xee   : > { %746 = vmatmul.bf16.vlgmr.msrb.gmra.mxu1 %v543_v22 }
  0xfd   : > { %941 = vmatmul.bf16.vlgmr.msrb.gmra.mxu3 %v2063_v15  ;;  %954 = vmatmul.bf16.vlgmr.msra.gmra.mxu0 %v2063_v15 }
 0x145   : > { %v929_v2 = vpop.f32.mrf.mxu2 }
 0x146   : > { %v930_v30 = vadd.f32 %v929_v2, %v786_v27 }
 0x14d   : > { %v931_v23 = vpop.f32.mrf.mxu2 }
 0x16a   : > { %v734_v25 = vpop.f32.mrf.mxu0 }
 0x16b   : > { %v747_v26 = vpop.f32.mrf.mxu1  ;;  %v735_v44 = vadd.f32 %v734_v25, %v579_v39 }
 0x16c   : > { %v748_v3 = vadd.f32 %v747_v26, %v580_v63 }
 0x170   : > { %v721_v31 = vpop.f32.mrf.mxu3 }
 0x171   : > { %v722_v32 = vadd.f32 %v721_v31, %v578_v29 }
 0x172   : > { %v736_v33 = vpop.f32.mrf.mxu0 }
 0x173   : > { %v959_v34 = vadd.f32 %v930_v30, %v722_v32  ;;  %v749_v15 = vpop.f32.mrf.mxu1 }
 0x175   : > { %v1381_v35 = vmul.f32 -1.442695, %v959_v34 }
 0x177   : > { %1508 = vpow2.f32 %v1381_v35 }
 0x178   : > { %v723_v36 = vpop.f32.mrf.mxu3 }
 0x17a   : > { %v955_v37 = vpop.f32.mrf.mxu0 }
 0x17b   : > { %v956_v61 = vadd.f32 %v955_v37, %v788_v54 }
 0x17d   : > { %v1509_v38 = vpop.eup %1508 }
 0x17e   : > { %v963_v41 = vadd.f32 1.0, %v1509_v38 }
 0x180   : > { %1510 = vrcp.f32 %v963_v41  ;;  %v942_v42 = vpop.f32.mrf.mxu3  ;;  %v975_v53 = vand.u32 2147483648, %v963_v41  ;;  %v973_v55 = vand.u32 2147483647, %v963_v41  ;;  %vm969_vm9 = vweird.f32 %v963_v41 }
 0x181   : > { %v943_v45 = vadd.f32 %v942_v42, %v787_v40 }
 0x182   : > { %v957_v46 = vpop.f32.mrf.mxu0  ;;  %v976_v60 = vor.u32 1.1754944e-38, %v975_v53  ;;  %vm974_vm11 = vcmp.eq.f32.partialorder %v973_v55, 8.507059e+37 }
 0x183   : > { %v979_v47 = vadd.f32 %v943_v45, %v735_v44 }
 0x185   : > { %v1382_v43 = vmul.f32 -1.442695, %v979_v47 }
 0x186   : > { %v1511_v48 = vpop.eup %1510 }
 0x187   : > { %1512 = vpow2.f32 %v1382_v43  ;;  %v965_v49 = vmul.f32 %v1511_v48, %v963_v41  ;;  %vm970_vm8 = vweird.f32 %v1511_v48 }
 0x188   : > { %v944_v50 = vpop.f32.mrf.mxu3  ;;  %vm971_vm10 = vmor %vm969_vm9, %vm970_vm8 }
 0x189   : > { %v966_v51 = vsub.f32 1.0, %v965_v49 }
 0x18b   : > { %v967_v52 = vmul.f32 %v1511_v48, %v966_v51 }
 0x18d   : > { %v1513_v56 = vpop.eup %1512  ;;  %v968_v57 = vadd.f32 %v1511_v48, %v967_v52 }
 0x18e   : > { %v983_v58 = vadd.f32 1.0, %v1513_v56 }
 0x18f   : > { %v972_v59 = vsel %vm971_vm10, %v1511_v48, %v968_v57 }
 0x190   : > { %1514 = vrcp.f32 %v983_v58  ;;  %v977_v62 = vsel %vm974_vm11, %v976_v60, %v972_v59  ;;  %v995_v7 = vand.u32 2147483648, %v983_v58  ;;  %v993_v9 = vand.u32 2147483647, %v983_v58 }
 0x191   : > { %v999_v0 = vmul.f32 %v977_v62, %v956_v61  ;;  %vm989_vm13 = vweird.f32 %v983_v58 }
 0x192   : > { %v996_v12 = vor.u32 1.1754944e-38, %v995_v7  ;;  %vm994_vm15 = vcmp.eq.f32.partialorder %v993_v9, 8.507059e+37 }
 0x193   : > { %v1000_v5 = vadd.f32 %v999_v0, %v748_v3 }
 0x195   : > { %1516 = vtanh.f32 %v1000_v5 }
 0x196   : > { %v1515_v1 = vpop.eup %1514 }
 0x197   : > { %v985_v4 = vmul.f32 %v1515_v1, %v983_v58  ;;  %vm990_vm12 = vweird.f32 %v1515_v1 }
 0x198   : > { %vm991_vm14 = vmor %vm989_vm13, %vm990_vm12 }
 0x199   : > { %v986_v6 = vsub.f32 1.0, %v985_v4 }
 0x19b   : > { %v987_v8 = vmul.f32 %v1515_v1, %v986_v6  ;;  %v1517_v17 = vpop.eup %1516 }
 0x19d   : > { %v988_v11 = vadd.f32 %v1515_v1, %v987_v8 }
 0x19f   : > { %v992_v13 = vsel %vm991_vm14, %v1515_v1, %v988_v11 }
 0x1a0   : > { %v997_v14 = vsel %vm994_vm15, %v996_v12, %v992_v13 }
 0x1a1   : > { %v1002_v16 = vsub.f32 1.0, %v997_v14  ;;  %v1004_v19 = vmul.f32 %v997_v14, %v2057_v10 }
 0x1a3   : > { %v1003_v18 = vmul.f32 %v1517_v17, %v1002_v16 }
 0x1a5   : > { %v1005_v20 = vadd.f32 %v1004_v19, %v1003_v18 }
 0x1a7   : > { %1006 = vst [vmem:[#allocation3] sm:$0xff] %v1005_v20  ;;  %v1008_v21 = vsel %vm1007_vm0, %v1005_v20, 0.0 }
 0x1a8   : > { %v1009_v22 = vrot.slane %v1008_v21, 4 }
 0x1aa   : > { %v1010_v2 = vadd.f32 %v1009_v22, %v1008_v21 }
 0x1ac   : > { %v1011_v23 = vrot.slane %v1010_v2, 2 }
 0x1ae   : > { %v1012_v24 = vadd.f32 %v1011_v23, %v1010_v2 }
 0x1b0   : > { %v1013_v25 = vrot.slane %v1012_v24, 1 }
 0x1b2   : > { %v1014_v26 = vadd.f32 %v1013_v25, %v1012_v24 }
 0x1b4   : > { %v1015_v10 = vmul.f32 0.33333334, %v1014_v26 }
 0x1b6   : > { %1016 = vst [vmem:[%s1681_s19] sm:$0x1] %v1015_v10 }
 0x1b7   : > { %1545 = shalt.err (!%p1542_p4)
}
 0x1b8   : > { %1458 = dma.vmem_to_hbm [thread:$0]  (%p1661_p5), %s1029_s16, 16, %s1031_s18, %s1018_s17  }
 0x1b9 PF: > { %p1464_p7 = scmp.ge.s32.totalorder %s1580_s27, 2  ;;  %s1042_s13 = sand.u32 1, %s1568_s24  }
 0x1ba   : > { %s1043_s19 = scalar_lea.sflag [#allocation5], %s1042_s13 }
 0x1bb   : > { %p1461_p8 = pnand %p1464_p7, %p1665_p6 }
 0x1bd   : > { %p1462_p9 = pneg %p1461_p8 }
 0x1bf   : > { %1563 = dma.done.wait (%p1462_p9), %s1043_s19, 16  }
 0x1c0   : > { %1565 = vsyncadd (%p1462_p9), %s1043_s19, 4294967280  ;;  %p17_p10 = scmp.ge.s32.totalorder %s1648_s30, 4   ;;  %s2200_s24 = smov %s1572_s25 }
 0x1c1   : > { %s2201_s25 = smov %s1576_s26  ;;  %s2202_s26 = smov %s1659_s10 }
 0x1c2   : > { %s2203_s27 = smov %s1648_s30  ;;  %19 = sbr.rel (!%p17_p10) target bundleno = 3 (0x3), region = 87 }
 0x1c7   :  { %1048 = vsyncpa [#allocation5], 1 }
 0x1c8   :  { %1050 = vsyncpa [#allocation5 + $0x1], 1 }

</bundles_post_ra>
